<compile_context>
chip_gen: v7x
topology: tpu7x:2x2x1
jax: 0.10.0
libtpu: 0.0.40
codegen_flags: <defaults>
</compile_context>

<pallas_src>
import jax
import jax.numpy as jnp
import numpy as np
from jax import lax
from jax.experimental import pallas as pl
from jax.experimental.pallas import tpu as pltpu

EPS = 1e-5
KSIZE = 9          # conv kernel size of the stem / residual blocks
PAD = 4            # conv padding (same-length convolution)
C_PAD = 128        # lane-dense channel padding used inside the fused kernel
_HAS_DS = (False, False, True, False)   # layer1 blocks 0,1 then layer2 blocks 0,1


# ----------------------------------------------------------------------------
# Fused Pallas kernel: the entire ResNet1D forward for one batch element.
# ----------------------------------------------------------------------------
def _fused_resnet_kernel(x_ref, *refs):
    """refs = [w_0, sb_0, ..., w_10, sb_10, o_ref, xp_scratch]

    w_i  : (C_PAD, K_i*C_PAD) bf16  -- conv taps packed along the column dim
    sb_i : (2, C_PAD) f32           -- row 0 = folded-BN scale, row 1 = bias
    """
    wrefs = refs[:-2]
    o_ref = refs[-2]
    xp_ref = refs[-1]
    L = o_ref.shape[1]

    # Zero the padded staging slab once per grid step.  Its 2*PAD halo rows are
    # never written afterwards, so they provide the conv zero-padding for free.
    xp_ref[...] = jnp.zeros(xp_ref.shape, xp_ref.dtype)

    conv_idx = iter(range(len(wrefs) // 2))

    def conv(h, *, K, relu, residual=None):
        i = next(conv_idx)
        w_ref, sb_ref = wrefs[2 * i], wrefs[2 * i + 1]
        if K == 1:
            acc = jnp.dot(h.astype(jnp.bfloat16), w_ref[...],
                          preferred_element_type=jnp.float32)
        else:
            # Stage the activation into the zero-padded VMEM slab.
            xp_ref[PAD:PAD + L, :] = h
            xp = xp_ref[...].astype(jnp.bfloat16)            # (L + 2*PAD, C_PAD)
            # One MXU matmul for all K taps; columns are [tap, cout] blocks.
            y = jnp.dot(xp, w_ref[...], preferred_element_type=jnp.float32)
            acc = y[0:L, 0:C_PAD]
            for k in range(1, K):                            # shifted tap combine
                acc = acc + y[k:k + L, k * C_PAD:(k + 1) * C_PAD]
        sb = sb_ref[...]
        out = acc * sb[0:1, :] + sb[1:2, :]                  # f32 epilogue
        if residual is not None:
            out = out + residual
        if relu:
            out = jnp.maximum(out, 0.0)
        return out

    h = x_ref[0].astype(jnp.float32)          # (L, C_PAD); channels >= 4 are zero
    h = conv(h, K=KSIZE, relu=True)           # stem conv + BN + ReLU
    for has_ds in _HAS_DS:                    # 4 BasicBlock1D blocks
        identity = conv(h, K=1, relu=False) if has_ds else h
        a = conv(h, K=KSIZE, relu=True)
        h = conv(a, K=KSIZE, relu=True, residual=identity)
    y = conv(h, K=1, relu=False)              # 1x1 head (+bias), padded to 128 lanes
    o_ref[0] = y.astype(o_ref.dtype)          # lane-dense (L, 128) store


# ----------------------------------------------------------------------------
# Weight packing (wrapper side, outside the kernel)
# ----------------------------------------------------------------------------
def _pack_w(w_kio):
    """(K, Cin, Cout) f32 -> (C_PAD, K*C_PAD) bf16 with taps along columns."""
    K, cin, cout = w_kio.shape
    w = jnp.transpose(w_kio, (1, 0, 2))                        # (Cin, K, Cout)
    w = jnp.pad(w, ((0, C_PAD - cin), (0, 0), (0, C_PAD - cout)))
    return w.reshape(C_PAD, K * C_PAD).astype(jnp.bfloat16)


def _pack_sb(scale, bias):
    c = scale.shape[0]
    s = jnp.pad(scale.astype(jnp.float32), (0, C_PAD - c), constant_values=1.0)
    b = jnp.pad(bias.astype(jnp.float32), (0, C_PAD - c))
    return jnp.stack([s, b])                                   # (2, C_PAD)


def _flatten_convs(params):
    """(w_kio, scale, bias) tuples in the exact order the kernel consumes them."""
    convs = [(params["conv1_w"], params["bn1_scale"], params["bn1_bias"])]
    for blk in params["layer1"] + params["layer2"]:
        if "ds_w" in blk:
            convs.append((blk["ds_w"], blk["ds_scale"], blk["ds_bias"]))
        convs.append((blk["conv1_w"], blk["bn1_scale"], blk["bn1_bias"]))
        convs.append((blk["conv2_w"], blk["bn2_scale"], blk["bn2_bias"]))
    num_classes = params["out_b"].shape[0]
    convs.append((params["out_w"],
                  jnp.ones((num_classes,), jnp.float32), params["out_b"]))
    return convs


# ----------------------------------------------------------------------------
# Forward pass: one fused pallas_call
# ----------------------------------------------------------------------------
@jax.jit
def resnet1d_forward(params, x_ncl):
    B, c_in, L = x_ncl.shape
    num_classes = params["out_b"].shape[0]

    x = jnp.transpose(x_ncl, (0, 2, 1))                     # NCL -> (B, L, Cin)
    x = jnp.pad(x, ((0, 0), (0, 0), (0, C_PAD - c_in)))     # lane-dense input

    flat = []
    for w_kio, scale, bias in _flatten_convs(params):
        flat.append(_pack_w(w_kio))
        flat.append(_pack_sb(scale, bias))

    weight_specs = [pl.BlockSpec(a.shape, lambda b: (0, 0)) for a in flat]

    out = pl.pallas_call(
        _fused_resnet_kernel,
        out_shape=jax.ShapeDtypeStruct((B, L, C_PAD), jnp.float32),
        grid=(B,),                       # batch-parallel -> both TCs busy on v7x
        in_specs=[pl.BlockSpec((1, L, C_PAD), lambda b: (b, 0, 0))] + weight_specs,
        out_specs=pl.BlockSpec((1, L, C_PAD), lambda b: (b, 0, 0)),
        scratch_shapes=[pltpu.VMEM((L + 2 * PAD, C_PAD), jnp.float32)],
        compiler_params=pltpu.CompilerParams(
            dimension_semantics=("parallel",),
            vmem_limit_bytes=32 * 1024 * 1024,
        ),
    )(x, *flat)

    return jnp.transpose(out[:, :, :num_classes], (0, 2, 1))  # back to NCL


# ----------------------------------------------------------------------------
# Deterministic parameter construction (shapes follow the PyTorch __init__)
# ----------------------------------------------------------------------------
def _init_conv(key, cout, cin, k):
    # PyTorch Conv1d layout (Cout, Cin, K) -> kernel layout (K, Cin, Cout).
    # Fan-in scaled init keeps activations O(1) so bf16 matmuls stay accurate.
    std = 1.0 / np.sqrt(cin * k)
    w = std * jax.random.normal(key, (cout, cin, k), jnp.float32)
    return jnp.transpose(w, (2, 1, 0))


def _init_bn(key, c):
    k1, k2, k3, k4 = jax.random.split(key, 4)
    gamma = 1.0 + 0.1 * jax.random.normal(k1, (c,), jnp.float32)
    beta = 0.1 * jax.random.normal(k2, (c,), jnp.float32)
    mean = 0.1 * jax.random.normal(k3, (c,), jnp.float32)
    var = jax.random.uniform(k4, (c,), jnp.float32, minval=0.5, maxval=1.5)
    scale = gamma / jnp.sqrt(var + EPS)
    bias = beta - mean * scale
    return scale, bias


def make_basic_block(key, cin, cout, ksize=KSIZE):
    keys = jax.random.split(key, 6)
    blk = {
        "conv1_w": _init_conv(keys[0], cout, cin, ksize),
        "conv2_w": _init_conv(keys[1], cout, cout, ksize),
    }
    blk["bn1_scale"], blk["bn1_bias"] = _init_bn(keys[2], cout)
    blk["bn2_scale"], blk["bn2_bias"] = _init_bn(keys[3], cout)
    if cin != cout:
        blk["ds_w"] = _init_conv(keys[4], cout, cin, 1)
        blk["ds_scale"], blk["ds_bias"] = _init_bn(keys[5], cout)
    return blk


def make_params(key, num_classes=3):
    keys = jax.random.split(key, 8)
    params = {"conv1_w": _init_conv(keys[0], 64, 4, KSIZE)}
    params["bn1_scale"], params["bn1_bias"] = _init_bn(keys[1], 64)
    params["layer1"] = [make_basic_block(keys[2], 64, 64),
                        make_basic_block(keys[3], 64, 64)]
    params["layer2"] = [make_basic_block(keys[4], 64, 128),
                        make_basic_block(keys[5], 128, 128)]
    params["out_w"] = _init_conv(keys[6], num_classes, 128, 1)
    params["out_b"] = 0.1 * jax.random.normal(keys[7], (num_classes,), jnp.float32)
    return params


# ----------------------------------------------------------------------------
# Pure-JAX (lax.conv, all f32) reference for the correctness check
# ----------------------------------------------------------------------------
def _ref_conv_bn(x_ncl, w_kio, scale, bias, pad, relu, residual=None):
    w_oik = jnp.transpose(w_kio, (2, 1, 0))
    y = lax.conv_general_dilated(
        x_ncl, w_oik, window_strides=(1,), padding=[(pad, pad)],
        dimension_numbers=("NCH", "OIH", "NCH"),
    )
    y = y * scale[None, :, None] + bias[None, :, None]
    if residual is not None:
        y = y + residual
    if relu:
        y = jnp.maximum(y, 0.0)
    return y


def ref_forward(params, x_ncl):
    x = _ref_conv_bn(x_ncl, params["conv1_w"], params["bn1_scale"],
                     params["bn1_bias"], PAD, True)
    for blk in params["layer1"] + params["layer2"]:
        if "ds_w" in blk:
            identity = _ref_conv_bn(x, blk["ds_w"], blk["ds_scale"],
                                    blk["ds_bias"], 0, False)
        else:
            identity = x
        out = _ref_conv_bn(x, blk["conv1_w"], blk["bn1_scale"],
                           blk["bn1_bias"], PAD, True)
        x = _ref_conv_bn(out, blk["conv2_w"], blk["bn2_scale"],
                         blk["bn2_bias"], PAD, True, residual=identity)
    ones = jnp.ones((params["out_w"].shape[2],), jnp.float32)
    return _ref_conv_bn(x, params["out_w"], ones, params["out_b"], 0, False)


# ----------------------------------------------------------------------------
if __name__ == "__main__":
    key = jax.random.PRNGKey(0)
    k_param, k_x = jax.random.split(key)

    params = make_params(k_param, num_classes=3)

    B, C_IN, L = 2, 4, 16
    x = jax.random.normal(k_x, (B, C_IN, L), jnp.float32)   # NCL, like PyTorch

    out = jax.block_until_ready(resnet1d_forward(params, x))
    assert out.shape == (B, 3, L), out.shape

    ref = jax.block_until_ready(ref_forward(params, x))
    # bf16 MXU operands (f32 accumulation + f32 epilogue) vs the all-f32 reference.
    np.testing.assert_allclose(np.asarray(out), np.asarray(ref),
                               rtol=5e-2, atol=5e-2)

    print("KERNEL_OK")
</pallas_src>

<mosaic_0001>
module attributes {stable_mosaic.version = 11 : i64} {
  func.func @_fused_resnet_kernel(%arg0: i32, %arg1: memref<1x16x128xf32, #tpu.memory_space<vmem>>, %arg2: memref<128x1152xbf16, #tpu.memory_space<vmem>>, %arg3: memref<2x128xf32, #tpu.memory_space<vmem>>, %arg4: memref<128x1152xbf16, #tpu.memory_space<vmem>>, %arg5: memref<2x128xf32, #tpu.memory_space<vmem>>, %arg6: memref<128x1152xbf16, #tpu.memory_space<vmem>>, %arg7: memref<2x128xf32, #tpu.memory_space<vmem>>, %arg8: memref<128x1152xbf16, #tpu.memory_space<vmem>>, %arg9: memref<2x128xf32, #tpu.memory_space<vmem>>, %arg10: memref<128x1152xbf16, #tpu.memory_space<vmem>>, %arg11: memref<2x128xf32, #tpu.memory_space<vmem>>, %arg12: memref<128x128xbf16, #tpu.memory_space<vmem>>, %arg13: memref<2x128xf32, #tpu.memory_space<vmem>>, %arg14: memref<128x1152xbf16, #tpu.memory_space<vmem>>, %arg15: memref<2x128xf32, #tpu.memory_space<vmem>>, %arg16: memref<128x1152xbf16, #tpu.memory_space<vmem>>, %arg17: memref<2x128xf32, #tpu.memory_space<vmem>>, %arg18: memref<128x1152xbf16, #tpu.memory_space<vmem>>, %arg19: memref<2x128xf32, #tpu.memory_space<vmem>>, %arg20: memref<128x1152xbf16, #tpu.memory_space<vmem>>, %arg21: memref<2x128xf32, #tpu.memory_space<vmem>>, %arg22: memref<128x128xbf16, #tpu.memory_space<vmem>>, %arg23: memref<2x128xf32, #tpu.memory_space<vmem>>, %arg24: memref<1x16x128xf32, #tpu.memory_space<vmem>>, %arg25: memref<24x128xf32, #tpu.memory_space<vmem>>) attributes {dimension_semantics = [#tpu.dimension_semantics<parallel>], iteration_bounds = array<i64: 2>, scalar_prefetch = 0 : i64, scratch_operands = 1 : i64, tpu.core_type = #tpu.core_type<tc>, window_params = [{transform_indices = @transform_0, window_bounds = array<i64: 1, 16, 128>}, {pipeline_mode = #tpu.pipeline_mode<synchronous>, transform_indices = @transform_1, window_bounds = array<i64: 128, 1152>}, {pipeline_mode = #tpu.pipeline_mode<synchronous>, transform_indices = @transform_2, window_bounds = array<i64: 2, 128>}, {pipeline_mode = #tpu.pipeline_mode<synchronous>, transform_indices = @transform_3, window_bounds = array<i64: 128, 1152>}, {pipeline_mode = #tpu.pipeline_mode<synchronous>, transform_indices = @transform_4, window_bounds = array<i64: 2, 128>}, {pipeline_mode = #tpu.pipeline_mode<synchronous>, transform_indices = @transform_5, window_bounds = array<i64: 128, 1152>}, {pipeline_mode = #tpu.pipeline_mode<synchronous>, transform_indices = @transform_6, window_bounds = array<i64: 2, 128>}, {pipeline_mode = #tpu.pipeline_mode<synchronous>, transform_indices = @transform_7, window_bounds = array<i64: 128, 1152>}, {pipeline_mode = #tpu.pipeline_mode<synchronous>, transform_indices = @transform_8, window_bounds = array<i64: 2, 128>}, {pipeline_mode = #tpu.pipeline_mode<synchronous>, transform_indices = @transform_9, window_bounds = array<i64: 128, 1152>}, {pipeline_mode = #tpu.pipeline_mode<synchronous>, transform_indices = @transform_10, window_bounds = array<i64: 2, 128>}, {pipeline_mode = #tpu.pipeline_mode<synchronous>, transform_indices = @transform_11, window_bounds = array<i64: 128, 128>}, {pipeline_mode = #tpu.pipeline_mode<synchronous>, transform_indices = @transform_12, window_bounds = array<i64: 2, 128>}, {pipeline_mode = #tpu.pipeline_mode<synchronous>, transform_indices = @transform_13, window_bounds = array<i64: 128, 1152>}, {pipeline_mode = #tpu.pipeline_mode<synchronous>, transform_indices = @transform_14, window_bounds = array<i64: 2, 128>}, {pipeline_mode = #tpu.pipeline_mode<synchronous>, transform_indices = @transform_15, window_bounds = array<i64: 128, 1152>}, {pipeline_mode = #tpu.pipeline_mode<synchronous>, transform_indices = @transform_16, window_bounds = array<i64: 2, 128>}, {pipeline_mode = #tpu.pipeline_mode<synchronous>, transform_indices = @transform_17, window_bounds = array<i64: 128, 1152>}, {pipeline_mode = #tpu.pipeline_mode<synchronous>, transform_indices = @transform_18, window_bounds = array<i64: 2, 128>}, {pipeline_mode = #tpu.pipeline_mode<synchronous>, transform_indices = @transform_19, window_bounds = array<i64: 128, 1152>}, {pipeline_mode = #tpu.pipeline_mode<synchronous>, transform_indices = @transform_20, window_bounds = array<i64: 2, 128>}, {pipeline_mode = #tpu.pipeline_mode<synchronous>, transform_indices = @transform_21, window_bounds = array<i64: 128, 128>}, {pipeline_mode = #tpu.pipeline_mode<synchronous>, transform_indices = @transform_22, window_bounds = array<i64: 2, 128>}, {transform_indices = @transform_23, window_bounds = array<i64: 1, 16, 128>}]} {
    %cst = arith.constant 0.000000e+00 : f32
    %0 = vector.broadcast %cst : f32 to vector<24x128xf32>
    %c0 = arith.constant 0 : index
    %c0_0 = arith.constant 0 : index
    %1 = vector.load %arg25[%c0, %c0_0] : memref<24x128xf32, #tpu.memory_space<vmem>>, vector<24x128xf32>
    tpu.vector_store %arg25[%c0, %c0_0], %0 {strides = array<i32>} : memref<24x128xf32, #tpu.memory_space<vmem>>, vector<24x128xf32>,
    %c0_1 = arith.constant 0 : index
    %c0_2 = arith.constant 0 : index
    %c0_3 = arith.constant 0 : index
    %2 = vector.load %arg1[%c0_1, %c0_2, %c0_3] : memref<1x16x128xf32, #tpu.memory_space<vmem>>, vector<1x16x128xf32>
    %3 = vector.shape_cast %2 : vector<1x16x128xf32> to vector<16x128xf32>
    %c4 = arith.constant 4 : index
    %c0_4 = arith.constant 0 : index
    %4 = vector.load %arg25[%c4, %c0_4] : memref<24x128xf32, #tpu.memory_space<vmem>>, vector<16x128xf32>
    tpu.vector_store %arg25[%c4, %c0_4], %3 {strides = array<i32>} : memref<24x128xf32, #tpu.memory_space<vmem>>, vector<16x128xf32>,
    %c0_5 = arith.constant 0 : index
    %c0_6 = arith.constant 0 : index
    %5 = vector.load %arg25[%c0_5, %c0_6] : memref<24x128xf32, #tpu.memory_space<vmem>>, vector<24x128xf32>
    %6 = arith.truncf %5 : vector<24x128xf32> to vector<24x128xbf16>
    %c0_7 = arith.constant 0 : index
    %c0_8 = arith.constant 0 : index
    %7 = vector.load %arg2[%c0_7, %c0_8] : memref<128x1152xbf16, #tpu.memory_space<vmem>>, vector<128x1152xbf16>
    %cst_9 = arith.constant dense<0.000000e+00> : vector<24x1152xf32>
    %8 = tpu.matmul %6, %7, %cst_9 {dimension_numbers = #tpu.dot_dimension_numbers<[1], [0], [0], [1], [0, 0, 1, 1], [], []>} : vector<24x128xbf16>, vector<128x1152xbf16>, vector<24x1152xf32> -> vector<24x1152xf32>
    %9 = vector.extract_strided_slice %8 {offsets = [0, 0], sizes = [16, 128], strides = [1, 1]} : vector<24x1152xf32> to vector<16x128xf32>
    %10 = vector.extract_strided_slice %8 {offsets = [1, 128], sizes = [16, 128], strides = [1, 1]} : vector<24x1152xf32> to vector<16x128xf32>
    %11 = arith.addf %9, %10 : vector<16x128xf32>
    %12 = vector.extract_strided_slice %8 {offsets = [2, 256], sizes = [16, 128], strides = [1, 1]} : vector<24x1152xf32> to vector<16x128xf32>
    %13 = arith.addf %11, %12 : vector<16x128xf32>
    %14 = vector.extract_strided_slice %8 {offsets = [3, 384], sizes = [16, 128], strides = [1, 1]} : vector<24x1152xf32> to vector<16x128xf32>
    %15 = arith.addf %13, %14 : vector<16x128xf32>
    %16 = vector.extract_strided_slice %8 {offsets = [4, 512], sizes = [16, 128], strides = [1, 1]} : vector<24x1152xf32> to vector<16x128xf32>
    %17 = arith.addf %15, %16 : vector<16x128xf32>
    %18 = vector.extract_strided_slice %8 {offsets = [5, 640], sizes = [16, 128], strides = [1, 1]} : vector<24x1152xf32> to vector<16x128xf32>
    %19 = arith.addf %17, %18 : vector<16x128xf32>
    %20 = vector.extract_strided_slice %8 {offsets = [6, 768], sizes = [16, 128], strides = [1, 1]} : vector<24x1152xf32> to vector<16x128xf32>
    %21 = arith.addf %19, %20 : vector<16x128xf32>
    %22 = vector.extract_strided_slice %8 {offsets = [7, 896], sizes = [16, 128], strides = [1, 1]} : vector<24x1152xf32> to vector<16x128xf32>
    %23 = arith.addf %21, %22 : vector<16x128xf32>
    %24 = vector.extract_strided_slice %8 {offsets = [8, 1024], sizes = [16, 128], strides = [1, 1]} : vector<24x1152xf32> to vector<16x128xf32>
    %25 = arith.addf %23, %24 : vector<16x128xf32>
    %c0_10 = arith.constant 0 : index
    %c0_11 = arith.constant 0 : index
    %26 = vector.load %arg3[%c0_10, %c0_11] : memref<2x128xf32, #tpu.memory_space<vmem>>, vector<2x128xf32>
    %27 = vector.extract_strided_slice %26 {offsets = [0, 0], sizes = [1, 128], strides = [1, 1]} : vector<2x128xf32> to vector<1x128xf32>
    %28 = vector.broadcast %27 : vector<1x128xf32> to vector<16x128xf32>
    %29 = arith.mulf %25, %28 : vector<16x128xf32>
    %30 = vector.extract_strided_slice %26 {offsets = [1, 0], sizes = [1, 128], strides = [1, 1]} : vector<2x128xf32> to vector<1x128xf32>
    %31 = vector.broadcast %30 : vector<1x128xf32> to vector<16x128xf32>
    %32 = arith.addf %29, %31 : vector<16x128xf32>
    %cst_12 = arith.constant 0.000000e+00 : f32
    %33 = vector.broadcast %cst_12 : f32 to vector<16x128xf32>
    %34 = arith.maximumf %32, %33 : vector<16x128xf32>
    %c4_13 = arith.constant 4 : index
    %c0_14 = arith.constant 0 : index
    %35 = vector.load %arg25[%c4_13, %c0_14] : memref<24x128xf32, #tpu.memory_space<vmem>>, vector<16x128xf32>
    tpu.vector_store %arg25[%c4_13, %c0_14], %34 {strides = array<i32>} : memref<24x128xf32, #tpu.memory_space<vmem>>, vector<16x128xf32>,
    %c0_15 = arith.constant 0 : index
    %c0_16 = arith.constant 0 : index
    %36 = vector.load %arg25[%c0_15, %c0_16] : memref<24x128xf32, #tpu.memory_space<vmem>>, vector<24x128xf32>
    %37 = arith.truncf %36 : vector<24x128xf32> to vector<24x128xbf16>
    %c0_17 = arith.constant 0 : index
    %c0_18 = arith.constant 0 : index
    %38 = vector.load %arg4[%c0_17, %c0_18] : memref<128x1152xbf16, #tpu.memory_space<vmem>>, vector<128x1152xbf16>
    %cst_19 = arith.constant dense<0.000000e+00> : vector<24x1152xf32>
    %39 = tpu.matmul %37, %38, %cst_19 {dimension_numbers = #tpu.dot_dimension_numbers<[1], [0], [0], [1], [0, 0, 1, 1], [], []>} : vector<24x128xbf16>, vector<128x1152xbf16>, vector<24x1152xf32> -> vector<24x1152xf32>
    %40 = vector.extract_strided_slice %39 {offsets = [0, 0], sizes = [16, 128], strides = [1, 1]} : vector<24x1152xf32> to vector<16x128xf32>
    %41 = vector.extract_strided_slice %39 {offsets = [1, 128], sizes = [16, 128], strides = [1, 1]} : vector<24x1152xf32> to vector<16x128xf32>
    %42 = arith.addf %40, %41 : vector<16x128xf32>
    %43 = vector.extract_strided_slice %39 {offsets = [2, 256], sizes = [16, 128], strides = [1, 1]} : vector<24x1152xf32> to vector<16x128xf32>
    %44 = arith.addf %42, %43 : vector<16x128xf32>
    %45 = vector.extract_strided_slice %39 {offsets = [3, 384], sizes = [16, 128], strides = [1, 1]} : vector<24x1152xf32> to vector<16x128xf32>
    %46 = arith.addf %44, %45 : vector<16x128xf32>
    %47 = vector.extract_strided_slice %39 {offsets = [4, 512], sizes = [16, 128], strides = [1, 1]} : vector<24x1152xf32> to vector<16x128xf32>
    %48 = arith.addf %46, %47 : vector<16x128xf32>
    %49 = vector.extract_strided_slice %39 {offsets = [5, 640], sizes = [16, 128], strides = [1, 1]} : vector<24x1152xf32> to vector<16x128xf32>
    %50 = arith.addf %48, %49 : vector<16x128xf32>
    %51 = vector.extract_strided_slice %39 {offsets = [6, 768], sizes = [16, 128], strides = [1, 1]} : vector<24x1152xf32> to vector<16x128xf32>
    %52 = arith.addf %50, %51 : vector<16x128xf32>
    %53 = vector.extract_strided_slice %39 {offsets = [7, 896], sizes = [16, 128], strides = [1, 1]} : vector<24x1152xf32> to vector<16x128xf32>
    %54 = arith.addf %52, %53 : vector<16x128xf32>
    %55 = vector.extract_strided_slice %39 {offsets = [8, 1024], sizes = [16, 128], strides = [1, 1]} : vector<24x1152xf32> to vector<16x128xf32>
    %56 = arith.addf %54, %55 : vector<16x128xf32>
    %c0_20 = arith.constant 0 : index
    %c0_21 = arith.constant 0 : index
    %57 = vector.load %arg5[%c0_20, %c0_21] : memref<2x128xf32, #tpu.memory_space<vmem>>, vector<2x128xf32>
    %58 = vector.extract_strided_slice %57 {offsets = [0, 0], sizes = [1, 128], strides = [1, 1]} : vector<2x128xf32> to vector<1x128xf32>
    %59 = vector.broadcast %58 : vector<1x128xf32> to vector<16x128xf32>
    %60 = arith.mulf %56, %59 : vector<16x128xf32>
    %61 = vector.extract_strided_slice %57 {offsets = [1, 0], sizes = [1, 128], strides = [1, 1]} : vector<2x128xf32> to vector<1x128xf32>
    %62 = vector.broadcast %61 : vector<1x128xf32> to vector<16x128xf32>
    %63 = arith.addf %60, %62 : vector<16x128xf32>
    %cst_22 = arith.constant 0.000000e+00 : f32
    %64 = vector.broadcast %cst_22 : f32 to vector<16x128xf32>
    %65 = arith.maximumf %63, %64 : vector<16x128xf32>
    %c4_23 = arith.constant 4 : index
    %c0_24 = arith.constant 0 : index
    %66 = vector.load %arg25[%c4_23, %c0_24] : memref<24x128xf32, #tpu.memory_space<vmem>>, vector<16x128xf32>
    tpu.vector_store %arg25[%c4_23, %c0_24], %65 {strides = array<i32>} : memref<24x128xf32, #tpu.memory_space<vmem>>, vector<16x128xf32>,
    %c0_25 = arith.constant 0 : index
    %c0_26 = arith.constant 0 : index
    %67 = vector.load %arg25[%c0_25, %c0_26] : memref<24x128xf32, #tpu.memory_space<vmem>>, vector<24x128xf32>
    %68 = arith.truncf %67 : vector<24x128xf32> to vector<24x128xbf16>
    %c0_27 = arith.constant 0 : index
    %c0_28 = arith.constant 0 : index
    %69 = vector.load %arg6[%c0_27, %c0_28] : memref<128x1152xbf16, #tpu.memory_space<vmem>>, vector<128x1152xbf16>
    %cst_29 = arith.constant dense<0.000000e+00> : vector<24x1152xf32>
    %70 = tpu.matmul %68, %69, %cst_29 {dimension_numbers = #tpu.dot_dimension_numbers<[1], [0], [0], [1], [0, 0, 1, 1], [], []>} : vector<24x128xbf16>, vector<128x1152xbf16>, vector<24x1152xf32> -> vector<24x1152xf32>
    %71 = vector.extract_strided_slice %70 {offsets = [0, 0], sizes = [16, 128], strides = [1, 1]} : vector<24x1152xf32> to vector<16x128xf32>
    %72 = vector.extract_strided_slice %70 {offsets = [1, 128], sizes = [16, 128], strides = [1, 1]} : vector<24x1152xf32> to vector<16x128xf32>
    %73 = arith.addf %71, %72 : vector<16x128xf32>
    %74 = vector.extract_strided_slice %70 {offsets = [2, 256], sizes = [16, 128], strides = [1, 1]} : vector<24x1152xf32> to vector<16x128xf32>
    %75 = arith.addf %73, %74 : vector<16x128xf32>
    %76 = vector.extract_strided_slice %70 {offsets = [3, 384], sizes = [16, 128], strides = [1, 1]} : vector<24x1152xf32> to vector<16x128xf32>
    %77 = arith.addf %75, %76 : vector<16x128xf32>
    %78 = vector.extract_strided_slice %70 {offsets = [4, 512], sizes = [16, 128], strides = [1, 1]} : vector<24x1152xf32> to vector<16x128xf32>
    %79 = arith.addf %77, %78 : vector<16x128xf32>
    %80 = vector.extract_strided_slice %70 {offsets = [5, 640], sizes = [16, 128], strides = [1, 1]} : vector<24x1152xf32> to vector<16x128xf32>
    %81 = arith.addf %79, %80 : vector<16x128xf32>
    %82 = vector.extract_strided_slice %70 {offsets = [6, 768], sizes = [16, 128], strides = [1, 1]} : vector<24x1152xf32> to vector<16x128xf32>
    %83 = arith.addf %81, %82 : vector<16x128xf32>
    %84 = vector.extract_strided_slice %70 {offsets = [7, 896], sizes = [16, 128], strides = [1, 1]} : vector<24x1152xf32> to vector<16x128xf32>
    %85 = arith.addf %83, %84 : vector<16x128xf32>
    %86 = vector.extract_strided_slice %70 {offsets = [8, 1024], sizes = [16, 128], strides = [1, 1]} : vector<24x1152xf32> to vector<16x128xf32>
    %87 = arith.addf %85, %86 : vector<16x128xf32>
    %c0_30 = arith.constant 0 : index
    %c0_31 = arith.constant 0 : index
    %88 = vector.load %arg7[%c0_30, %c0_31] : memref<2x128xf32, #tpu.memory_space<vmem>>, vector<2x128xf32>
    %89 = vector.extract_strided_slice %88 {offsets = [0, 0], sizes = [1, 128], strides = [1, 1]} : vector<2x128xf32> to vector<1x128xf32>
    %90 = vector.broadcast %89 : vector<1x128xf32> to vector<16x128xf32>
    %91 = arith.mulf %87, %90 : vector<16x128xf32>
    %92 = vector.extract_strided_slice %88 {offsets = [1, 0], sizes = [1, 128], strides = [1, 1]} : vector<2x128xf32> to vector<1x128xf32>
    %93 = vector.broadcast %92 : vector<1x128xf32> to vector<16x128xf32>
    %94 = arith.addf %91, %93 : vector<16x128xf32>
    %95 = arith.addf %94, %34 : vector<16x128xf32>
    %cst_32 = arith.constant 0.000000e+00 : f32
    %96 = vector.broadcast %cst_32 : f32 to vector<16x128xf32>
    %97 = arith.maximumf %95, %96 : vector<16x128xf32>
    %c4_33 = arith.constant 4 : index
    %c0_34 = arith.constant 0 : index
    %98 = vector.load %arg25[%c4_33, %c0_34] : memref<24x128xf32, #tpu.memory_space<vmem>>, vector<16x128xf32>
    tpu.vector_store %arg25[%c4_33, %c0_34], %97 {strides = array<i32>} : memref<24x128xf32, #tpu.memory_space<vmem>>, vector<16x128xf32>,
    %c0_35 = arith.constant 0 : index
    %c0_36 = arith.constant 0 : index
    %99 = vector.load %arg25[%c0_35, %c0_36] : memref<24x128xf32, #tpu.memory_space<vmem>>, vector<24x128xf32>
    %100 = arith.truncf %99 : vector<24x128xf32> to vector<24x128xbf16>
    %c0_37 = arith.constant 0 : index
    %c0_38 = arith.constant 0 : index
    %101 = vector.load %arg8[%c0_37, %c0_38] : memref<128x1152xbf16, #tpu.memory_space<vmem>>, vector<128x1152xbf16>
    %cst_39 = arith.constant dense<0.000000e+00> : vector<24x1152xf32>
    %102 = tpu.matmul %100, %101, %cst_39 {dimension_numbers = #tpu.dot_dimension_numbers<[1], [0], [0], [1], [0, 0, 1, 1], [], []>} : vector<24x128xbf16>, vector<128x1152xbf16>, vector<24x1152xf32> -> vector<24x1152xf32>
    %103 = vector.extract_strided_slice %102 {offsets = [0, 0], sizes = [16, 128], strides = [1, 1]} : vector<24x1152xf32> to vector<16x128xf32>
    %104 = vector.extract_strided_slice %102 {offsets = [1, 128], sizes = [16, 128], strides = [1, 1]} : vector<24x1152xf32> to vector<16x128xf32>
    %105 = arith.addf %103, %104 : vector<16x128xf32>
    %106 = vector.extract_strided_slice %102 {offsets = [2, 256], sizes = [16, 128], strides = [1, 1]} : vector<24x1152xf32> to vector<16x128xf32>
    %107 = arith.addf %105, %106 : vector<16x128xf32>
    %108 = vector.extract_strided_slice %102 {offsets = [3, 384], sizes = [16, 128], strides = [1, 1]} : vector<24x1152xf32> to vector<16x128xf32>
    %109 = arith.addf %107, %108 : vector<16x128xf32>
    %110 = vector.extract_strided_slice %102 {offsets = [4, 512], sizes = [16, 128], strides = [1, 1]} : vector<24x1152xf32> to vector<16x128xf32>
    %111 = arith.addf %109, %110 : vector<16x128xf32>
    %112 = vector.extract_strided_slice %102 {offsets = [5, 640], sizes = [16, 128], strides = [1, 1]} : vector<24x1152xf32> to vector<16x128xf32>
    %113 = arith.addf %111, %112 : vector<16x128xf32>
    %114 = vector.extract_strided_slice %102 {offsets = [6, 768], sizes = [16, 128], strides = [1, 1]} : vector<24x1152xf32> to vector<16x128xf32>
    %115 = arith.addf %113, %114 : vector<16x128xf32>
    %116 = vector.extract_strided_slice %102 {offsets = [7, 896], sizes = [16, 128], strides = [1, 1]} : vector<24x1152xf32> to vector<16x128xf32>
    %117 = arith.addf %115, %116 : vector<16x128xf32>
    %118 = vector.extract_strided_slice %102 {offsets = [8, 1024], sizes = [16, 128], strides = [1, 1]} : vector<24x1152xf32> to vector<16x128xf32>
    %119 = arith.addf %117, %118 : vector<16x128xf32>
    %c0_40 = arith.constant 0 : index
    %c0_41 = arith.constant 0 : index
    %120 = vector.load %arg9[%c0_40, %c0_41] : memref<2x128xf32, #tpu.memory_space<vmem>>, vector<2x128xf32>
    %121 = vector.extract_strided_slice %120 {offsets = [0, 0], sizes = [1, 128], strides = [1, 1]} : vector<2x128xf32> to vector<1x128xf32>
    %122 = vector.broadcast %121 : vector<1x128xf32> to vector<16x128xf32>
    %123 = arith.mulf %119, %122 : vector<16x128xf32>
    %124 = vector.extract_strided_slice %120 {offsets = [1, 0], sizes = [1, 128], strides = [1, 1]} : vector<2x128xf32> to vector<1x128xf32>
    %125 = vector.broadcast %124 : vector<1x128xf32> to vector<16x128xf32>
    %126 = arith.addf %123, %125 : vector<16x128xf32>
    %cst_42 = arith.constant 0.000000e+00 : f32
    %127 = vector.broadcast %cst_42 : f32 to vector<16x128xf32>
    %128 = arith.maximumf %126, %127 : vector<16x128xf32>
    %c4_43 = arith.constant 4 : index
    %c0_44 = arith.constant 0 : index
    %129 = vector.load %arg25[%c4_43, %c0_44] : memref<24x128xf32, #tpu.memory_space<vmem>>, vector<16x128xf32>
    tpu.vector_store %arg25[%c4_43, %c0_44], %128 {strides = array<i32>} : memref<24x128xf32, #tpu.memory_space<vmem>>, vector<16x128xf32>,
    %c0_45 = arith.constant 0 : index
    %c0_46 = arith.constant 0 : index
    %130 = vector.load %arg25[%c0_45, %c0_46] : memref<24x128xf32, #tpu.memory_space<vmem>>, vector<24x128xf32>
    %131 = arith.truncf %130 : vector<24x128xf32> to vector<24x128xbf16>
    %c0_47 = arith.constant 0 : index
    %c0_48 = arith.constant 0 : index
    %132 = vector.load %arg10[%c0_47, %c0_48] : memref<128x1152xbf16, #tpu.memory_space<vmem>>, vector<128x1152xbf16>
    %cst_49 = arith.constant dense<0.000000e+00> : vector<24x1152xf32>
    %133 = tpu.matmul %131, %132, %cst_49 {dimension_numbers = #tpu.dot_dimension_numbers<[1], [0], [0], [1], [0, 0, 1, 1], [], []>} : vector<24x128xbf16>, vector<128x1152xbf16>, vector<24x1152xf32> -> vector<24x1152xf32>
    %134 = vector.extract_strided_slice %133 {offsets = [0, 0], sizes = [16, 128], strides = [1, 1]} : vector<24x1152xf32> to vector<16x128xf32>
    %135 = vector.extract_strided_slice %133 {offsets = [1, 128], sizes = [16, 128], strides = [1, 1]} : vector<24x1152xf32> to vector<16x128xf32>
    %136 = arith.addf %134, %135 : vector<16x128xf32>
    %137 = vector.extract_strided_slice %133 {offsets = [2, 256], sizes = [16, 128], strides = [1, 1]} : vector<24x1152xf32> to vector<16x128xf32>
    %138 = arith.addf %136, %137 : vector<16x128xf32>
    %139 = vector.extract_strided_slice %133 {offsets = [3, 384], sizes = [16, 128], strides = [1, 1]} : vector<24x1152xf32> to vector<16x128xf32>
    %140 = arith.addf %138, %139 : vector<16x128xf32>
    %141 = vector.extract_strided_slice %133 {offsets = [4, 512], sizes = [16, 128], strides = [1, 1]} : vector<24x1152xf32> to vector<16x128xf32>
    %142 = arith.addf %140, %141 : vector<16x128xf32>
    %143 = vector.extract_strided_slice %133 {offsets = [5, 640], sizes = [16, 128], strides = [1, 1]} : vector<24x1152xf32> to vector<16x128xf32>
    %144 = arith.addf %142, %143 : vector<16x128xf32>
    %145 = vector.extract_strided_slice %133 {offsets = [6, 768], sizes = [16, 128], strides = [1, 1]} : vector<24x1152xf32> to vector<16x128xf32>
    %146 = arith.addf %144, %145 : vector<16x128xf32>
    %147 = vector.extract_strided_slice %133 {offsets = [7, 896], sizes = [16, 128], strides = [1, 1]} : vector<24x1152xf32> to vector<16x128xf32>
    %148 = arith.addf %146, %147 : vector<16x128xf32>
    %149 = vector.extract_strided_slice %133 {offsets = [8, 1024], sizes = [16, 128], strides = [1, 1]} : vector<24x1152xf32> to vector<16x128xf32>
    %150 = arith.addf %148, %149 : vector<16x128xf32>
    %c0_50 = arith.constant 0 : index
    %c0_51 = arith.constant 0 : index
    %151 = vector.load %arg11[%c0_50, %c0_51] : memref<2x128xf32, #tpu.memory_space<vmem>>, vector<2x128xf32>
    %152 = vector.extract_strided_slice %151 {offsets = [0, 0], sizes = [1, 128], strides = [1, 1]} : vector<2x128xf32> to vector<1x128xf32>
    %153 = vector.broadcast %152 : vector<1x128xf32> to vector<16x128xf32>
    %154 = arith.mulf %150, %153 : vector<16x128xf32>
    %155 = vector.extract_strided_slice %151 {offsets = [1, 0], sizes = [1, 128], strides = [1, 1]} : vector<2x128xf32> to vector<1x128xf32>
    %156 = vector.broadcast %155 : vector<1x128xf32> to vector<16x128xf32>
    %157 = arith.addf %154, %156 : vector<16x128xf32>
    %158 = arith.addf %157, %97 : vector<16x128xf32>
    %cst_52 = arith.constant 0.000000e+00 : f32
    %159 = vector.broadcast %cst_52 : f32 to vector<16x128xf32>
    %160 = arith.maximumf %158, %159 : vector<16x128xf32>
    %161 = arith.truncf %160 : vector<16x128xf32> to vector<16x128xbf16>
    %c0_53 = arith.constant 0 : index
    %c0_54 = arith.constant 0 : index
    %162 = vector.load %arg12[%c0_53, %c0_54] : memref<128x128xbf16, #tpu.memory_space<vmem>>, vector<128x128xbf16>
    %cst_55 = arith.constant dense<0.000000e+00> : vector<16x128xf32>
    %163 = tpu.matmul %161, %162, %cst_55 {dimension_numbers = #tpu.dot_dimension_numbers<[1], [0], [0], [1], [0, 0, 1, 1], [], []>} : vector<16x128xbf16>, vector<128x128xbf16>, vector<16x128xf32> -> vector<16x128xf32>
    %c0_56 = arith.constant 0 : index
    %c0_57 = arith.constant 0 : index
    %164 = vector.load %arg13[%c0_56, %c0_57] : memref<2x128xf32, #tpu.memory_space<vmem>>, vector<2x128xf32>
    %165 = vector.extract_strided_slice %164 {offsets = [0, 0], sizes = [1, 128], strides = [1, 1]} : vector<2x128xf32> to vector<1x128xf32>
    %166 = vector.broadcast %165 : vector<1x128xf32> to vector<16x128xf32>
    %167 = arith.mulf %163, %166 : vector<16x128xf32>
    %168 = vector.extract_strided_slice %164 {offsets = [1, 0], sizes = [1, 128], strides = [1, 1]} : vector<2x128xf32> to vector<1x128xf32>
    %169 = vector.broadcast %168 : vector<1x128xf32> to vector<16x128xf32>
    %170 = arith.addf %167, %169 : vector<16x128xf32>
    %c4_58 = arith.constant 4 : index
    %c0_59 = arith.constant 0 : index
    %171 = vector.load %arg25[%c4_58, %c0_59] : memref<24x128xf32, #tpu.memory_space<vmem>>, vector<16x128xf32>
    tpu.vector_store %arg25[%c4_58, %c0_59], %160 {strides = array<i32>} : memref<24x128xf32, #tpu.memory_space<vmem>>, vector<16x128xf32>,
    %c0_60 = arith.constant 0 : index
    %c0_61 = arith.constant 0 : index
    %172 = vector.load %arg25[%c0_60, %c0_61] : memref<24x128xf32, #tpu.memory_space<vmem>>, vector<24x128xf32>
    %173 = arith.truncf %172 : vector<24x128xf32> to vector<24x128xbf16>
    %c0_62 = arith.constant 0 : index
    %c0_63 = arith.constant 0 : index
    %174 = vector.load %arg14[%c0_62, %c0_63] : memref<128x1152xbf16, #tpu.memory_space<vmem>>, vector<128x1152xbf16>
    %cst_64 = arith.constant dense<0.000000e+00> : vector<24x1152xf32>
    %175 = tpu.matmul %173, %174, %cst_64 {dimension_numbers = #tpu.dot_dimension_numbers<[1], [0], [0], [1], [0, 0, 1, 1], [], []>} : vector<24x128xbf16>, vector<128x1152xbf16>, vector<24x1152xf32> -> vector<24x1152xf32>
    %176 = vector.extract_strided_slice %175 {offsets = [0, 0], sizes = [16, 128], strides = [1, 1]} : vector<24x1152xf32> to vector<16x128xf32>
    %177 = vector.extract_strided_slice %175 {offsets = [1, 128], sizes = [16, 128], strides = [1, 1]} : vector<24x1152xf32> to vector<16x128xf32>
    %178 = arith.addf %176, %177 : vector<16x128xf32>
    %179 = vector.extract_strided_slice %175 {offsets = [2, 256], sizes = [16, 128], strides = [1, 1]} : vector<24x1152xf32> to vector<16x128xf32>
    %180 = arith.addf %178, %179 : vector<16x128xf32>
    %181 = vector.extract_strided_slice %175 {offsets = [3, 384], sizes = [16, 128], strides = [1, 1]} : vector<24x1152xf32> to vector<16x128xf32>
    %182 = arith.addf %180, %181 : vector<16x128xf32>
    %183 = vector.extract_strided_slice %175 {offsets = [4, 512], sizes = [16, 128], strides = [1, 1]} : vector<24x1152xf32> to vector<16x128xf32>
    %184 = arith.addf %182, %183 : vector<16x128xf32>
    %185 = vector.extract_strided_slice %175 {offsets = [5, 640], sizes = [16, 128], strides = [1, 1]} : vector<24x1152xf32> to vector<16x128xf32>
    %186 = arith.addf %184, %185 : vector<16x128xf32>
    %187 = vector.extract_strided_slice %175 {offsets = [6, 768], sizes = [16, 128], strides = [1, 1]} : vector<24x1152xf32> to vector<16x128xf32>
    %188 = arith.addf %186, %187 : vector<16x128xf32>
    %189 = vector.extract_strided_slice %175 {offsets = [7, 896], sizes = [16, 128], strides = [1, 1]} : vector<24x1152xf32> to vector<16x128xf32>
    %190 = arith.addf %188, %189 : vector<16x128xf32>
    %191 = vector.extract_strided_slice %175 {offsets = [8, 1024], sizes = [16, 128], strides = [1, 1]} : vector<24x1152xf32> to vector<16x128xf32>
    %192 = arith.addf %190, %191 : vector<16x128xf32>
    %c0_65 = arith.constant 0 : index
    %c0_66 = arith.constant 0 : index
    %193 = vector.load %arg15[%c0_65, %c0_66] : memref<2x128xf32, #tpu.memory_space<vmem>>, vector<2x128xf32>
    %194 = vector.extract_strided_slice %193 {offsets = [0, 0], sizes = [1, 128], strides = [1, 1]} : vector<2x128xf32> to vector<1x128xf32>
    %195 = vector.broadcast %194 : vector<1x128xf32> to vector<16x128xf32>
    %196 = arith.mulf %192, %195 : vector<16x128xf32>
    %197 = vector.extract_strided_slice %193 {offsets = [1, 0], sizes = [1, 128], strides = [1, 1]} : vector<2x128xf32> to vector<1x128xf32>
    %198 = vector.broadcast %197 : vector<1x128xf32> to vector<16x128xf32>
    %199 = arith.addf %196, %198 : vector<16x128xf32>
    %cst_67 = arith.constant 0.000000e+00 : f32
    %200 = vector.broadcast %cst_67 : f32 to vector<16x128xf32>
    %201 = arith.maximumf %199, %200 : vector<16x128xf32>
    %c4_68 = arith.constant 4 : index
    %c0_69 = arith.constant 0 : index
    %202 = vector.load %arg25[%c4_68, %c0_69] : memref<24x128xf32, #tpu.memory_space<vmem>>, vector<16x128xf32>
    tpu.vector_store %arg25[%c4_68, %c0_69], %201 {strides = array<i32>} : memref<24x128xf32, #tpu.memory_space<vmem>>, vector<16x128xf32>,
    %c0_70 = arith.constant 0 : index
    %c0_71 = arith.constant 0 : index
    %203 = vector.load %arg25[%c0_70, %c0_71] : memref<24x128xf32, #tpu.memory_space<vmem>>, vector<24x128xf32>
    %204 = arith.truncf %203 : vector<24x128xf32> to vector<24x128xbf16>
    %c0_72 = arith.constant 0 : index
    %c0_73 = arith.constant 0 : index
    %205 = vector.load %arg16[%c0_72, %c0_73] : memref<128x1152xbf16, #tpu.memory_space<vmem>>, vector<128x1152xbf16>
    %cst_74 = arith.constant dense<0.000000e+00> : vector<24x1152xf32>
    %206 = tpu.matmul %204, %205, %cst_74 {dimension_numbers = #tpu.dot_dimension_numbers<[1], [0], [0], [1], [0, 0, 1, 1], [], []>} : vector<24x128xbf16>, vector<128x1152xbf16>, vector<24x1152xf32> -> vector<24x1152xf32>
    %207 = vector.extract_strided_slice %206 {offsets = [0, 0], sizes = [16, 128], strides = [1, 1]} : vector<24x1152xf32> to vector<16x128xf32>
    %208 = vector.extract_strided_slice %206 {offsets = [1, 128], sizes = [16, 128], strides = [1, 1]} : vector<24x1152xf32> to vector<16x128xf32>
    %209 = arith.addf %207, %208 : vector<16x128xf32>
    %210 = vector.extract_strided_slice %206 {offsets = [2, 256], sizes = [16, 128], strides = [1, 1]} : vector<24x1152xf32> to vector<16x128xf32>
    %211 = arith.addf %209, %210 : vector<16x128xf32>
    %212 = vector.extract_strided_slice %206 {offsets = [3, 384], sizes = [16, 128], strides = [1, 1]} : vector<24x1152xf32> to vector<16x128xf32>
    %213 = arith.addf %211, %212 : vector<16x128xf32>
    %214 = vector.extract_strided_slice %206 {offsets = [4, 512], sizes = [16, 128], strides = [1, 1]} : vector<24x1152xf32> to vector<16x128xf32>
    %215 = arith.addf %213, %214 : vector<16x128xf32>
    %216 = vector.extract_strided_slice %206 {offsets = [5, 640], sizes = [16, 128], strides = [1, 1]} : vector<24x1152xf32> to vector<16x128xf32>
    %217 = arith.addf %215, %216 : vector<16x128xf32>
    %218 = vector.extract_strided_slice %206 {offsets = [6, 768], sizes = [16, 128], strides = [1, 1]} : vector<24x1152xf32> to vector<16x128xf32>
    %219 = arith.addf %217, %218 : vector<16x128xf32>
    %220 = vector.extract_strided_slice %206 {offsets = [7, 896], sizes = [16, 128], strides = [1, 1]} : vector<24x1152xf32> to vector<16x128xf32>
    %221 = arith.addf %219, %220 : vector<16x128xf32>
    %222 = vector.extract_strided_slice %206 {offsets = [8, 1024], sizes = [16, 128], strides = [1, 1]} : vector<24x1152xf32> to vector<16x128xf32>
    %223 = arith.addf %221, %222 : vector<16x128xf32>
    %c0_75 = arith.constant 0 : index
    %c0_76 = arith.constant 0 : index
    %224 = vector.load %arg17[%c0_75, %c0_76] : memref<2x128xf32, #tpu.memory_space<vmem>>, vector<2x128xf32>
    %225 = vector.extract_strided_slice %224 {offsets = [0, 0], sizes = [1, 128], strides = [1, 1]} : vector<2x128xf32> to vector<1x128xf32>
    %226 = vector.broadcast %225 : vector<1x128xf32> to vector<16x128xf32>
    %227 = arith.mulf %223, %226 : vector<16x128xf32>
    %228 = vector.extract_strided_slice %224 {offsets = [1, 0], sizes = [1, 128], strides = [1, 1]} : vector<2x128xf32> to vector<1x128xf32>
    %229 = vector.broadcast %228 : vector<1x128xf32> to vector<16x128xf32>
    %230 = arith.addf %227, %229 : vector<16x128xf32>
    %231 = arith.addf %230, %170 : vector<16x128xf32>
    %cst_77 = arith.constant 0.000000e+00 : f32
    %232 = vector.broadcast %cst_77 : f32 to vector<16x128xf32>
    %233 = arith.maximumf %231, %232 : vector<16x128xf32>
    %c4_78 = arith.constant 4 : index
    %c0_79 = arith.constant 0 : index
    %234 = vector.load %arg25[%c4_78, %c0_79] : memref<24x128xf32, #tpu.memory_space<vmem>>, vector<16x128xf32>
    tpu.vector_store %arg25[%c4_78, %c0_79], %233 {strides = array<i32>} : memref<24x128xf32, #tpu.memory_space<vmem>>, vector<16x128xf32>,
    %c0_80 = arith.constant 0 : index
    %c0_81 = arith.constant 0 : index
    %235 = vector.load %arg25[%c0_80, %c0_81] : memref<24x128xf32, #tpu.memory_space<vmem>>, vector<24x128xf32>
    %236 = arith.truncf %235 : vector<24x128xf32> to vector<24x128xbf16>
    %c0_82 = arith.constant 0 : index
    %c0_83 = arith.constant 0 : index
    %237 = vector.load %arg18[%c0_82, %c0_83] : memref<128x1152xbf16, #tpu.memory_space<vmem>>, vector<128x1152xbf16>
    %cst_84 = arith.constant dense<0.000000e+00> : vector<24x1152xf32>
    %238 = tpu.matmul %236, %237, %cst_84 {dimension_numbers = #tpu.dot_dimension_numbers<[1], [0], [0], [1], [0, 0, 1, 1], [], []>} : vector<24x128xbf16>, vector<128x1152xbf16>, vector<24x1152xf32> -> vector<24x1152xf32>
    %239 = vector.extract_strided_slice %238 {offsets = [0, 0], sizes = [16, 128], strides = [1, 1]} : vector<24x1152xf32> to vector<16x128xf32>
    %240 = vector.extract_strided_slice %238 {offsets = [1, 128], sizes = [16, 128], strides = [1, 1]} : vector<24x1152xf32> to vector<16x128xf32>
    %241 = arith.addf %239, %240 : vector<16x128xf32>
    %242 = vector.extract_strided_slice %238 {offsets = [2, 256], sizes = [16, 128], strides = [1, 1]} : vector<24x1152xf32> to vector<16x128xf32>
    %243 = arith.addf %241, %242 : vector<16x128xf32>
    %244 = vector.extract_strided_slice %238 {offsets = [3, 384], sizes = [16, 128], strides = [1, 1]} : vector<24x1152xf32> to vector<16x128xf32>
    %245 = arith.addf %243, %244 : vector<16x128xf32>
    %246 = vector.extract_strided_slice %238 {offsets = [4, 512], sizes = [16, 128], strides = [1, 1]} : vector<24x1152xf32> to vector<16x128xf32>
    %247 = arith.addf %245, %246 : vector<16x128xf32>
    %248 = vector.extract_strided_slice %238 {offsets = [5, 640], sizes = [16, 128], strides = [1, 1]} : vector<24x1152xf32> to vector<16x128xf32>
    %249 = arith.addf %247, %248 : vector<16x128xf32>
    %250 = vector.extract_strided_slice %238 {offsets = [6, 768], sizes = [16, 128], strides = [1, 1]} : vector<24x1152xf32> to vector<16x128xf32>
    %251 = arith.addf %249, %250 : vector<16x128xf32>
    %252 = vector.extract_strided_slice %238 {offsets = [7, 896], sizes = [16, 128], strides = [1, 1]} : vector<24x1152xf32> to vector<16x128xf32>
    %253 = arith.addf %251, %252 : vector<16x128xf32>
    %254 = vector.extract_strided_slice %238 {offsets = [8, 1024], sizes = [16, 128], strides = [1, 1]} : vector<24x1152xf32> to vector<16x128xf32>
    %255 = arith.addf %253, %254 : vector<16x128xf32>
    %c0_85 = arith.constant 0 : index
    %c0_86 = arith.constant 0 : index
    %256 = vector.load %arg19[%c0_85, %c0_86] : memref<2x128xf32, #tpu.memory_space<vmem>>, vector<2x128xf32>
    %257 = vector.extract_strided_slice %256 {offsets = [0, 0], sizes = [1, 128], strides = [1, 1]} : vector<2x128xf32> to vector<1x128xf32>
    %258 = vector.broadcast %257 : vector<1x128xf32> to vector<16x128xf32>
    %259 = arith.mulf %255, %258 : vector<16x128xf32>
    %260 = vector.extract_strided_slice %256 {offsets = [1, 0], sizes = [1, 128], strides = [1, 1]} : vector<2x128xf32> to vector<1x128xf32>
    %261 = vector.broadcast %260 : vector<1x128xf32> to vector<16x128xf32>
    %262 = arith.addf %259, %261 : vector<16x128xf32>
    %cst_87 = arith.constant 0.000000e+00 : f32
    %263 = vector.broadcast %cst_87 : f32 to vector<16x128xf32>
    %264 = arith.maximumf %262, %263 : vector<16x128xf32>
    %c4_88 = arith.constant 4 : index
    %c0_89 = arith.constant 0 : index
    %265 = vector.load %arg25[%c4_88, %c0_89] : memref<24x128xf32, #tpu.memory_space<vmem>>, vector<16x128xf32>
    tpu.vector_store %arg25[%c4_88, %c0_89], %264 {strides = array<i32>} : memref<24x128xf32, #tpu.memory_space<vmem>>, vector<16x128xf32>,
    %c0_90 = arith.constant 0 : index
    %c0_91 = arith.constant 0 : index
    %266 = vector.load %arg25[%c0_90, %c0_91] : memref<24x128xf32, #tpu.memory_space<vmem>>, vector<24x128xf32>
    %267 = arith.truncf %266 : vector<24x128xf32> to vector<24x128xbf16>
    %c0_92 = arith.constant 0 : index
    %c0_93 = arith.constant 0 : index
    %268 = vector.load %arg20[%c0_92, %c0_93] : memref<128x1152xbf16, #tpu.memory_space<vmem>>, vector<128x1152xbf16>
    %cst_94 = arith.constant dense<0.000000e+00> : vector<24x1152xf32>
    %269 = tpu.matmul %267, %268, %cst_94 {dimension_numbers = #tpu.dot_dimension_numbers<[1], [0], [0], [1], [0, 0, 1, 1], [], []>} : vector<24x128xbf16>, vector<128x1152xbf16>, vector<24x1152xf32> -> vector<24x1152xf32>
    %270 = vector.extract_strided_slice %269 {offsets = [0, 0], sizes = [16, 128], strides = [1, 1]} : vector<24x1152xf32> to vector<16x128xf32>
    %271 = vector.extract_strided_slice %269 {offsets = [1, 128], sizes = [16, 128], strides = [1, 1]} : vector<24x1152xf32> to vector<16x128xf32>
    %272 = arith.addf %270, %271 : vector<16x128xf32>
    %273 = vector.extract_strided_slice %269 {offsets = [2, 256], sizes = [16, 128], strides = [1, 1]} : vector<24x1152xf32> to vector<16x128xf32>
    %274 = arith.addf %272, %273 : vector<16x128xf32>
    %275 = vector.extract_strided_slice %269 {offsets = [3, 384], sizes = [16, 128], strides = [1, 1]} : vector<24x1152xf32> to vector<16x128xf32>
    %276 = arith.addf %274, %275 : vector<16x128xf32>
    %277 = vector.extract_strided_slice %269 {offsets = [4, 512], sizes = [16, 128], strides = [1, 1]} : vector<24x1152xf32> to vector<16x128xf32>
    %278 = arith.addf %276, %277 : vector<16x128xf32>
    %279 = vector.extract_strided_slice %269 {offsets = [5, 640], sizes = [16, 128], strides = [1, 1]} : vector<24x1152xf32> to vector<16x128xf32>
    %280 = arith.addf %278, %279 : vector<16x128xf32>
    %281 = vector.extract_strided_slice %269 {offsets = [6, 768], sizes = [16, 128], strides = [1, 1]} : vector<24x1152xf32> to vector<16x128xf32>
    %282 = arith.addf %280, %281 : vector<16x128xf32>
    %283 = vector.extract_strided_slice %269 {offsets = [7, 896], sizes = [16, 128], strides = [1, 1]} : vector<24x1152xf32> to vector<16x128xf32>
    %284 = arith.addf %282, %283 : vector<16x128xf32>
    %285 = vector.extract_strided_slice %269 {offsets = [8, 1024], sizes = [16, 128], strides = [1, 1]} : vector<24x1152xf32> to vector<16x128xf32>
    %286 = arith.addf %284, %285 : vector<16x128xf32>
    %c0_95 = arith.constant 0 : index
    %c0_96 = arith.constant 0 : index
    %287 = vector.load %arg21[%c0_95, %c0_96] : memref<2x128xf32, #tpu.memory_space<vmem>>, vector<2x128xf32>
    %288 = vector.extract_strided_slice %287 {offsets = [0, 0], sizes = [1, 128], strides = [1, 1]} : vector<2x128xf32> to vector<1x128xf32>
    %289 = vector.broadcast %288 : vector<1x128xf32> to vector<16x128xf32>
    %290 = arith.mulf %286, %289 : vector<16x128xf32>
    %291 = vector.extract_strided_slice %287 {offsets = [1, 0], sizes = [1, 128], strides = [1, 1]} : vector<2x128xf32> to vector<1x128xf32>
    %292 = vector.broadcast %291 : vector<1x128xf32> to vector<16x128xf32>
    %293 = arith.addf %290, %292 : vector<16x128xf32>
    %294 = arith.addf %293, %233 : vector<16x128xf32>
    %cst_97 = arith.constant 0.000000e+00 : f32
    %295 = vector.broadcast %cst_97 : f32 to vector<16x128xf32>
    %296 = arith.maximumf %294, %295 : vector<16x128xf32>
    %297 = arith.truncf %296 : vector<16x128xf32> to vector<16x128xbf16>
    %c0_98 = arith.constant 0 : index
    %c0_99 = arith.constant 0 : index
    %298 = vector.load %arg22[%c0_98, %c0_99] : memref<128x128xbf16, #tpu.memory_space<vmem>>, vector<128x128xbf16>
    %cst_100 = arith.constant dense<0.000000e+00> : vector<16x128xf32>
    %299 = tpu.matmul %297, %298, %cst_100 {dimension_numbers = #tpu.dot_dimension_numbers<[1], [0], [0], [1], [0, 0, 1, 1], [], []>} : vector<16x128xbf16>, vector<128x128xbf16>, vector<16x128xf32> -> vector<16x128xf32>
    %c0_101 = arith.constant 0 : index
    %c0_102 = arith.constant 0 : index
    %300 = vector.load %arg23[%c0_101, %c0_102] : memref<2x128xf32, #tpu.memory_space<vmem>>, vector<2x128xf32>
    %301 = vector.extract_strided_slice %300 {offsets = [0, 0], sizes = [1, 128], strides = [1, 1]} : vector<2x128xf32> to vector<1x128xf32>
    %302 = vector.broadcast %301 : vector<1x128xf32> to vector<16x128xf32>
    %303 = arith.mulf %299, %302 : vector<16x128xf32>
    %304 = vector.extract_strided_slice %300 {offsets = [1, 0], sizes = [1, 128], strides = [1, 1]} : vector<2x128xf32> to vector<1x128xf32>
    %305 = vector.broadcast %304 : vector<1x128xf32> to vector<16x128xf32>
    %306 = arith.addf %303, %305 : vector<16x128xf32>
    %c0_103 = arith.constant 0 : index
    %c0_104 = arith.constant 0 : index
    %c0_105 = arith.constant 0 : index
    %307 = vector.load %arg24[%c0_103, %c0_104, %c0_105] : memref<1x16x128xf32, #tpu.memory_space<vmem>>, vector<1x16x128xf32>
    %308 = vector.shape_cast %307 : vector<1x16x128xf32> to vector<16x128xf32>
    %309 = vector.shape_cast %306 : vector<16x128xf32> to vector<1x16x128xf32>
    tpu.vector_store %arg24[%c0_103, %c0_104, %c0_105], %309 {strides = array<i32>} : memref<1x16x128xf32, #tpu.memory_space<vmem>>, vector<1x16x128xf32>,
    return
  }
  func.func @transform_0(%arg0: i32) -> (i32, i32, i32) {
    %c0_i32 = arith.constant 0 : i32
    %c0_i32_0 = arith.constant 0 : i32
    %c0_i32_1 = arith.constant 0 : i32
    return %arg0, %c0_i32, %c0_i32_0 : i32, i32, i32
  }
  func.func @transform_1(%arg0: i32) -> (i32, i32) {
    %c0_i32 = arith.constant 0 : i32
    %c0_i32_0 = arith.constant 0 : i32
    %c0_i32_1 = arith.constant 0 : i32
    return %c0_i32, %c0_i32_0 : i32, i32
  }
  func.func @transform_2(%arg0: i32) -> (i32, i32) {
    %c0_i32 = arith.constant 0 : i32
    %c0_i32_0 = arith.constant 0 : i32
    %c0_i32_1 = arith.constant 0 : i32
    return %c0_i32, %c0_i32_0 : i32, i32
  }
  func.func @transform_3(%arg0: i32) -> (i32, i32) {
    %c0_i32 = arith.constant 0 : i32
    %c0_i32_0 = arith.constant 0 : i32
    %c0_i32_1 = arith.constant 0 : i32
    return %c0_i32, %c0_i32_0 : i32, i32
  }
  func.func @transform_4(%arg0: i32) -> (i32, i32) {
    %c0_i32 = arith.constant 0 : i32
    %c0_i32_0 = arith.constant 0 : i32
    %c0_i32_1 = arith.constant 0 : i32
    return %c0_i32, %c0_i32_0 : i32, i32
  }
  func.func @transform_5(%arg0: i32) -> (i32, i32) {
    %c0_i32 = arith.constant 0 : i32
    %c0_i32_0 = arith.constant 0 : i32
    %c0_i32_1 = arith.constant 0 : i32
    return %c0_i32, %c0_i32_0 : i32, i32
  }
  func.func @transform_6(%arg0: i32) -> (i32, i32) {
    %c0_i32 = arith.constant 0 : i32
    %c0_i32_0 = arith.constant 0 : i32
    %c0_i32_1 = arith.constant 0 : i32
    return %c0_i32, %c0_i32_0 : i32, i32
  }
  func.func @transform_7(%arg0: i32) -> (i32, i32) {
    %c0_i32 = arith.constant 0 : i32
    %c0_i32_0 = arith.constant 0 : i32
    %c0_i32_1 = arith.constant 0 : i32
    return %c0_i32, %c0_i32_0 : i32, i32
  }
  func.func @transform_8(%arg0: i32) -> (i32, i32) {
    %c0_i32 = arith.constant 0 : i32
    %c0_i32_0 = arith.constant 0 : i32
    %c0_i32_1 = arith.constant 0 : i32
    return %c0_i32, %c0_i32_0 : i32, i32
  }
  func.func @transform_9(%arg0: i32) -> (i32, i32) {
    %c0_i32 = arith.constant 0 : i32
    %c0_i32_0 = arith.constant 0 : i32
    %c0_i32_1 = arith.constant 0 : i32
    return %c0_i32, %c0_i32_0 : i32, i32
  }
  func.func @transform_10(%arg0: i32) -> (i32, i32) {
    %c0_i32 = arith.constant 0 : i32
    %c0_i32_0 = arith.constant 0 : i32
    %c0_i32_1 = arith.constant 0 : i32
    return %c0_i32, %c0_i32_0 : i32, i32
  }
  func.func @transform_11(%arg0: i32) -> (i32, i32) {
    %c0_i32 = arith.constant 0 : i32
    %c0_i32_0 = arith.constant 0 : i32
    %c0_i32_1 = arith.constant 0 : i32
    return %c0_i32, %c0_i32_0 : i32, i32
  }
  func.func @transform_12(%arg0: i32) -> (i32, i32) {
    %c0_i32 = arith.constant 0 : i32
    %c0_i32_0 = arith.constant 0 : i32
    %c0_i32_1 = arith.constant 0 : i32
    return %c0_i32, %c0_i32_0 : i32, i32
  }
  func.func @transform_13(%arg0: i32) -> (i32, i32) {
    %c0_i32 = arith.constant 0 : i32
    %c0_i32_0 = arith.constant 0 : i32
    %c0_i32_1 = arith.constant 0 : i32
    return %c0_i32, %c0_i32_0 : i32, i32
  }
  func.func @transform_14(%arg0: i32) -> (i32, i32) {
    %c0_i32 = arith.constant 0 : i32
    %c0_i32_0 = arith.constant 0 : i32
    %c0_i32_1 = arith.constant 0 : i32
    return %c0_i32, %c0_i32_0 : i32, i32
  }
  func.func @transform_15(%arg0: i32) -> (i32, i32) {
    %c0_i32 = arith.constant 0 : i32
    %c0_i32_0 = arith.constant 0 : i32
    %c0_i32_1 = arith.constant 0 : i32
    return %c0_i32, %c0_i32_0 : i32, i32
  }
  func.func @transform_16(%arg0: i32) -> (i32, i32) {
    %c0_i32 = arith.constant 0 : i32
    %c0_i32_0 = arith.constant 0 : i32
    %c0_i32_1 = arith.constant 0 : i32
    return %c0_i32, %c0_i32_0 : i32, i32
  }
  func.func @transform_17(%arg0: i32) -> (i32, i32) {
    %c0_i32 = arith.constant 0 : i32
    %c0_i32_0 = arith.constant 0 : i32
    %c0_i32_1 = arith.constant 0 : i32
    return %c0_i32, %c0_i32_0 : i32, i32
  }
  func.func @transform_18(%arg0: i32) -> (i32, i32) {
    %c0_i32 = arith.constant 0 : i32
    %c0_i32_0 = arith.constant 0 : i32
    %c0_i32_1 = arith.constant 0 : i32
    return %c0_i32, %c0_i32_0 : i32, i32
  }
  func.func @transform_19(%arg0: i32) -> (i32, i32) {
    %c0_i32 = arith.constant 0 : i32
    %c0_i32_0 = arith.constant 0 : i32
    %c0_i32_1 = arith.constant 0 : i32
    return %c0_i32, %c0_i32_0 : i32, i32
  }
  func.func @transform_20(%arg0: i32) -> (i32, i32) {
    %c0_i32 = arith.constant 0 : i32
    %c0_i32_0 = arith.constant 0 : i32
    %c0_i32_1 = arith.constant 0 : i32
    return %c0_i32, %c0_i32_0 : i32, i32
  }
  func.func @transform_21(%arg0: i32) -> (i32, i32) {
    %c0_i32 = arith.constant 0 : i32
    %c0_i32_0 = arith.constant 0 : i32
    %c0_i32_1 = arith.constant 0 : i32
    return %c0_i32, %c0_i32_0 : i32, i32
  }
  func.func @transform_22(%arg0: i32) -> (i32, i32) {
    %c0_i32 = arith.constant 0 : i32
    %c0_i32_0 = arith.constant 0 : i32
    %c0_i32_1 = arith.constant 0 : i32
    return %c0_i32, %c0_i32_0 : i32, i32
  }
  func.func @transform_23(%arg0: i32) -> (i32, i32, i32) {
    %c0_i32 = arith.constant 0 : i32
    %c0_i32_0 = arith.constant 0 : i32
    %c0_i32_1 = arith.constant 0 : i32
    return %arg0, %c0_i32, %c0_i32_0 : i32, i32, i32
  }
}

</mosaic_0001>

<bundles_post_ra>
// kernel: resnet1d_forward.1
= control target key start
LH: loop header
LB: loop body
LE: loop exit
PB: predicated region body
PF: predicated region fallthrough
CT: control target
= control target key end

     0   :  { %s12854_s0 = inlined_call_operand.vmem [shape: f32[2,16,128], index: 0, kind: input, shape index: {}]   ;;  %s12855_s1 = inlined_call_operand.vmem [shape: bf16[128,1152], index: 1, kind: input, shape index: {}]   ;;  %s12856_s2 = inlined_call_operand.vmem [shape: f32[2,128], index: 2, kind: input, shape index: {}]   ;;  %s12857_s3 = inlined_call_operand.vmem [shape: bf16[128,1152], index: 3, kind: input, shape index: {}]   ;;  %s12858_s4 = inlined_call_operand.vmem [shape: f32[2,128], index: 4, kind: input, shape index: {}]   ;;  %s12859_s5 = inlined_call_operand.vmem [shape: bf16[128,1152], index: 5, kind: input, shape index: {}]   ;;  %s12860_s6 = inlined_call_operand.vmem [shape: f32[2,128], index: 6, kind: input, shape index: {}]   ;;  %s12861_s7 = inlined_call_operand.vmem [shape: bf16[128,1152], index: 7, kind: input, shape index: {}]   ;;  %s12862_s8 = inlined_call_operand.vmem [shape: f32[2,128], index: 8, kind: input, shape index: {}]   ;;  %s12863_s9 = inlined_call_operand.vmem [shape: bf16[128,1152], index: 9, kind: input, shape index: {}]   ;;  %s12864_s10 = inlined_call_operand.vmem [shape: f32[2,128], index: 10, kind: input, shape index: {}]   ;;  %s12865_s11 = inlined_call_operand.vmem [shape: bf16[128,128], index: 11, kind: input, shape index: {}]   ;;  %s12866_s12 = inlined_call_operand.vmem [shape: f32[2,128], index: 12, kind: input, shape index: {}]   ;;  %s12867_s13 = inlined_call_operand.vmem [shape: bf16[128,1152], index: 13, kind: input, shape index: {}]   ;;  %s12868_s14 = inlined_call_operand.vmem [shape: f32[2,128], index: 14, kind: input, shape index: {}]   ;;  %s12869_s15 = inlined_call_operand.vmem [shape: bf16[128,1152], index: 15, kind: input, shape index: {}]   ;;  %s12870_s16 = inlined_call_operand.vmem [shape: f32[2,128], index: 16, kind: input, shape index: {}]   ;;  %s12871_s17 = inlined_call_operand.vmem [shape: bf16[128,1152], index: 17, kind: input, shape index: {}]   ;;  %s12872_s18 = inlined_call_operand.vmem [shape: f32[2,128], index: 18, kind: input, shape index: {}]   ;;  %s12873_s19 = inlined_call_operand.vmem [shape: bf16[128,1152], index: 19, kind: input, shape index: {}]   ;;  %s12874_s20 = inlined_call_operand.vmem [shape: f32[2,128], index: 20, kind: input, shape index: {}]   ;;  %s12875_s21 = inlined_call_operand.vmem [shape: bf16[128,128], index: 21, kind: input, shape index: {}]   ;;  %s12876_s22 = inlined_call_operand.vmem [shape: f32[2,128], index: 22, kind: input, shape index: {}]   ;;  %s12877_s23 = inlined_call_operand.vmem [shape: f32[2,16,128], index: 23, kind: output, shape index: {}]  }
   0x1   :  { %12885 = sst [smem:[#allocation4_spill]] %s12854_s0 }
   0x2   :  { %12886 = sst [smem:[#allocation5_spill]] %s12855_s1 }
   0x3   :  { %12887 = sst [smem:[#allocation6_spill]] %s12856_s2 }
   0x4   :  { %12888 = sst [smem:[#allocation7_spill]] %s12857_s3 }
   0x5   :  { %12889 = sst [smem:[#allocation8_spill]] %s12858_s4  ;;  %s10380_s4 = smov 0  }
   0x6   :  { %12890 = sst [smem:[#allocation9_spill]] %s12859_s5 }
   0x7   :  { %12891 = sst [smem:[#allocation10_spill]] %s12860_s6 }
   0x8   :  { %12892 = sst [smem:[#allocation11_spill]] %s12861_s7 }
   0x9 LB: > { %12893 = sst [smem:[#allocation3_spill]] %s10255_s4  ;;  %s8281_s30 = sadd.s32 4294967295, %s10255_s4   ;;  %s10255_s4 = sphi %s10380_s4, %s33_s4  }
   0xa   : > { %p8285_p0 = scmp.ge.s32.totalorder %s10255_s4, 1  ;;  %p637_p1 = scmp.lt.s32.totalorder %s10255_s4, 3 }
   0xc   : > { %p638_p2 = pnand %p8285_p0, %p637_p1 }
   0xd   : > { %s12894_s5 = sld [smem:[#allocation5_spill]] (!%p638_p2)  ;;  %v10257_v2 = vmov (!%p638_p2), 0   ;;  %v10258_v4 = vmov (!%p638_p2), 0.0   ;;  %p701_p3 = scmp.lt.s32.totalorder (!%p638_p2), %s8281_s30, 1  ;;  %vm1425_vm0 = vcmask (!%p638_p2), 1046528   ;;  %vm1438_vm1 = vcmask (!%p638_p2), 1045504  }
   0xe   : > { %641 = sbr.rel (%p638_p2) target bundleno = 2948 (0xb84), region = 112  ;;  %1204 = vmatprep.mubr.bf16.mxu0 (!%p638_p2), %v10257_v2  ;;  %1254 = vmatprep.mubr.bf16.mxu1 (!%p638_p2), %v10257_v2  ;;  %712 = vst [vmem:[#allocation2] sm:$0xff] (!%p638_p2), %v10258_v4  ;;  %713 = vst [vmem:[#allocation2 + $0x8] sm:$0xff] (!%p638_p2), %v10258_v4  ;;  %s12895_s0 = sld [smem:[#allocation4_spill]] (!%p638_p2)  ;;  %vm1451_vm2 = vcmask (!%p638_p2), 1044480   ;;  %vm1464_vm3 = vcmask (!%p638_p2), 1043456  }
   0xf   : > { %714 = vst [vmem:[#allocation2 + $0x10] sm:$0xff] (!%p638_p2), %v10258_v4  ;;  %s12896_s7 = sld [smem:[#allocation7_spill]] (!%p638_p2)  ;;  %vm1477_vm4 = vcmask (!%p638_p2), 1042432   ;;  %vm1490_vm5 = vcmask (!%p638_p2), 1041408   ;;  %vm1503_vm6 = vcmask (!%p638_p2), 1040384   ;;  %s12897_s29 = sld [smem:[#allocation6_spill]] (!%p638_p2) }
  0x10   : > { %s12899_s26 = sld [smem:[#allocation8_spill]] (!%p638_p2)  ;;  %s12900_s6 = sld [smem:[#allocation11_spill]] (!%p638_p2)  ;;  %vm10259_vm7 = vmmov (!%p638_p2), 0  }
  0x11   : > { %s12901_s28 = sld [smem:[#allocation10_spill]] (!%p638_p2) }
  0x13   : > { %v9297_v0 = vld [vmem:[%s12894_s5 + $0x4] ss:$36 sps:$4 sm:$0xff] (!%p638_p2)   ;;  %v9300_v3 = vld [vmem:[%s12894_s5 + $0xc] ss:$36 sps:$4 sm:$0xff] (!%p638_p2)   ;;  %v9306_v8 = vld [vmem:[%s12894_s5 + $0x54] ss:$36 sps:$4 sm:$0xff] (!%p638_p2)  }
  0x14   : > { %v9299_v1 = vld [vmem:[%s12894_s5] ss:$36 sps:$4 sm:$0xff] (!%p638_p2)   ;;  %1172 = vmatprep.subr.bf16.mxu0 (!%p638_p2), %v9297_v0  ;;  %v9302_v5 = vld [vmem:[%s12894_s5 + $0x4c] ss:$36 sps:$4 sm:$0xff] (!%p638_p2)   ;;  %1222 = vmatprep.subr.bf16.mxu1 (!%p638_p2), %v9300_v3  ;;  %v9308_v9 = vld [vmem:[%s12894_s5 + $0x94] ss:$36 sps:$4 sm:$0xff] (!%p638_p2)  }
  0x15   : > { %1173 = vmatpush1.bf16.msra.mxu0 %v9299_v1  ;;  %v9304_v6 = vld [vmem:[%s12894_s5 + $0x8] ss:$36 sps:$4 sm:$0xff]   ;;  %v9310_v10 = vld [vmem:[%s12894_s5 + $0x50] ss:$36 sps:$4 sm:$0xff]   ;;  %v9312_v12 = vld [vmem:[%s12894_s5 + $0x9c] ss:$36 sps:$4 sm:$0xff]  }
  0x16   : > { %v9305_v7 = vld [vmem:[%s12894_s5 + $0x48] ss:$36 sps:$4 sm:$0xff]   ;;  %1174 = vmatprep.subr.bf16.mxu0 %v9302_v5  ;;  %1223 = vmatpush1.bf16.msra.mxu1 %v9304_v6  ;;  %v9311_v11 = vld [vmem:[%s12894_s5 + $0x90] ss:$36 sps:$4 sm:$0xff]   ;;  %v9314_v13 = vld [vmem:[%s12894_s5 + $0xdc] ss:$36 sps:$4 sm:$0xff]  }
  0x17   : > { %1224 = vmatprep.subr.bf16.mxu1 %v9306_v8  ;;  %v9316_v14 = vld [vmem:[%s12894_s5 + $0x98] ss:$36 sps:$4 sm:$0xff]   ;;  %v9318_v15 = vld [vmem:[%s12894_s5 + $0xe4] ss:$36 sps:$4 sm:$0xff]   ;;  %s12905_s30 = smov (!%p701_p3, %s8281_s30), 1 }
  0x18   : > { %v9317_v16 = vld [vmem:[%s12894_s5 + $0xd8] ss:$36 sps:$4 sm:$0xff]   ;;  %v9320_v17 = vld [vmem:[%s12894_s5 + $0x124] ss:$36 sps:$4 sm:$0xff]   ;;  %v9324_v19 = vld [vmem:[%s12894_s5 + $0x12c] ss:$36 sps:$4 sm:$0xff]  }
  0x19   : > { %1175 = vmatpush1.bf16.msra.mxu0 %v9305_v7  ;;  %v9322_v18 = vld [vmem:[%s12894_s5 + $0xe0] ss:$36 sps:$4 sm:$0xff]   ;;  %s12883_s1 = sshll.u32 %s12905_s30, 4  ;;  %v9326_v21 = vld [vmem:[%s12894_s5 + $0x16c] ss:$36 sps:$4 sm:$0xff]   ;;  %s12902_s27 = sshll.u32 %s12905_s30, 4 }
  0x1a   : > { %1176 = vmatprep.subr.bf16.mxu0 %v9308_v9  ;;  %1225 = vmatpush1.bf16.msra.mxu1 %v9310_v10  ;;  %v9323_v20 = vld [vmem:[%s12894_s5 + $0x120] ss:$36 sps:$4 sm:$0xff]   ;;  %v9328_v22 = vld [vmem:[%s12894_s5 + $0x128] ss:$36 sps:$4 sm:$0xff]   ;;  %v9330_v23 = vld [vmem:[%s12894_s5 + $0x174] ss:$36 sps:$4 sm:$0xff]   ;;  %s705_s24 = scalar_lea.vmem %s12895_s0, %s12883_s1  ;;  %s710_s4 = scalar_lea.vmem %s12877_s23, %s12902_s27 }
  0x1b   : > { %1226 = vmatprep.subr.bf16.mxu1 %v9312_v12  ;;  %v9329_v24 = vld [vmem:[%s12894_s5 + $0x168] ss:$36 sps:$4 sm:$0xff]   ;;  %v9332_v25 = vld [vmem:[%s12894_s5 + $0x1b4] ss:$36 sps:$4 sm:$0xff]   ;;  %v715_v27 = vld [vmem:[%s705_s24] sm:$0xff]  ;;  %s12898_s0 = sld [smem:[#allocation9_spill]] }
  0x1c   : > { %v9334_v26 = vld [vmem:[%s12894_s5 + $0x170] ss:$36 sps:$4 sm:$0xff]   ;;  %v716_v28 = vld [vmem:[%s705_s24 + $0x8] sm:$0xff]  ;;  %v9336_v29 = vld [vmem:[%s12894_s5 + $0x1bc] ss:$36 sps:$4 sm:$0xff]   ;;  %717 = vst [vmem:[#allocation2 + $0x4] sm:$0xff] %v715_v27 }
  0x1d   : > { %1177 = vmatpush1.bf16.msra.mxu0 %v9311_v11  ;;  %718 = vst [vmem:[#allocation2 + $0xc] sm:$0xff] %v716_v28  ;;  %v9335_v30 = vld [vmem:[%s12894_s5 + $0x1b0] ss:$36 sps:$4 sm:$0xff]   ;;  %v9338_v31 = vld [vmem:[%s12894_s5 + $0x1fc] ss:$36 sps:$4 sm:$0xff]  }
  0x1e   : > { %1178 = vmatprep.subr.bf16.mxu0 %v9314_v13  ;;  %1227 = vmatpush1.bf16.msra.mxu1 %v9316_v14  ;;  %v9340_v32 = vld [vmem:[%s12894_s5 + $0x1b8] ss:$36 sps:$4 sm:$0xff]   ;;  %v9342_v33 = vld [vmem:[%s12894_s5 + $0x204] ss:$36 sps:$4 sm:$0xff]   ;;  %v9345_v41 = vld [vmem:[%s12894_s5 + $0x10] ss:$36 sps:$4 sm:$0xff]  }
  0x1f   : > { %1228 = vmatprep.subr.bf16.mxu1 %v9318_v15  ;;  %v9341_v34 = vld [vmem:[%s12894_s5 + $0x1f8] ss:$36 sps:$4 sm:$0xff]   ;;  %v9344_v38 = vld [vmem:[%s12894_s5 + $0x200] ss:$36 sps:$4 sm:$0xff]   ;;  %v9365_v50 = vld [vmem:[%s12894_s5 + $0xac] ss:$36 sps:$4 sm:$0xff]  }
  0x20   : > { %v9347_v35 = vld [vmem:[%s12894_s5 + $0x14] ss:$36 sps:$4 sm:$0xff]   ;;  %v9353_v40 = vld [vmem:[%s12894_s5 + $0x1c] ss:$36 sps:$4 sm:$0xff]   ;;  %v9359_v45 = vld [vmem:[%s12894_s5 + $0x64] ss:$36 sps:$4 sm:$0xff]  }
  0x21   : > { %1179 = vmatpush1.bf16.msra.mxu0 %v9317_v16  ;;  %v9350_v42 = vld [vmem:[%s12894_s5 + $0x5c] ss:$36 sps:$4 sm:$0xff]   ;;  %v9356_v47 = vld [vmem:[%s12894_s5 + $0xa4] ss:$36 sps:$4 sm:$0xff]   ;;  %v9362_v52 = vld [vmem:[%s12894_s5 + $0xec] ss:$36 sps:$4 sm:$0xff]  }
  0x22   : > { %1180 = vmatprep.subr.bf16.mxu0 %v9320_v17  ;;  %1229 = vmatpush1.bf16.msra.mxu1 %v9322_v18  ;;  %v9351_v43 = vld [vmem:[%s12894_s5 + $0x18] ss:$36 sps:$4 sm:$0xff]   ;;  %v9357_v48 = vld [vmem:[%s12894_s5 + $0x60] ss:$36 sps:$4 sm:$0xff]   ;;  %v9363_v53 = vld [vmem:[%s12894_s5 + $0xa8] ss:$36 sps:$4 sm:$0xff]  }
  0x23   : > { %1230 = vmatprep.subr.bf16.mxu1 %v9324_v19  ;;  %v719_v36 = vld [vmem:[#allocation2] sm:$0xff]  ;;  %v9348_v44 = vld [vmem:[%s12894_s5 + $0x58] ss:$36 sps:$4 sm:$0xff]   ;;  %v9360_v55 = vld [vmem:[%s12894_s5 + $0xe8] ss:$36 sps:$4 sm:$0xff]  }
  0x24   : > { %v720_v37 = vld [vmem:[#allocation2 + $0x8] sm:$0xff]  ;;  %v721_v46 = vld [vmem:[#allocation2 + $0x10] sm:$0xff]  ;;  %v9354_v51 = vld [vmem:[%s12894_s5 + $0xa0] ss:$36 sps:$4 sm:$0xff]  }
  0x25   : > { %1181 = vmatpush1.bf16.msra.mxu0 %v9323_v20  ;;  %v10504_v39 = vpack.c.bf16 %v720_v37, %v719_v36  ;;  %v10534_v49 = vpack.c.bf16 %v721_v46, %v721_v46  ;;  %v9371_v54 = vld [vmem:[%s12894_s5 + $0xf4] ss:$36 sps:$4 sm:$0xff]   ;;  %v9377_v58 = vld [vmem:[%s12894_s5 + $0x13c] ss:$36 sps:$4 sm:$0xff]   ;;  %v9380_v63 = vld [vmem:[%s12894_s5 + $0x1c4] ss:$36 sps:$4 sm:$0xff]  }
  0x26   : > { %1182 = vmatprep.subr.bf16.mxu0 %v9326_v21  ;;  %1231 = vmatpush1.bf16.msra.mxu1 %v9328_v22  ;;  %v9368_v56 = vld [vmem:[%s12894_s5 + $0x134] ss:$36 sps:$4 sm:$0xff]   ;;  %v9374_v60 = vld [vmem:[%s12894_s5 + $0x17c] ss:$36 sps:$4 sm:$0xff]   ;;  %v9383_v0 = vld [vmem:[%s12894_s5 + $0x184] ss:$36 sps:$4 sm:$0xff]  }
  0x27   : > { %1232 = vmatprep.subr.bf16.mxu1 %v9330_v23  ;;  %v9369_v57 = vld [vmem:[%s12894_s5 + $0xf0] ss:$36 sps:$4 sm:$0xff]   ;;  %v9372_v61 = vld [vmem:[%s12894_s5 + $0x178] ss:$36 sps:$4 sm:$0xff]   ;;  %v9381_v1 = vld [vmem:[%s12894_s5 + $0x180] ss:$36 sps:$4 sm:$0xff]  }
  0x28   : > { %v9366_v59 = vld [vmem:[%s12894_s5 + $0x130] ss:$36 sps:$4 sm:$0xff]   ;;  %v9375_v62 = vld [vmem:[%s12894_s5 + $0x138] ss:$36 sps:$4 sm:$0xff]   ;;  %v9378_v5 = vld [vmem:[%s12894_s5 + $0x1c0] ss:$36 sps:$4 sm:$0xff]  }
  0x29   : > { %1183 = vmatpush1.bf16.msra.mxu0 %v9329_v24  ;;  %v9389_v3 = vld [vmem:[%s12894_s5 + $0x1cc] ss:$36 sps:$4 sm:$0xff]   ;;  %v9392_v8 = vld [vmem:[%s12894_s5 + $0x214] ss:$36 sps:$4 sm:$0xff]   ;;  %v9393_v10 = vld [vmem:[%s12894_s5 + $0x20] ss:$36 sps:$4 sm:$0xff]  }
  0x2a   : > { %1184 = vmatprep.subr.bf16.mxu0 %v9332_v25  ;;  %1233 = vmatpush1.bf16.msra.mxu1 %v9334_v26  ;;  %v9386_v6 = vld [vmem:[%s12894_s5 + $0x20c] ss:$36 sps:$4 sm:$0xff]   ;;  %v9396_v14 = vld [vmem:[%s12894_s5 + $0xf8] ss:$36 sps:$4 sm:$0xff]   ;;  %v9397_v15 = vld [vmem:[%s12894_s5 + $0x140] ss:$36 sps:$4 sm:$0xff]  }
  0x2b   : > { %1234 = vmatprep.subr.bf16.mxu1 %v9336_v29  ;;  %v9387_v7 = vld [vmem:[%s12894_s5 + $0x1c8] ss:$36 sps:$4 sm:$0xff]   ;;  %v9390_v11 = vld [vmem:[%s12894_s5 + $0x210] ss:$36 sps:$4 sm:$0xff]   ;;  %v9400_v18 = vld [vmem:[%s12894_s5 + $0x218] ss:$36 sps:$4 sm:$0xff]  }
  0x2c   : > { %v9384_v9 = vld [vmem:[%s12894_s5 + $0x208] ss:$36 sps:$4 sm:$0xff]   ;;  %v9395_v13 = vld [vmem:[%s12894_s5 + $0xb0] ss:$36 sps:$4 sm:$0xff]   ;;  %v9401_v19 = vld [vmem:[%s12896_s7] ss:$36 sps:$4 sm:$0xff]  }
  0x2d   : > { %1185 = vmatpush1.bf16.msra.mxu0 %v9335_v30  ;;  %v9394_v12 = vld [vmem:[%s12894_s5 + $0x68] ss:$36 sps:$4 sm:$0xff]   ;;  %v9399_v17 = vld [vmem:[%s12894_s5 + $0x1d0] ss:$36 sps:$4 sm:$0xff]   ;;  %v9418_v28 = vld [vmem:[%s12896_s7 + $0x9c] ss:$36 sps:$4 sm:$0xff]  }
  0x2e   : > { %1186 = vmatprep.subr.bf16.mxu0 %v9338_v31  ;;  %1235 = vmatpush1.bf16.msra.mxu1 %v9340_v32  ;;  %v9398_v16 = vld [vmem:[%s12894_s5 + $0x188] ss:$36 sps:$4 sm:$0xff]   ;;  %v9412_v25 = vld [vmem:[%s12896_s7 + $0x54] ss:$36 sps:$4 sm:$0xff]   ;;  %v9421_v31 = vld [vmem:[%s12896_s7 + $0xdc] ss:$36 sps:$4 sm:$0xff]  }
  0x2f   : > { %1236 = vmatprep.subr.bf16.mxu1 %v9342_v33  ;;  %v9403_v20 = vld [vmem:[%s12896_s7 + $0x4] ss:$36 sps:$4 sm:$0xff]   ;;  %v9406_v22 = vld [vmem:[%s12896_s7 + $0xc] ss:$36 sps:$4 sm:$0xff]   ;;  %v9415_v27 = vld [vmem:[%s12896_s7 + $0x94] ss:$36 sps:$4 sm:$0xff]  }
  0x30   : > { %v9404_v21 = vld [vmem:[%s12896_s7 + $0x8] ss:$36 sps:$4 sm:$0xff]   ;;  %v9410_v26 = vld [vmem:[%s12896_s7 + $0x50] ss:$36 sps:$4 sm:$0xff]   ;;  %v9416_v30 = vld [vmem:[%s12896_s7 + $0x98] ss:$36 sps:$4 sm:$0xff]  }
  0x31   : > { %1187 = vmatpush1.bf16.msra.mxu0 %v9341_v34  ;;  %v9409_v23 = vld [vmem:[%s12896_s7 + $0x4c] ss:$36 sps:$4 sm:$0xff]   ;;  %v9424_v32 = vld [vmem:[%s12896_s7 + $0xe4] ss:$36 sps:$4 sm:$0xff]   ;;  %v9419_v33 = vld [vmem:[%s12896_s7 + $0xd8] ss:$36 sps:$4 sm:$0xff]  }
  0x32   : > { %1273 = vmatprep.subr.bf16.mxu0 %v9347_v35  ;;  %1237 = vmatpush1.bf16.msra.mxu1 %v9344_v38  ;;  %v9407_v24 = vld [vmem:[%s12896_s7 + $0x48] ss:$36 sps:$4 sm:$0xff]   ;;  %v9413_v29 = vld [vmem:[%s12896_s7 + $0x90] ss:$36 sps:$4 sm:$0xff]   ;;  %v9422_v34 = vld [vmem:[%s12896_s7 + $0xe0] ss:$36 sps:$4 sm:$0xff]  }
  0x33   : > { %1324 = vmatprep.subr.bf16.mxu1 %v9353_v40  ;;  %v9427_v35 = vld [vmem:[%s12896_s7 + $0x124] ss:$36 sps:$4 sm:$0xff]   ;;  %v9430_v36 = vld [vmem:[%s12896_s7 + $0x12c] ss:$36 sps:$4 sm:$0xff]   ;;  %v9436_v40 = vld [vmem:[%s12896_s7 + $0x174] ss:$36 sps:$4 sm:$0xff]  }
  0x34   : > { %1205 = vmatmul.mubr.bf16.vlgmr.msra.gmra.mrb[0].mxu0 %v10504_v39  ;;  %v9425_v37 = vld [vmem:[%s12896_s7 + $0x120] ss:$36 sps:$4 sm:$0xff]   ;;  %v9428_v38 = vld [vmem:[%s12896_s7 + $0x128] ss:$36 sps:$4 sm:$0xff]   ;;  %v9440_v46 = vld [vmem:[%s12896_s7 + $0x1b8] ss:$36 sps:$4 sm:$0xff]  }
  0x35   : > { %1274 = vmatpush1.bf16.msra.mxu0 %v9345_v41  ;;  %1214 = vmatprep.mubr.bf16.mxu0 %v10257_v2  ;;  %v9431_v41 = vld [vmem:[%s12896_s7 + $0x168] ss:$36 sps:$4 sm:$0xff]  }
  0x36   : > { %1255 = vmatmul.mubr.bf16.vlgmr.msra.gmra.mrb[0].mxu1 %v10504_v39  ;;  %1275 = vmatprep.subr.bf16.mxu0 %v9350_v42  ;;  %v9434_v42 = vld [vmem:[%s12896_s7 + $0x170] ss:$36 sps:$4 sm:$0xff]  }
  0x37   : > { %1325 = vmatpush1.bf16.msra.mxu1 %v9351_v43  ;;  %1264 = vmatprep.mubr.bf16.mxu1 %v10257_v2  ;;  %v9439_v43 = vld [vmem:[%s12896_s7 + $0x1b4] ss:$36 sps:$4 sm:$0xff]  }
  0x38   : > { %1326 = vmatprep.subr.bf16.mxu1 %v9359_v45  ;;  %v9437_v45 = vld [vmem:[%s12896_s7 + $0x1b0] ss:$36 sps:$4 sm:$0xff]  }
  0x39   : > { %1276 = vmatpush1.bf16.msra.mxu0 %v9348_v44  ;;  %v9442_v44 = vld [vmem:[%s12896_s7 + $0x1bc] ss:$36 sps:$4 sm:$0xff]  }
  0x3a   : > { %1277 = vmatprep.subr.bf16.mxu0 %v9356_v47  ;;  %v9445_v47 = vld [vmem:[%s12896_s7 + $0x1fc] ss:$36 sps:$4 sm:$0xff]  }
  0x3b   : > { %1327 = vmatpush1.bf16.msra.mxu1 %v9357_v48  ;;  %v9448_v48 = vld [vmem:[%s12896_s7 + $0x204] ss:$36 sps:$4 sm:$0xff]  }
  0x3c   : > { %1215 = vmatmul.mubr.bf16.gmra.mrb[4].mxu0 %v10534_v49  ;;  %1328 = vmatprep.subr.bf16.mxu1 %v9365_v50  ;;  %v9446_v50 = vld [vmem:[%s12896_s7 + $0x200] ss:$36 sps:$4 sm:$0xff]  }
  0x3d   : > { %1278 = vmatpush1.bf16.msra.mxu0 %v9354_v51  ;;  %1305 = vmatprep.mubr.bf16.mxu0 %v10257_v2  ;;  %v9451_v51 = vld [vmem:[%s12896_s7 + $0x14] ss:$36 sps:$4 sm:$0xff]  }
  0x3e   : > { %1265 = vmatmul.mubr.bf16.gmra.mrb[4].mxu1 %v10534_v49  ;;  %1279 = vmatprep.subr.bf16.mxu0 %v9362_v52  ;;  %v9454_v52 = vld [vmem:[%s12896_s7 + $0x1c] ss:$36 sps:$4 sm:$0xff]  }
  0x3f   : > { %1329 = vmatpush1.bf16.msra.mxu1 %v9363_v53  ;;  %1356 = vmatprep.mubr.bf16.mxu1 %v10257_v2 }
  0x40   : > { %1330 = vmatprep.subr.bf16.mxu1 %v9371_v54 }
  0x41   : > { %1280 = vmatpush1.bf16.msra.mxu0 %v9360_v55 }
  0x42   : > { %1281 = vmatprep.subr.bf16.mxu0 %v9368_v56 }
  0x43   : > { %1331 = vmatpush1.bf16.msra.mxu1 %v9369_v57 }
  0x44   : > { %1332 = vmatprep.subr.bf16.mxu1 %v9377_v58 }
  0x45   : > { %1282 = vmatpush1.bf16.msra.mxu0 %v9366_v59 }
  0x46   : > { %1283 = vmatprep.subr.bf16.mxu0 %v9374_v60 }
  0x47   : > { %1333 = vmatpush1.bf16.msra.mxu1 %v9375_v62 }
  0x48   : > { %1334 = vmatprep.subr.bf16.mxu1 %v9383_v0 }
  0x49   : > { %1284 = vmatpush1.bf16.msra.mxu0 %v9372_v61 }
  0x4a   : > { %1285 = vmatprep.subr.bf16.mxu0 %v9380_v63 }
  0x4b   : > { %1335 = vmatpush1.bf16.msra.mxu1 %v9381_v1 }
  0x4c   : > { %1336 = vmatprep.subr.bf16.mxu1 %v9389_v3 }
  0x4d   : > { %1286 = vmatpush1.bf16.msra.mxu0 %v9378_v5 }
  0x4e   : > { %1287 = vmatprep.subr.bf16.mxu0 %v9386_v6 }
  0x4f   : > { %1337 = vmatpush1.bf16.msra.mxu1 %v9387_v7 }
  0x50   : > { %1338 = vmatprep.subr.bf16.mxu1 %v9392_v8 }
  0x51   : > { %1288 = vmatpush1.bf16.msra.mxu0 %v9384_v9 }
  0x52   : > { %9066 = vmatprep.subr.bf16.mxu0 %v9393_v10 }
  0x53   : > { %1339 = vmatpush1.bf16.msra.mxu1 %v9390_v11 }
  0x54   : > { %1306 = vmatmul.mubr.bf16.vlgmr.msra.gmra.mrb[8].mxu0 %v10504_v39  ;;  %1985 = vmatprep.subr.bf16.mxu1 %v9403_v20 }
  0x55   : > { %9067 = vmatpush3.bf16.msra.mxu0 %v9393_v10  ;;  %1315 = vmatprep.mubr.bf16.mxu0 %v10257_v2 }
  0x56   : > { %1357 = vmatmul.mubr.bf16.vlgmr.msra.gmra.mrb[8].mxu1 %v10504_v39  ;;  %9068 = vmatprep.subr.bf16.mxu0 %v9394_v12 }
  0x57   : > { %1366 = vmatprep.mubr.bf16.mxu1 %v10257_v2  ;;  %1986 = vmatpush1.bf16.msra.mxu1 %v9401_v19 }
  0x58   : > { %1987 = vmatprep.subr.bf16.mxu1 %v9409_v23 }
  0x59   : > { %9069 = vmatpush3.bf16.msra.mxu0 %v9394_v12 }
  0x5a   : > { %9070 = vmatprep.subr.bf16.mxu0 %v9395_v13 }
  0x5b   : > { %1988 = vmatpush1.bf16.msra.mxu1 %v9407_v24 }
  0x5c   : > { %1316 = vmatmul.mubr.bf16.gmra.mrb[12].mxu0 %v10534_v49  ;;  %1989 = vmatprep.subr.bf16.mxu1 %v9415_v27 }
  0x5d   : > { %9071 = vmatpush3.bf16.msra.mxu0 %v9395_v13  ;;  %9082 = vmatprep.mubr.bf16.mxu0 %v10504_v39  ;;  %v9433_v39 = vld [vmem:[%s12896_s7 + $0x16c] ss:$36 sps:$4 sm:$0xff]  }
  0x5e   : > { %1367 = vmatmul.mubr.bf16.gmra.mrb[12].mxu1 %v10534_v49  ;;  %9072 = vmatprep.subr.bf16.mxu0 %v9396_v14 }
  0x5f   : > { %2017 = vmatprep.mubr.bf16.mxu1 %v10257_v2  ;;  %1990 = vmatpush1.bf16.msra.mxu1 %v9413_v29 }
  0x60   : > { %1991 = vmatprep.subr.bf16.mxu1 %v9421_v31 }
  0x61   : > { %9073 = vmatpush3.bf16.msra.mxu0 %v9396_v14 }
  0x62   : > { %9074 = vmatprep.subr.bf16.mxu0 %v9397_v15 }
  0x63   : > { %1992 = vmatpush1.bf16.msra.mxu1 %v9419_v33 }
  0x64   : > { %1993 = vmatprep.subr.bf16.mxu1 %v9427_v35 }
  0x65   : > { %9075 = vmatpush3.bf16.msra.mxu0 %v9397_v15 }
  0x66   : > { %9076 = vmatprep.subr.bf16.mxu0 %v9398_v16 }
  0x67   : > { %1994 = vmatpush1.bf16.msra.mxu1 %v9425_v37 }
  0x68   : > { %1995 = vmatprep.subr.bf16.mxu1 %v9433_v39 }
  0x69   : > { %9077 = vmatpush3.bf16.msra.mxu0 %v9398_v16 }
  0x6a   : > { %9078 = vmatprep.subr.bf16.mxu0 %v9399_v17 }
  0x6b   : > { %1996 = vmatpush1.bf16.msra.mxu1 %v9431_v41 }
  0x6c   : > { %1997 = vmatprep.subr.bf16.mxu1 %v9439_v43 }
  0x6d   : > { %9079 = vmatpush3.bf16.msra.mxu0 %v9399_v17 }
  0x6e   : > { %9080 = vmatprep.subr.bf16.mxu0 %v9400_v18 }
  0x6f   : > { %1998 = vmatpush1.bf16.msra.mxu1 %v9437_v45 }
  0x70   : > { %1999 = vmatprep.subr.bf16.mxu1 %v9445_v47 }
  0x71   : > { %9081 = vmatpush3.bf16.msra.mxu0 %v9400_v18 }
  0x72   : > { %2035 = vmatprep.subr.bf16.mxu0 %v9406_v22 }
  0x74   : > { %9083 = vmatmul.mubr.bf16.vlgmr.msra.gmra.mrb[16].mxu0 %v10534_v49  ;;  %v9443_v49 = vld [vmem:[%s12896_s7 + $0x1f8] ss:$36 sps:$4 sm:$0xff]  }
  0x75   : > { %2067 = vmatprep.mubr.bf16.mxu0 %v10257_v2  ;;  %2036 = vmatpush1.bf16.msra.mxu0 %v9404_v21 }
  0x76   : > { %2037 = vmatprep.subr.bf16.mxu0 %v9412_v25  ;;  %2000 = vmatpush1.bf16.msra.mxu1 %v9443_v49 }
  0x77   : > { %2086 = vmatprep.subr.bf16.mxu1 %v9451_v51 }
  0x79   : > { %2038 = vmatpush1.bf16.msra.mxu0 %v9410_v26 }
  0x7a   : > { %2039 = vmatprep.subr.bf16.mxu0 %v9418_v28 }
  0x7d   : > { %2040 = vmatpush1.bf16.msra.mxu0 %v9416_v30 }
  0x7e   : > { %2041 = vmatprep.subr.bf16.mxu0 %v9424_v32 }
  0x81   : > { %2042 = vmatpush1.bf16.msra.mxu0 %v9422_v34 }
  0x82   : > { %2043 = vmatprep.subr.bf16.mxu0 %v9430_v36 }
  0x85   : > { %2044 = vmatpush1.bf16.msra.mxu0 %v9428_v38 }
  0x86   : > { %2045 = vmatprep.subr.bf16.mxu0 %v9436_v40 }
  0x89   : > { %2046 = vmatpush1.bf16.msra.mxu0 %v9434_v42 }
  0x8a   : > { %2047 = vmatprep.subr.bf16.mxu0 %v9442_v44 }
  0x8d   : > { %2048 = vmatpush1.bf16.msra.mxu0 %v9440_v46 }
  0x8e   : > { %2049 = vmatprep.subr.bf16.mxu0 %v9448_v48 }
  0x91   : > { %2050 = vmatpush1.bf16.msra.mxu0 %v9446_v50 }
  0x92   : > { %2137 = vmatprep.subr.bf16.mxu0 %v9454_v52 }
 0x107   : > { %v1206_v53 = vpop.f32.mrb[0].mxu0 }
 0x108   : > { %v1208_v54 = vpop.f32.mrb[1].mxu0 }
 0x109   : > { %v1210_v55 = vpop.f32.mrb[2].mxu0  ;;  %v1256_v56 = vpop.f32.mrb[0].mxu1  ;;  %v1426_v57 = vrot.slane %v1208_v54, 1 }
 0x10a   : > { %v1212_v58 = vpop.f32.mrb[3].mxu0  ;;  %v1439_v59 = vrot.slane %v1256_v56, 2  ;;  %v1258_v60 = vpop.f32.mrb[1].mxu1 }
 0x10b   : > { %v1427_v61 = vrot.slane %v1212_v58, 1  ;;  %v1452_v62 = vrot.slane %v1258_v60, 3  ;;  %v1260_v63 = vpop.f32.mrb[2].mxu1 }
 0x10c   : > { %v1440_v0 = vrot.slane %v1260_v63, 2  ;;  %v1262_v1 = vpop.f32.mrb[3].mxu1 }
 0x10d   : > { %v1428_v3 = vsel %vm1425_vm0, %v1426_v57, %v1427_v61  ;;  %v1453_v5 = vrot.slane %v1262_v1, 3 }
 0x10e   : > { %v1433_v6 = vadd.f32 %v1428_v3, %v1206_v53  ;;  %v1441_v7 = vsel %vm1438_vm1, %v1439_v59, %v1440_v0  ;;  %v1516_v53 = vlaneseq }
 0x10f   : > { %v1454_v8 = vsel %vm1451_vm2, %v1452_v62, %v1453_v5  ;;  %v1216_v9 = vpop.f32.mrb[4].mxu0 }
 0x110   : > { %v1446_v10 = vadd.f32 %v1441_v7, %v1433_v6  ;;  %v1217_v11 = vpop.f32.mrb[5].mxu0  ;;  %v1517_v7 = vshrl.u32 %v1516_v53, 7  ;;  %v9484_v53 = vld [vmem:[%s12896_s7 + $0x184] ss:$36 sps:$4 sm:$0xff]  }
 0x111   : > { %v1429_v12 = vrot.slane %v1217_v11, 1  ;;  %v1266_v13 = vpop.f32.mrb[4].mxu1  ;;  %v1219_v14 = vpop.f32.mrb[6].mxu0 }
 0x112   : > { %v1459_v15 = vadd.f32 %v1454_v8, %v1446_v10  ;;  %v1442_v16 = vrot.slane %v1266_v13, 2  ;;  %v1268_v17 = vpop.f32.mrb[5].mxu1  ;;  %v1220_v18 = vpop.f32.mrb[7].mxu0  ;;  %v1515_v13 = vld [vmem:[%s12897_s29] sm:$0x3]  ;;  %v10764_v14 = vsub.s32 1, %v1517_v7 }
 0x113   : > { %v1430_v19 = vsel %vm1425_vm0, %v1427_v61, %v1429_v12  ;;  %v1455_v20 = vrot.slane %v1268_v17, 3  ;;  %v1270_v21 = vpop.f32.mrb[6].mxu1  ;;  %v10759_v12 = vsub.s32 0, %v1517_v7  ;;  %v9502_v7 = vld [vmem:[%s12896_s7 + $0x188] ss:$36 sps:$4 sm:$0xff]  }
 0x114   : > { %v1434_v22 = vadd.f32 %v1430_v19, %v1210_v55  ;;  %v1443_v23 = vsel %vm1438_vm1, %v1440_v0, %v1442_v16  ;;  %v1271_v24 = vpop.f32.mrb[7].mxu1  ;;  %v1525_v18 = vrot.slane %v1515_v13, %v10764_v14 }
 0x115   : > { %v1456_v25 = vsel %vm1451_vm2, %v1453_v5, %v1455_v20 }
 0x116   : > { %v1447_v26 = vadd.f32 %v1443_v23, %v1434_v22 }
 0x118   : > { %v1460_v27 = vadd.f32 %v1456_v25, %v1447_v26 }
 0x127   : > { %v1307_v28 = vpop.f32.mrb[8].mxu0 }
 0x128   : > { %v1465_v29 = vrot.slane %v1307_v28, 4  ;;  %v1309_v30 = vpop.f32.mrb[9].mxu0 }
 0x129   : > { %v1478_v31 = vrot.slane %v1309_v30, 5  ;;  %v1311_v32 = vpop.f32.mrb[10].mxu0  ;;  %v1358_v33 = vpop.f32.mrb[8].mxu1 }
 0x12a   : > { %v1466_v34 = vrot.slane %v1311_v32, 4  ;;  %v1313_v35 = vpop.f32.mrb[11].mxu0  ;;  %v1491_v36 = vrot.slane %v1358_v33, 6  ;;  %v1360_v37 = vpop.f32.mrb[9].mxu1 }
 0x12b   : > { %v1479_v38 = vrot.slane %v1313_v35, 5  ;;  %v1504_v39 = vrot.slane %v1360_v37, 7  ;;  %v1362_v40 = vpop.f32.mrb[10].mxu1  ;;  %v9460_v35 = vld [vmem:[%s12896_s7 + $0x64] ss:$36 sps:$4 sm:$0xff]  }
 0x12c   : > { %v1467_v41 = vsel %vm1464_vm3, %v1465_v29, %v1466_v34  ;;  %v1492_v42 = vrot.slane %v1362_v40, 6  ;;  %v1364_v43 = vpop.f32.mrb[11].mxu1  ;;  %v9449_v29 = vld [vmem:[%s12896_s7 + $0x10] ss:$36 sps:$4 sm:$0xff]   ;;  %v9458_v37 = vld [vmem:[%s12896_s7 + $0x60] ss:$36 sps:$4 sm:$0xff]  }
 0x12d   : > { %v1472_v44 = vadd.f32 %v1467_v41, %v1459_v15  ;;  %v1480_v45 = vsel %vm1477_vm4, %v1478_v31, %v1479_v38  ;;  %v1505_v46 = vrot.slane %v1364_v43, 7  ;;  %v1519_v15 = vrot.slane %v1515_v13, %v10759_v12  ;;  %v9452_v31 = vld [vmem:[%s12896_s7 + $0x18] ss:$36 sps:$4 sm:$0xff]   ;;  %v9461_v41 = vld [vmem:[%s12896_s7 + $0xa0] ss:$36 sps:$4 sm:$0xff]  }
 0x12e   : > { %v1493_v47 = vsel %vm1490_vm5, %v1491_v36, %v1492_v42  ;;  %v9455_v36 = vld [vmem:[%s12896_s7 + $0x58] ss:$36 sps:$4 sm:$0xff]   ;;  %v9508_v13 = vld [vmem:[%s12898_s0 + $0x8] ss:$36 sps:$4 sm:$0xff]  }
 0x12f   : > { %v1485_v48 = vadd.f32 %v1480_v45, %v1472_v44  ;;  %v1317_v49 = vpop.f32.mrb[12].mxu0  ;;  %v1506_v50 = vsel %vm1503_vm6, %v1504_v39, %v1505_v46  ;;  %v9466_v39 = vld [vmem:[%s12896_s7 + $0xac] ss:$36 sps:$4 sm:$0xff]   ;;  %v9472_v45 = vld [vmem:[%s12896_s7 + $0xf4] ss:$36 sps:$4 sm:$0xff]  }
 0x130   : > { %v1468_v51 = vrot.slane %v1317_v49, 4  ;;  %v1319_v52 = vpop.f32.mrb[13].mxu0  ;;  %v9469_v44 = vld [vmem:[%s12896_s7 + $0xec] ss:$36 sps:$4 sm:$0xff]   ;;  %v9478_v49 = vld [vmem:[%s12896_s7 + $0x13c] ss:$36 sps:$4 sm:$0xff]  }
 0x131   : > { %v1481_v54 = vrot.slane %v1319_v52, 5  ;;  %v1368_v55 = vpop.f32.mrb[12].mxu1  ;;  %v1321_v56 = vpop.f32.mrb[14].mxu0  ;;  %v1498_v57 = vadd.f32 %v1493_v47, %v1485_v48  ;;  %v9470_v47 = vld [vmem:[%s12896_s7 + $0xf0] ss:$36 sps:$4 sm:$0xff]  }
 0x132   : > { %v1469_v58 = vsel %vm1464_vm3, %v1466_v34, %v1468_v51  ;;  %v1494_v59 = vrot.slane %v1368_v55, 6  ;;  %v1370_v60 = vpop.f32.mrb[13].mxu1  ;;  %v1322_v61 = vpop.f32.mrb[15].mxu0  ;;  %v9457_v34 = vld [vmem:[%s12896_s7 + $0x5c] ss:$36 sps:$4 sm:$0xff]  }
 0x133   : > { %v1473_v62 = vadd.f32 %v1469_v58, %v1460_v27  ;;  %v1482_v63 = vsel %vm1477_vm4, %v1479_v38, %v1481_v54  ;;  %v1507_v0 = vrot.slane %v1370_v60, 7  ;;  %v1372_v1 = vpop.f32.mrb[14].mxu1  ;;  %v1511_v3 = vadd.f32 %v1506_v50, %v1498_v57  ;;  %v9463_v38 = vld [vmem:[%s12896_s7 + $0xa4] ss:$36 sps:$4 sm:$0xff]   ;;  %v9475_v48 = vld [vmem:[%s12896_s7 + $0x134] ss:$36 sps:$4 sm:$0xff]  }
 0x134   : > { %v1495_v5 = vsel %vm1490_vm5, %v1492_v42, %v1494_v59  ;;  %v1373_v6 = vpop.f32.mrb[15].mxu1  ;;  %v9464_v42 = vld [vmem:[%s12896_s7 + $0xa8] ss:$36 sps:$4 sm:$0xff]   ;;  %v9473_v50 = vld [vmem:[%s12896_s7 + $0x130] ss:$36 sps:$4 sm:$0xff]  }
 0x135   : > { %v1486_v8 = vadd.f32 %v1482_v63, %v1473_v62  ;;  %v1508_v9 = vsel %vm1503_vm6, %v1505_v46, %v1507_v0  ;;  %v9467_v46 = vld [vmem:[%s12896_s7 + $0xe8] ss:$36 sps:$4 sm:$0xff]   ;;  %v9476_v51 = vld [vmem:[%s12896_s7 + $0x138] ss:$36 sps:$4 sm:$0xff]   ;;  %v9482_v55 = vld [vmem:[%s12896_s7 + $0x180] ss:$36 sps:$4 sm:$0xff]  }
 0x136   : > { %v9481_v52 = vld [vmem:[%s12896_s7 + $0x17c] ss:$36 sps:$4 sm:$0xff]   ;;  %v9487_v56 = vld [vmem:[%s12896_s7 + $0x1c4] ss:$36 sps:$4 sm:$0xff]   ;;  %v9490_v57 = vld [vmem:[%s12896_s7 + $0x1cc] ss:$36 sps:$4 sm:$0xff]  }
 0x137   : > { %v1499_v10 = vadd.f32 %v1495_v5, %v1486_v8  ;;  %v9479_v54 = vld [vmem:[%s12896_s7 + $0x178] ss:$36 sps:$4 sm:$0xff]   ;;  %v9485_v58 = vld [vmem:[%s12896_s7 + $0x1c0] ss:$36 sps:$4 sm:$0xff]   ;;  %v9488_v59 = vld [vmem:[%s12896_s7 + $0x1c8] ss:$36 sps:$4 sm:$0xff]  }
 0x138   : > { %v9493_v60 = vld [vmem:[%s12896_s7 + $0x20c] ss:$36 sps:$4 sm:$0xff]   ;;  %v9496_v61 = vld [vmem:[%s12896_s7 + $0x214] ss:$36 sps:$4 sm:$0xff]   ;;  %v9497_v0 = vld [vmem:[%s12896_s7 + $0x20] ss:$36 sps:$4 sm:$0xff]  }
 0x139   : > { %v1512_v11 = vadd.f32 %v1508_v9, %v1499_v10  ;;  %v9491_v62 = vld [vmem:[%s12896_s7 + $0x208] ss:$36 sps:$4 sm:$0xff]   ;;  %v9494_v63 = vld [vmem:[%s12896_s7 + $0x210] ss:$36 sps:$4 sm:$0xff]   ;;  %v9500_v5 = vld [vmem:[%s12896_s7 + $0xf8] ss:$36 sps:$4 sm:$0xff]  }
 0x13a   : > { %v9498_v1 = vld [vmem:[%s12896_s7 + $0x68] ss:$36 sps:$4 sm:$0xff]   ;;  %v9501_v6 = vld [vmem:[%s12896_s7 + $0x140] ss:$36 sps:$4 sm:$0xff]   ;;  %v9503_v8 = vld [vmem:[%s12896_s7 + $0x1d0] ss:$36 sps:$4 sm:$0xff]  }
 0x13b   : > { %v9504_v9 = vld [vmem:[%s12896_s7 + $0x218] ss:$36 sps:$4 sm:$0xff]   ;;  %v9505_v10 = vld [vmem:[%s12898_s0] ss:$36 sps:$4 sm:$0xff]  }
 0x147   : > { %v9084_v16 = vpop.f32.mrb[16].mxu0 }
 0x148   : > { %v1514_v17 = vadd.f32 %v9084_v16, %v1512_v11  ;;  %v1409_v19 = vpop.f32.mrb[17].mxu0  ;;  %v9507_v11 = vld [vmem:[%s12898_s0 + $0x4] ss:$36 sps:$4 sm:$0xff]   ;;  %v9513_v16 = vld [vmem:[%s12898_s0 + $0x4c] ss:$36 sps:$4 sm:$0xff]  }
 0x149   : > { %v9085_v20 = vpop.f32.mrb[18].mxu0  ;;  %v9514_v19 = vld [vmem:[%s12898_s0 + $0x50] ss:$36 sps:$4 sm:$0xff]  }
 0x14a   : > { %v1521_v21 = vmul.f32 %v1519_v15, %v1514_v17  ;;  %v1411_v22 = vpop.f32.mrb[19].mxu0  ;;  %v9516_v17 = vld [vmem:[%s12898_s0 + $0x54] ss:$36 sps:$4 sm:$0xff]  }
 0x14b   : > { %v1513_v23 = vadd.f32 %v1511_v3, %v1411_v22  ;;  %v9499_v3 = vld [vmem:[%s12896_s7 + $0xb0] ss:$36 sps:$4 sm:$0xff]  }
 0x14c   : > { %v10768_v24 = vadd.f32 %v1525_v18, %v1521_v21  ;;  %v9519_v20 = vld [vmem:[%s12898_s0 + $0x94] ss:$36 sps:$4 sm:$0xff]   ;;  %v9522_v21 = vld [vmem:[%s12898_s0 + $0x9c] ss:$36 sps:$4 sm:$0xff]  }
 0x14d   : > { %v1520_v25 = vmul.f32 %v1519_v15, %v1513_v23  ;;  %v9510_v15 = vld [vmem:[%s12898_s0 + $0xc] ss:$36 sps:$4 sm:$0xff]   ;;  %v9520_v23 = vld [vmem:[%s12898_s0 + $0x98] ss:$36 sps:$4 sm:$0xff]  }
 0x14e   : > { %v1529_v26 = vmax.f32 %v10768_v24, 0.0  ;;  %v9517_v22 = vld [vmem:[%s12898_s0 + $0x90] ss:$36 sps:$4 sm:$0xff]  }
 0x14f   : > { %v10771_v27 = vadd.f32 %v1525_v18, %v1520_v25  ;;  %v9511_v18 = vld [vmem:[%s12898_s0 + $0x48] ss:$36 sps:$4 sm:$0xff]   ;;  %v9525_v25 = vld [vmem:[%s12898_s0 + $0xdc] ss:$36 sps:$4 sm:$0xff]   ;;  %v9657_v24 = vld [vmem:[%s12900_s6 + $0x10] ss:$36 sps:$4 sm:$0xff]  }
 0x150   : > { %1531 = vst [vmem:[#allocation2 + $0xc] sm:$0xff] %v1529_v26 }
 0x151   : > { %v1528_v28 = vmax.f32 %v10771_v27, 0.0 }
 0x153   : > { %1530 = vst [vmem:[#allocation2 + $0x4] sm:$0xff] %v1528_v28 }
 0x157   : > { %v1534_v40 = vld [vmem:[#allocation2 + $0x10] sm:$0xff] }
 0x158   : > { %v10814_v43 = vpack.c.bf16 %v1534_v40, %v1534_v40  ;;  %v9543_v40 = vld [vmem:[%s12898_s0 + $0x1b4] ss:$36 sps:$4 sm:$0xff]  }
 0x15a   : > { %v1533_v30 = vld [vmem:[#allocation2 + $0x8] sm:$0xff]  ;;  %v1532_v32 = vld [vmem:[#allocation2] sm:$0xff] }
 0x15b   : > { %v10784_v33 = vpack.c.bf16 %v1533_v30, %v1532_v32  ;;  %v9523_v30 = vld [vmem:[%s12898_s0 + $0xd8] ss:$36 sps:$4 sm:$0xff]   ;;  %v9531_v32 = vld [vmem:[%s12898_s0 + $0x124] ss:$36 sps:$4 sm:$0xff]  }
 0x15d   : > { %2018 = vmatmul.mubr.bf16.vlgmr.msra.gmra.mrb[16].mxu1 %v10784_v33  ;;  %2068 = vmatmul.mubr.bf16.vlgmr.msra.gmra.mrb[20].mxu0 %v10784_v33 }
 0x15e   : > { %2087 = vmatpush1.bf16.msra.mxu1 %v9449_v29  ;;  %2138 = vmatpush1.bf16.msra.mxu0 %v9452_v31  ;;  %v9528_v29 = vld [vmem:[%s12898_s0 + $0xe4] ss:$36 sps:$4 sm:$0xff]  }
 0x15f   : > { %2088 = vmatprep.subr.bf16.mxu1 %v9457_v34  ;;  %2139 = vmatprep.subr.bf16.mxu0 %v9460_v35  ;;  %v9526_v31 = vld [vmem:[%s12898_s0 + $0xe0] ss:$36 sps:$4 sm:$0xff]   ;;  %v9532_v35 = vld [vmem:[%s12898_s0 + $0x128] ss:$36 sps:$4 sm:$0xff]  }
 0x160   : > { %2027 = vmatprep.mubr.bf16.mxu1 %v10257_v2  ;;  %2077 = vmatprep.mubr.bf16.mxu0 %v10257_v2  ;;  %v9529_v34 = vld [vmem:[%s12898_s0 + $0x120] ss:$36 sps:$4 sm:$0xff]  }
 0x162   : > { %2089 = vmatpush1.bf16.msra.mxu1 %v9455_v36  ;;  %2140 = vmatpush1.bf16.msra.mxu0 %v9458_v37  ;;  %v9537_v36 = vld [vmem:[%s12898_s0 + $0x16c] ss:$36 sps:$4 sm:$0xff]   ;;  %v9540_v37 = vld [vmem:[%s12898_s0 + $0x174] ss:$36 sps:$4 sm:$0xff]  }
 0x163   : > { %2090 = vmatprep.subr.bf16.mxu1 %v9463_v38  ;;  %2141 = vmatprep.subr.bf16.mxu0 %v9466_v39  ;;  %v9535_v38 = vld [vmem:[%s12898_s0 + $0x168] ss:$36 sps:$4 sm:$0xff]   ;;  %v9538_v39 = vld [vmem:[%s12898_s0 + $0x170] ss:$36 sps:$4 sm:$0xff]  }
 0x165   : > { %2028 = vmatmul.mubr.bf16.gmra.mrb[20].mxu1 %v10814_v43  ;;  %2078 = vmatmul.mubr.bf16.gmra.mrb[24].mxu0 %v10814_v43 }
 0x166   : > { %2091 = vmatpush1.bf16.msra.mxu1 %v9461_v41  ;;  %2142 = vmatpush1.bf16.msra.mxu0 %v9464_v42  ;;  %v9546_v41 = vld [vmem:[%s12898_s0 + $0x1bc] ss:$36 sps:$4 sm:$0xff]   ;;  %v9541_v42 = vld [vmem:[%s12898_s0 + $0x1b0] ss:$36 sps:$4 sm:$0xff]  }
 0x167   : > { %2092 = vmatprep.subr.bf16.mxu1 %v9469_v44  ;;  %2143 = vmatprep.subr.bf16.mxu0 %v9472_v45  ;;  %v9549_v44 = vld [vmem:[%s12898_s0 + $0x1fc] ss:$36 sps:$4 sm:$0xff]   ;;  %v9552_v45 = vld [vmem:[%s12898_s0 + $0x204] ss:$36 sps:$4 sm:$0xff]  }
 0x168   : > { %2118 = vmatprep.mubr.bf16.mxu1 %v10257_v2  ;;  %2169 = vmatprep.mubr.bf16.mxu0 %v10257_v2 }
 0x16a   : > { %2093 = vmatpush1.bf16.msra.mxu1 %v9467_v46  ;;  %2144 = vmatpush1.bf16.msra.mxu0 %v9470_v47  ;;  %v9547_v46 = vld [vmem:[%s12898_s0 + $0x1f8] ss:$36 sps:$4 sm:$0xff]   ;;  %v9550_v47 = vld [vmem:[%s12898_s0 + $0x200] ss:$36 sps:$4 sm:$0xff]  }
 0x16b   : > { %2094 = vmatprep.subr.bf16.mxu1 %v9475_v48  ;;  %2145 = vmatprep.subr.bf16.mxu0 %v9478_v49  ;;  %v9555_v48 = vld [vmem:[%s12898_s0 + $0x14] ss:$36 sps:$4 sm:$0xff]   ;;  %v9558_v49 = vld [vmem:[%s12898_s0 + $0x1c] ss:$36 sps:$4 sm:$0xff]  }
 0x16e   : > { %2095 = vmatpush1.bf16.msra.mxu1 %v9473_v50  ;;  %2146 = vmatpush1.bf16.msra.mxu0 %v9476_v51 }
 0x16f   : > { %2096 = vmatprep.subr.bf16.mxu1 %v9481_v52  ;;  %2147 = vmatprep.subr.bf16.mxu0 %v9484_v53 }
 0x172   : > { %2097 = vmatpush1.bf16.msra.mxu1 %v9479_v54  ;;  %2148 = vmatpush1.bf16.msra.mxu0 %v9482_v55 }
 0x173   : > { %2098 = vmatprep.subr.bf16.mxu1 %v9487_v56  ;;  %2149 = vmatprep.subr.bf16.mxu0 %v9490_v57 }
 0x176   : > { %2099 = vmatpush1.bf16.msra.mxu1 %v9485_v58  ;;  %2150 = vmatpush1.bf16.msra.mxu0 %v9488_v59 }
 0x177   : > { %2100 = vmatprep.subr.bf16.mxu1 %v9493_v60  ;;  %2151 = vmatprep.subr.bf16.mxu0 %v9496_v61 }
 0x17a   : > { %2101 = vmatpush1.bf16.msra.mxu1 %v9491_v62  ;;  %2152 = vmatpush1.bf16.msra.mxu0 %v9494_v63 }
 0x17b   : > { %9086 = vmatprep.subr.bf16.mxu1 %v9497_v0  ;;  %2791 = vmatprep.subr.bf16.mxu0 %v9507_v11 }
 0x17d   : > { %2119 = vmatmul.mubr.bf16.vlgmr.msra.gmra.mrb[24].mxu1 %v10784_v33  ;;  %2170 = vmatmul.mubr.bf16.vlgmr.msra.gmra.mrb[28].mxu0 %v10784_v33 }
 0x17e   : > { %9087 = vmatpush3.bf16.msra.mxu1 %v9497_v0  ;;  %2128 = vmatprep.mubr.bf16.mxu1 %v10257_v2 }
 0x17f   : > { %9088 = vmatprep.subr.bf16.mxu1 %v9498_v1  ;;  %2179 = vmatprep.mubr.bf16.mxu0 %v10257_v2 }
 0x180   : > { %2792 = vmatpush1.bf16.msra.mxu0 %v9505_v10 }
 0x181   : > { %2793 = vmatprep.subr.bf16.mxu0 %v9513_v16 }
 0x182   : > { %9089 = vmatpush3.bf16.msra.mxu1 %v9498_v1 }
 0x183   : > { %9090 = vmatprep.subr.bf16.mxu1 %v9499_v3 }
 0x184   : > { %2794 = vmatpush1.bf16.msra.mxu0 %v9511_v18 }
 0x185   : > { %2129 = vmatmul.mubr.bf16.gmra.mrb[28].mxu1 %v10814_v43  ;;  %2180 = vmatmul.mubr.bf16.gmra.mrb[32].mxu0 %v10814_v43 }
 0x186   : > { %9091 = vmatpush3.bf16.msra.mxu1 %v9499_v3  ;;  %9102 = vmatprep.mubr.bf16.mxu1 %v10784_v33  ;;  %v9534_v33 = vld [vmem:[%s12898_s0 + $0x12c] ss:$36 sps:$4 sm:$0xff]  }
 0x187   : > { %9092 = vmatprep.subr.bf16.mxu1 %v9500_v5  ;;  %2823 = vmatprep.mubr.bf16.mxu0 %v10257_v2 }
 0x188   : > { %2795 = vmatprep.subr.bf16.mxu0 %v9519_v20 }
 0x189   : > { %2796 = vmatpush1.bf16.msra.mxu0 %v9517_v22 }
 0x18a   : > { %9093 = vmatpush3.bf16.msra.mxu1 %v9500_v5  ;;  %2797 = vmatprep.subr.bf16.mxu0 %v9525_v25 }
 0x18b   : > { %9094 = vmatprep.subr.bf16.mxu1 %v9501_v6 }
 0x18d   : > { %2798 = vmatpush1.bf16.msra.mxu0 %v9523_v30 }
 0x18e   : > { %9095 = vmatpush3.bf16.msra.mxu1 %v9501_v6  ;;  %2799 = vmatprep.subr.bf16.mxu0 %v9531_v32 }
 0x18f   : > { %9096 = vmatprep.subr.bf16.mxu1 %v9502_v7 }
 0x191   : > { %2800 = vmatpush1.bf16.msra.mxu0 %v9529_v34 }
 0x192   : > { %9097 = vmatpush3.bf16.msra.mxu1 %v9502_v7  ;;  %2801 = vmatprep.subr.bf16.mxu0 %v9537_v36 }
 0x193   : > { %9098 = vmatprep.subr.bf16.mxu1 %v9503_v8 }
 0x195   : > { %2802 = vmatpush1.bf16.msra.mxu0 %v9535_v38 }
 0x196   : > { %9099 = vmatpush3.bf16.msra.mxu1 %v9503_v8  ;;  %2803 = vmatprep.subr.bf16.mxu0 %v9543_v40 }
 0x197   : > { %9100 = vmatprep.subr.bf16.mxu1 %v9504_v9 }
 0x199   : > { %2804 = vmatpush1.bf16.msra.mxu0 %v9541_v42 }
 0x19a   : > { %9101 = vmatpush3.bf16.msra.mxu1 %v9504_v9  ;;  %2805 = vmatprep.subr.bf16.mxu0 %v9549_v44 }
 0x19b   : > { %2841 = vmatprep.subr.bf16.mxu1 %v9510_v15 }
 0x19d   : > { %9103 = vmatmul.mubr.bf16.vlgmr.msra.gmra.mrb[32].mxu1 %v10814_v43  ;;  %v9544_v43 = vld [vmem:[%s12898_s0 + $0x1b8] ss:$36 sps:$4 sm:$0xff]   ;;  %2806 = vmatpush1.bf16.msra.mxu0 %v9547_v46 }
 0x19e   : > { %2873 = vmatprep.mubr.bf16.mxu1 %v10257_v2  ;;  %2842 = vmatpush1.bf16.msra.mxu1 %v9508_v13 }
 0x19f   : > { %2843 = vmatprep.subr.bf16.mxu1 %v9516_v17  ;;  %2892 = vmatprep.subr.bf16.mxu0 %v9555_v48 }
 0x1a2   : > { %2844 = vmatpush1.bf16.msra.mxu1 %v9514_v19 }
 0x1a3   : > { %2845 = vmatprep.subr.bf16.mxu1 %v9522_v21 }
 0x1a6   : > { %2846 = vmatpush1.bf16.msra.mxu1 %v9520_v23 }
 0x1a7   : > { %2847 = vmatprep.subr.bf16.mxu1 %v9528_v29 }
 0x1aa   : > { %2848 = vmatpush1.bf16.msra.mxu1 %v9526_v31 }
 0x1ab   : > { %2849 = vmatprep.subr.bf16.mxu1 %v9534_v33 }
 0x1ae   : > { %2850 = vmatpush1.bf16.msra.mxu1 %v9532_v35 }
 0x1af   : > { %2851 = vmatprep.subr.bf16.mxu1 %v9540_v37 }
 0x1b2   : > { %2852 = vmatpush1.bf16.msra.mxu1 %v9538_v39 }
 0x1b3   : > { %2853 = vmatprep.subr.bf16.mxu1 %v9546_v41 }
 0x1b6   : > { %2854 = vmatpush1.bf16.msra.mxu1 %v9544_v43 }
 0x1b7   : > { %2855 = vmatprep.subr.bf16.mxu1 %v9552_v45 }
 0x1ba   : > { %2856 = vmatpush1.bf16.msra.mxu1 %v9550_v47 }
 0x1bb   : > { %2943 = vmatprep.subr.bf16.mxu1 %v9558_v49 }
 0x230   : > { %v2019_v50 = vpop.f32.mrb[16].mxu1  ;;  %v2069_v51 = vpop.f32.mrb[20].mxu0 }
 0x231   : > { %v2021_v52 = vpop.f32.mrb[17].mxu1  ;;  %v2071_v53 = vpop.f32.mrb[21].mxu0  ;;  %v2250_v56 = vrot.slane %v2069_v51, 2 }
 0x232   : > { %v2023_v54 = vpop.f32.mrb[18].mxu1  ;;  %v2073_v55 = vpop.f32.mrb[22].mxu0  ;;  %v2238_v60 = vrot.slane %v2021_v52, 1  ;;  %v2262_v61 = vrot.slane %v2071_v53, 3 }
 0x233   : > { %v2251_v57 = vrot.slane %v2073_v55, 2  ;;  %v2025_v58 = vpop.f32.mrb[19].mxu1  ;;  %v2075_v59 = vpop.f32.mrb[23].mxu0 }
 0x234   : > { %v2239_v62 = vrot.slane %v2025_v58, 1  ;;  %v2263_v63 = vrot.slane %v2075_v59, 3 }
 0x235   : > { %v2252_v0 = vsel %vm1438_vm1, %v2250_v56, %v2251_v57 }
 0x236   : > { %v2240_v1 = vsel %vm1425_vm0, %v2238_v60, %v2239_v62  ;;  %v2264_v3 = vsel %vm1451_vm2, %v2262_v61, %v2263_v63 }
 0x237   : > { %v2245_v5 = vadd.f32 %v2240_v1, %v2019_v50 }
 0x238   : > { %v2029_v6 = vpop.f32.mrb[20].mxu1  ;;  %v2079_v7 = vpop.f32.mrb[24].mxu0 }
 0x239   : > { %v2257_v8 = vadd.f32 %v2252_v0, %v2245_v5  ;;  %v2253_v9 = vrot.slane %v2079_v7, 2  ;;  %v2030_v10 = vpop.f32.mrb[21].mxu1  ;;  %v2081_v11 = vpop.f32.mrb[25].mxu0 }
 0x23a   : > { %v2241_v13 = vrot.slane %v2030_v10, 1  ;;  %v2265_v15 = vrot.slane %v2081_v11, 3  ;;  %v2032_v16 = vpop.f32.mrb[22].mxu1  ;;  %v2083_v17 = vpop.f32.mrb[26].mxu0 }
 0x23b   : > { %v2269_v18 = vadd.f32 %v2264_v3, %v2257_v8  ;;  %v2254_v19 = vsel %vm1438_vm1, %v2251_v57, %v2253_v9  ;;  %v2033_v20 = vpop.f32.mrb[23].mxu1  ;;  %v2084_v21 = vpop.f32.mrb[27].mxu0 }
 0x23c   : > { %v2242_v22 = vsel %vm1425_vm0, %v2239_v62, %v2241_v13  ;;  %v2266_v23 = vsel %vm1451_vm2, %v2263_v63, %v2265_v15  ;;  %v2321_v15 = vld [vmem:[%s12899_s26] sm:$0x3] }
 0x23d   : > { %v2246_v25 = vadd.f32 %v2242_v22, %v2023_v54  ;;  %v2325_v16 = vrot.slane %v2321_v15, %v10759_v12 }
 0x23f   : > { %v2258_v29 = vadd.f32 %v2254_v19, %v2246_v25  ;;  %v2331_v19 = vrot.slane %v2321_v15, %v10764_v14  ;;  %v9607_v15 = vld [vmem:[%s12898_s0 + $0x1d0] ss:$36 sps:$4 sm:$0xff]  }
 0x241   : > { %v2270_v30 = vadd.f32 %v2266_v23, %v2258_v29 }
 0x250   : > { %v2120_v31 = vpop.f32.mrb[24].mxu1  ;;  %v2171_v32 = vpop.f32.mrb[28].mxu0 }
 0x251   : > { %v2122_v33 = vpop.f32.mrb[25].mxu1  ;;  %v2173_v34 = vpop.f32.mrb[29].mxu0  ;;  %v2274_v37 = vrot.slane %v2120_v31, 4  ;;  %v2298_v38 = vrot.slane %v2171_v32, 6 }
 0x252   : > { %v2124_v35 = vpop.f32.mrb[26].mxu1  ;;  %v2175_v36 = vpop.f32.mrb[30].mxu0  ;;  %v2286_v43 = vrot.slane %v2122_v33, 5  ;;  %v2310_v44 = vrot.slane %v2173_v34, 7  ;;  %v9553_v34 = vld [vmem:[%s12898_s0 + $0x10] ss:$36 sps:$4 sm:$0xff]  }
 0x253   : > { %v2275_v39 = vrot.slane %v2124_v35, 4  ;;  %v2299_v40 = vrot.slane %v2175_v36, 6  ;;  %v2126_v41 = vpop.f32.mrb[27].mxu1  ;;  %v2177_v42 = vpop.f32.mrb[31].mxu0  ;;  %v9556_v35 = vld [vmem:[%s12898_s0 + $0x18] ss:$36 sps:$4 sm:$0xff]  }
 0x254   : > { %v2287_v45 = vrot.slane %v2126_v41, 5  ;;  %v2311_v46 = vrot.slane %v2177_v42, 7  ;;  %v9559_v41 = vld [vmem:[%s12898_s0 + $0x58] ss:$36 sps:$4 sm:$0xff]   ;;  %v9562_v42 = vld [vmem:[%s12898_s0 + $0x60] ss:$36 sps:$4 sm:$0xff]  }
 0x255   : > { %v2276_v47 = vsel %vm1464_vm3, %v2274_v37, %v2275_v39  ;;  %v2300_v48 = vsel %vm1490_vm5, %v2298_v38, %v2299_v40 }
 0x256   : > { %v2281_v49 = vadd.f32 %v2276_v47, %v2269_v18  ;;  %v2288_v50 = vsel %vm1477_vm4, %v2286_v43, %v2287_v45  ;;  %v2312_v51 = vsel %vm1503_vm6, %v2310_v44, %v2311_v46  ;;  %v9567_v43 = vld [vmem:[%s12898_s0 + $0xa4] ss:$36 sps:$4 sm:$0xff]   ;;  %v9570_v44 = vld [vmem:[%s12898_s0 + $0xac] ss:$36 sps:$4 sm:$0xff]  }
 0x257   : > { %v9568_v47 = vld [vmem:[%s12898_s0 + $0xa8] ss:$36 sps:$4 sm:$0xff]  }
 0x258   : > { %v2293_v52 = vadd.f32 %v2288_v50, %v2281_v49  ;;  %v2130_v53 = vpop.f32.mrb[28].mxu1  ;;  %v2181_v54 = vpop.f32.mrb[32].mxu0  ;;  %v9573_v49 = vld [vmem:[%s12898_s0 + $0xec] ss:$36 sps:$4 sm:$0xff]   ;;  %v9576_v50 = vld [vmem:[%s12898_s0 + $0xf4] ss:$36 sps:$4 sm:$0xff]  }
 0x259   : > { %v2277_v55 = vrot.slane %v2130_v53, 4  ;;  %v2301_v56 = vrot.slane %v2181_v54, 6  ;;  %v2132_v57 = vpop.f32.mrb[29].mxu1  ;;  %v2183_v58 = vpop.f32.mrb[33].mxu0  ;;  %v9579_v53 = vld [vmem:[%s12898_s0 + $0x134] ss:$36 sps:$4 sm:$0xff]  }
 0x25a   : > { %v2289_v59 = vrot.slane %v2132_v57, 5  ;;  %v2313_v60 = vrot.slane %v2183_v58, 7  ;;  %v2134_v61 = vpop.f32.mrb[30].mxu1  ;;  %v2185_v62 = vpop.f32.mrb[34].mxu0  ;;  %v2305_v63 = vadd.f32 %v2300_v48, %v2293_v52  ;;  %v9574_v52 = vld [vmem:[%s12898_s0 + $0xf0] ss:$36 sps:$4 sm:$0xff]  }
 0x25b   : > { %v2278_v0 = vsel %vm1464_vm3, %v2275_v39, %v2277_v55  ;;  %v2302_v1 = vsel %vm1490_vm5, %v2299_v40, %v2301_v56  ;;  %v2135_v3 = vpop.f32.mrb[31].mxu1  ;;  %v2186_v5 = vpop.f32.mrb[35].mxu0  ;;  %v9561_v39 = vld [vmem:[%s12898_s0 + $0x5c] ss:$36 sps:$4 sm:$0xff]   ;;  %v9564_v40 = vld [vmem:[%s12898_s0 + $0x64] ss:$36 sps:$4 sm:$0xff]  }
 0x25c   : > { %v2282_v6 = vadd.f32 %v2278_v0, %v2270_v30  ;;  %v2290_v7 = vsel %vm1477_vm4, %v2287_v45, %v2289_v59  ;;  %v2314_v8 = vsel %vm1503_vm6, %v2311_v46, %v2313_v60  ;;  %v2317_v9 = vadd.f32 %v2312_v51, %v2305_v63  ;;  %v9565_v46 = vld [vmem:[%s12898_s0 + $0xa0] ss:$36 sps:$4 sm:$0xff]   ;;  %v9571_v51 = vld [vmem:[%s12898_s0 + $0xe8] ss:$36 sps:$4 sm:$0xff]   ;;  %v9577_v55 = vld [vmem:[%s12898_s0 + $0x130] ss:$36 sps:$4 sm:$0xff]  }
 0x25d   : > { %v9582_v54 = vld [vmem:[%s12898_s0 + $0x13c] ss:$36 sps:$4 sm:$0xff]   ;;  %v9588_v58 = vld [vmem:[%s12898_s0 + $0x184] ss:$36 sps:$4 sm:$0xff]   ;;  %v9594_v62 = vld [vmem:[%s12898_s0 + $0x1cc] ss:$36 sps:$4 sm:$0xff]  }
 0x25e   : > { %v2294_v10 = vadd.f32 %v2290_v7, %v2282_v6  ;;  %v9580_v56 = vld [vmem:[%s12898_s0 + $0x138] ss:$36 sps:$4 sm:$0xff]   ;;  %v9586_v60 = vld [vmem:[%s12898_s0 + $0x180] ss:$36 sps:$4 sm:$0xff]   ;;  %v9592_v0 = vld [vmem:[%s12898_s0 + $0x1c8] ss:$36 sps:$4 sm:$0xff]  }
 0x25f   : > { %v9585_v57 = vld [vmem:[%s12898_s0 + $0x17c] ss:$36 sps:$4 sm:$0xff]   ;;  %v9591_v61 = vld [vmem:[%s12898_s0 + $0x1c4] ss:$36 sps:$4 sm:$0xff]   ;;  %v9600_v3 = vld [vmem:[%s12898_s0 + $0x214] ss:$36 sps:$4 sm:$0xff]  }
 0x260   : > { %v2306_v11 = vadd.f32 %v2302_v1, %v2294_v10  ;;  %v9583_v59 = vld [vmem:[%s12898_s0 + $0x178] ss:$36 sps:$4 sm:$0xff]   ;;  %v9589_v63 = vld [vmem:[%s12898_s0 + $0x1c0] ss:$36 sps:$4 sm:$0xff]   ;;  %v9597_v1 = vld [vmem:[%s12898_s0 + $0x20c] ss:$36 sps:$4 sm:$0xff]  }
 0x261   : > { %v9595_v5 = vld [vmem:[%s12898_s0 + $0x208] ss:$36 sps:$4 sm:$0xff]   ;;  %v9598_v6 = vld [vmem:[%s12898_s0 + $0x210] ss:$36 sps:$4 sm:$0xff]   ;;  %v9601_v7 = vld [vmem:[%s12898_s0 + $0x20] ss:$36 sps:$4 sm:$0xff]  }
 0x262   : > { %v2318_v13 = vadd.f32 %v2314_v8, %v2306_v11  ;;  %v9602_v8 = vld [vmem:[%s12898_s0 + $0x68] ss:$36 sps:$4 sm:$0xff]   ;;  %v9604_v10 = vld [vmem:[%s12898_s0 + $0xf8] ss:$36 sps:$4 sm:$0xff]   ;;  %v9605_v11 = vld [vmem:[%s12898_s0 + $0x140] ss:$36 sps:$4 sm:$0xff]  }
 0x270   : > { %v9104_v17 = vpop.f32.mrb[32].mxu1 }
 0x271   : > { %v2320_v18 = vadd.f32 %v9104_v17, %v2318_v13  ;;  %v2222_v20 = vpop.f32.mrb[33].mxu1  ;;  %v9606_v13 = vld [vmem:[%s12898_s0 + $0x188] ss:$36 sps:$4 sm:$0xff]   ;;  %v9609_v17 = vld [vmem:[%s12900_s6] ss:$36 sps:$4 sm:$0xff]  }
 0x272   : > { %v9105_v21 = vpop.f32.mrb[34].mxu1  ;;  %v9614_v20 = vld [vmem:[%s12900_s6 + $0xc] ss:$36 sps:$4 sm:$0xff]  }
 0x273   : > { %v2327_v22 = vmul.f32 %v2325_v16, %v2320_v18  ;;  %v2224_v23 = vpop.f32.mrb[35].mxu1  ;;  %v9611_v18 = vld [vmem:[%s12900_s6 + $0x4] ss:$36 sps:$4 sm:$0xff]   ;;  %v9617_v21 = vld [vmem:[%s12900_s6 + $0x4c] ss:$36 sps:$4 sm:$0xff]  }
 0x274   : > { %v2319_v25 = vadd.f32 %v2317_v9, %v2224_v23  ;;  %v9603_v9 = vld [vmem:[%s12898_s0 + $0xb0] ss:$36 sps:$4 sm:$0xff]   ;;  %v9615_v23 = vld [vmem:[%s12900_s6 + $0x48] ss:$36 sps:$4 sm:$0xff]  }
 0x275   : > { %v2333_v29 = vadd.f32 %v2331_v19, %v2327_v22  ;;  %v9620_v22 = vld [vmem:[%s12900_s6 + $0x54] ss:$36 sps:$4 sm:$0xff]  }
 0x276   : > { %v2326_v30 = vmul.f32 %v2325_v16, %v2319_v25  ;;  %v9608_v16 = vld [vmem:[%s12898_s0 + $0x218] ss:$36 sps:$4 sm:$0xff]   ;;  %v9618_v25 = vld [vmem:[%s12900_s6 + $0x50] ss:$36 sps:$4 sm:$0xff]  }
 0x277   : > { %v2335_v31 = vmax.f32 %v2333_v29, 0.0  ;;  %v9623_v29 = vld [vmem:[%s12900_s6 + $0x94] ss:$36 sps:$4 sm:$0xff]  }
 0x278   : > { %v2332_v32 = vadd.f32 %v2331_v19, %v2326_v30  ;;  %v9612_v19 = vld [vmem:[%s12900_s6 + $0x8] ss:$36 sps:$4 sm:$0xff]   ;;  %v9626_v30 = vld [vmem:[%s12900_s6 + $0x9c] ss:$36 sps:$4 sm:$0xff]  }
 0x279   : > { %2337 = vst [vmem:[#allocation2 + $0xc] sm:$0xff] %v2335_v31  ;;  %v9621_v31 = vld [vmem:[%s12900_s6 + $0x90] ss:$36 sps:$4 sm:$0xff]  }
 0x27a   : > { %v2334_v33 = vmax.f32 %v2332_v32, 0.0  ;;  %v9624_v32 = vld [vmem:[%s12900_s6 + $0x98] ss:$36 sps:$4 sm:$0xff]  }
 0x27c   : > { %2336 = vst [vmem:[#allocation2 + $0x4] sm:$0xff] %v2334_v33  ;;  %v9629_v33 = vld [vmem:[%s12900_s6 + $0xdc] ss:$36 sps:$4 sm:$0xff]  }
 0x280   : > { %v2340_v45 = vld [vmem:[#allocation2 + $0x10] sm:$0xff] }
 0x281   : > { %v11071_v48 = vpack.c.bf16 %v2340_v45, %v2340_v45  ;;  %v9647_v45 = vld [vmem:[%s12900_s6 + $0x1b4] ss:$36 sps:$4 sm:$0xff]  }
 0x283   : > { %v2338_v36 = vld [vmem:[#allocation2] sm:$0xff]  ;;  %v2339_v37 = vld [vmem:[#allocation2 + $0x8] sm:$0xff] }
 0x284   : > { %v11041_v38 = vpack.c.bf16 %v2339_v37, %v2338_v36  ;;  %v9630_v36 = vld [vmem:[%s12900_s6 + $0xe0] ss:$36 sps:$4 sm:$0xff]  }
 0x285   : > { %v9635_v37 = vld [vmem:[%s12900_s6 + $0x124] ss:$36 sps:$4 sm:$0xff]  }
 0x286   : > { %2824 = vmatmul.mubr.bf16.vlgmr.msra.gmra.mrb[36].mxu0 %v11041_v38  ;;  %2874 = vmatmul.mubr.bf16.vlgmr.msra.gmra.mrb[36].mxu1 %v11041_v38 }
 0x287   : > { %2893 = vmatpush1.bf16.msra.mxu0 %v9553_v34  ;;  %2944 = vmatpush1.bf16.msra.mxu1 %v9556_v35  ;;  %v9632_v34 = vld [vmem:[%s12900_s6 + $0xe4] ss:$36 sps:$4 sm:$0xff]   ;;  %v9627_v35 = vld [vmem:[%s12900_s6 + $0xd8] ss:$36 sps:$4 sm:$0xff]  }
 0x288   : > { %2894 = vmatprep.subr.bf16.mxu0 %v9561_v39  ;;  %2945 = vmatprep.subr.bf16.mxu1 %v9564_v40  ;;  %v9633_v39 = vld [vmem:[%s12900_s6 + $0x120] ss:$36 sps:$4 sm:$0xff]   ;;  %v9636_v40 = vld [vmem:[%s12900_s6 + $0x128] ss:$36 sps:$4 sm:$0xff]  }
 0x289   : > { %2833 = vmatprep.mubr.bf16.mxu0 %v10257_v2  ;;  %2883 = vmatprep.mubr.bf16.mxu1 %v10257_v2 }
 0x28b   : > { %2895 = vmatpush1.bf16.msra.mxu0 %v9559_v41  ;;  %2946 = vmatpush1.bf16.msra.mxu1 %v9562_v42  ;;  %v9641_v41 = vld [vmem:[%s12900_s6 + $0x16c] ss:$36 sps:$4 sm:$0xff]   ;;  %v9644_v42 = vld [vmem:[%s12900_s6 + $0x174] ss:$36 sps:$4 sm:$0xff]  }
 0x28c   : > { %2896 = vmatprep.subr.bf16.mxu0 %v9567_v43  ;;  %2947 = vmatprep.subr.bf16.mxu1 %v9570_v44  ;;  %v9639_v43 = vld [vmem:[%s12900_s6 + $0x168] ss:$36 sps:$4 sm:$0xff]   ;;  %v9642_v44 = vld [vmem:[%s12900_s6 + $0x170] ss:$36 sps:$4 sm:$0xff]  }
 0x28e   : > { %2834 = vmatmul.mubr.bf16.gmra.mrb[40].mxu0 %v11071_v48  ;;  %2884 = vmatmul.mubr.bf16.gmra.mrb[40].mxu1 %v11071_v48 }
 0x28f   : > { %2897 = vmatpush1.bf16.msra.mxu0 %v9565_v46  ;;  %2948 = vmatpush1.bf16.msra.mxu1 %v9568_v47  ;;  %v9650_v46 = vld [vmem:[%s12900_s6 + $0x1bc] ss:$36 sps:$4 sm:$0xff]   ;;  %v9645_v47 = vld [vmem:[%s12900_s6 + $0x1b0] ss:$36 sps:$4 sm:$0xff]  }
 0x290   : > { %2898 = vmatprep.subr.bf16.mxu0 %v9573_v49  ;;  %2949 = vmatprep.subr.bf16.mxu1 %v9576_v50  ;;  %v9653_v49 = vld [vmem:[%s12900_s6 + $0x1fc] ss:$36 sps:$4 sm:$0xff]   ;;  %v9656_v50 = vld [vmem:[%s12900_s6 + $0x204] ss:$36 sps:$4 sm:$0xff]  }
 0x291   : > { %2924 = vmatprep.mubr.bf16.mxu0 %v10257_v2  ;;  %2975 = vmatprep.mubr.bf16.mxu1 %v10257_v2 }
 0x293   : > { %2899 = vmatpush1.bf16.msra.mxu0 %v9571_v51  ;;  %2950 = vmatpush1.bf16.msra.mxu1 %v9574_v52  ;;  %v9651_v51 = vld [vmem:[%s12900_s6 + $0x1f8] ss:$36 sps:$4 sm:$0xff]   ;;  %v9654_v52 = vld [vmem:[%s12900_s6 + $0x200] ss:$36 sps:$4 sm:$0xff]  }
 0x294   : > { %2900 = vmatprep.subr.bf16.mxu0 %v9579_v53  ;;  %2951 = vmatprep.subr.bf16.mxu1 %v9582_v54  ;;  %v9659_v53 = vld [vmem:[%s12900_s6 + $0x14] ss:$36 sps:$4 sm:$0xff]   ;;  %v9662_v54 = vld [vmem:[%s12900_s6 + $0x1c] ss:$36 sps:$4 sm:$0xff]  }
 0x297   : > { %2901 = vmatpush1.bf16.msra.mxu0 %v9577_v55  ;;  %2952 = vmatpush1.bf16.msra.mxu1 %v9580_v56 }
 0x298   : > { %2902 = vmatprep.subr.bf16.mxu0 %v9585_v57  ;;  %2953 = vmatprep.subr.bf16.mxu1 %v9588_v58 }
 0x29b   : > { %2903 = vmatpush1.bf16.msra.mxu0 %v9583_v59  ;;  %2954 = vmatpush1.bf16.msra.mxu1 %v9586_v60 }
 0x29c   : > { %2904 = vmatprep.subr.bf16.mxu0 %v9591_v61  ;;  %2955 = vmatprep.subr.bf16.mxu1 %v9594_v62 }
 0x29f   : > { %2905 = vmatpush1.bf16.msra.mxu0 %v9589_v63  ;;  %2956 = vmatpush1.bf16.msra.mxu1 %v9592_v0 }
 0x2a0   : > { %2906 = vmatprep.subr.bf16.mxu0 %v9597_v1  ;;  %2957 = vmatprep.subr.bf16.mxu1 %v9600_v3 }
 0x2a3   : > { %2907 = vmatpush1.bf16.msra.mxu0 %v9595_v5  ;;  %2958 = vmatpush1.bf16.msra.mxu1 %v9598_v6 }
 0x2a4   : > { %9106 = vmatprep.subr.bf16.mxu0 %v9601_v7  ;;  %3599 = vmatprep.subr.bf16.mxu1 %v9611_v18 }
 0x2a6   : > { %2925 = vmatmul.mubr.bf16.vlgmr.msra.gmra.mrb[44].mxu0 %v11041_v38  ;;  %2976 = vmatmul.mubr.bf16.vlgmr.msra.gmra.mrb[44].mxu1 %v11041_v38 }
 0x2a7   : > { %9107 = vmatpush3.bf16.msra.mxu0 %v9601_v7  ;;  %2934 = vmatprep.mubr.bf16.mxu0 %v10257_v2 }
 0x2a8   : > { %9108 = vmatprep.subr.bf16.mxu0 %v9602_v8  ;;  %2985 = vmatprep.mubr.bf16.mxu1 %v10257_v2 }
 0x2a9   : > { %3600 = vmatpush1.bf16.msra.mxu1 %v9609_v17 }
 0x2aa   : > { %3601 = vmatprep.subr.bf16.mxu1 %v9617_v21 }
 0x2ab   : > { %9109 = vmatpush3.bf16.msra.mxu0 %v9602_v8 }
 0x2ac   : > { %9110 = vmatprep.subr.bf16.mxu0 %v9603_v9 }
 0x2ad   : > { %3602 = vmatpush1.bf16.msra.mxu1 %v9615_v23 }
 0x2ae   : > { %2935 = vmatmul.mubr.bf16.gmra.mrb[48].mxu0 %v11071_v48  ;;  %2986 = vmatmul.mubr.bf16.gmra.mrb[48].mxu1 %v11071_v48 }
 0x2af   : > { %9111 = vmatpush3.bf16.msra.mxu0 %v9603_v9  ;;  %9122 = vmatprep.mubr.bf16.mxu0 %v11041_v38  ;;  %v9638_v38 = vld [vmem:[%s12900_s6 + $0x12c] ss:$36 sps:$4 sm:$0xff]  }
 0x2b0   : > { %9112 = vmatprep.subr.bf16.mxu0 %v9604_v10  ;;  %3631 = vmatprep.mubr.bf16.mxu1 %v10257_v2 }
 0x2b1   : > { %3603 = vmatprep.subr.bf16.mxu1 %v9623_v29 }
 0x2b2   : > { %3604 = vmatpush1.bf16.msra.mxu1 %v9621_v31 }
 0x2b3   : > { %9113 = vmatpush3.bf16.msra.mxu0 %v9604_v10  ;;  %3605 = vmatprep.subr.bf16.mxu1 %v9629_v33 }
 0x2b4   : > { %9114 = vmatprep.subr.bf16.mxu0 %v9605_v11 }
 0x2b6   : > { %3606 = vmatpush1.bf16.msra.mxu1 %v9627_v35 }
 0x2b7   : > { %9115 = vmatpush3.bf16.msra.mxu0 %v9605_v11  ;;  %3607 = vmatprep.subr.bf16.mxu1 %v9635_v37 }
 0x2b8   : > { %9116 = vmatprep.subr.bf16.mxu0 %v9606_v13 }
 0x2ba   : > { %3608 = vmatpush1.bf16.msra.mxu1 %v9633_v39 }
 0x2bb   : > { %9117 = vmatpush3.bf16.msra.mxu0 %v9606_v13  ;;  %3609 = vmatprep.subr.bf16.mxu1 %v9641_v41 }
 0x2bc   : > { %9118 = vmatprep.subr.bf16.mxu0 %v9607_v15 }
 0x2be   : > { %3610 = vmatpush1.bf16.msra.mxu1 %v9639_v43 }
 0x2bf   : > { %9119 = vmatpush3.bf16.msra.mxu0 %v9607_v15  ;;  %3611 = vmatprep.subr.bf16.mxu1 %v9647_v45 }
 0x2c0   : > { %9120 = vmatprep.subr.bf16.mxu0 %v9608_v16 }
 0x2c2   : > { %3612 = vmatpush1.bf16.msra.mxu1 %v9645_v47 }
 0x2c3   : > { %9121 = vmatpush3.bf16.msra.mxu0 %v9608_v16  ;;  %3613 = vmatprep.subr.bf16.mxu1 %v9653_v49 }
 0x2c4   : > { %3649 = vmatprep.subr.bf16.mxu0 %v9614_v20 }
 0x2c6   : > { %9123 = vmatmul.mubr.bf16.vlgmr.msra.gmra.mrb[52].mxu0 %v11071_v48  ;;  %v9648_v48 = vld [vmem:[%s12900_s6 + $0x1b8] ss:$36 sps:$4 sm:$0xff]   ;;  %3614 = vmatpush1.bf16.msra.mxu1 %v9651_v51 }
 0x2c7   : > { %3681 = vmatprep.mubr.bf16.mxu0 %v10257_v2  ;;  %3650 = vmatpush1.bf16.msra.mxu0 %v9612_v19 }
 0x2c8   : > { %3651 = vmatprep.subr.bf16.mxu0 %v9620_v22  ;;  %3700 = vmatprep.subr.bf16.mxu1 %v9659_v53 }
 0x2cb   : > { %3652 = vmatpush1.bf16.msra.mxu0 %v9618_v25 }
 0x2cc   : > { %3653 = vmatprep.subr.bf16.mxu0 %v9626_v30 }
 0x2cf   : > { %3654 = vmatpush1.bf16.msra.mxu0 %v9624_v32 }
 0x2d0   : > { %3655 = vmatprep.subr.bf16.mxu0 %v9632_v34 }
 0x2d3   : > { %3656 = vmatpush1.bf16.msra.mxu0 %v9630_v36 }
 0x2d4   : > { %3657 = vmatprep.subr.bf16.mxu0 %v9638_v38 }
 0x2d7   : > { %3658 = vmatpush1.bf16.msra.mxu0 %v9636_v40 }
 0x2d8   : > { %3659 = vmatprep.subr.bf16.mxu0 %v9644_v42 }
 0x2db   : > { %3660 = vmatpush1.bf16.msra.mxu0 %v9642_v44 }
 0x2dc   : > { %3661 = vmatprep.subr.bf16.mxu0 %v9650_v46 }
 0x2df   : > { %3662 = vmatpush1.bf16.msra.mxu0 %v9648_v48 }
 0x2e0   : > { %3663 = vmatprep.subr.bf16.mxu0 %v9656_v50 }
 0x2e3   : > { %3664 = vmatpush1.bf16.msra.mxu0 %v9654_v52 }
 0x2e4   : > { %3751 = vmatprep.subr.bf16.mxu0 %v9662_v54 }
 0x359   : > { %v2825_v55 = vpop.f32.mrb[36].mxu0  ;;  %v2875_v56 = vpop.f32.mrb[36].mxu1 }
 0x35a   : > { %v2827_v57 = vpop.f32.mrb[37].mxu0  ;;  %v2877_v58 = vpop.f32.mrb[37].mxu1  ;;  %v3056_v61 = vrot.slane %v2875_v56, 2 }
 0x35b   : > { %v2829_v59 = vpop.f32.mrb[38].mxu0  ;;  %v2879_v60 = vpop.f32.mrb[38].mxu1  ;;  %v3044_v1 = vrot.slane %v2827_v57, 1  ;;  %v3068_v3 = vrot.slane %v2877_v58, 3 }
 0x35c   : > { %v3057_v62 = vrot.slane %v2879_v60, 2  ;;  %v2831_v63 = vpop.f32.mrb[39].mxu0  ;;  %v2881_v0 = vpop.f32.mrb[39].mxu1 }
 0x35d   : > { %v3045_v5 = vrot.slane %v2831_v63, 1  ;;  %v3069_v6 = vrot.slane %v2881_v0, 3 }
 0x35e   : > { %v3058_v7 = vsel %vm1438_vm1, %v3056_v61, %v3057_v62 }
 0x35f   : > { %v3046_v8 = vsel %vm1425_vm0, %v3044_v1, %v3045_v5  ;;  %v3070_v9 = vsel %vm1451_vm2, %v3068_v3, %v3069_v6 }
 0x360   : > { %v3051_v10 = vadd.f32 %v3046_v8, %v2825_v55 }
 0x361   : > { %v2835_v11 = vpop.f32.mrb[40].mxu0  ;;  %v2885_v13 = vpop.f32.mrb[40].mxu1 }
 0x362   : > { %v3063_v15 = vadd.f32 %v3058_v7, %v3051_v10  ;;  %v3059_v16 = vrot.slane %v2885_v13, 2  ;;  %v2836_v17 = vpop.f32.mrb[41].mxu0  ;;  %v2887_v18 = vpop.f32.mrb[41].mxu1 }
 0x363   : > { %v3047_v19 = vrot.slane %v2836_v17, 1  ;;  %v3071_v20 = vrot.slane %v2887_v18, 3  ;;  %v2838_v21 = vpop.f32.mrb[42].mxu0  ;;  %v2889_v22 = vpop.f32.mrb[42].mxu1 }
 0x364   : > { %v3075_v23 = vadd.f32 %v3070_v9, %v3063_v15  ;;  %v3060_v25 = vsel %vm1438_vm1, %v3057_v62, %v3059_v16  ;;  %v2839_v29 = vpop.f32.mrb[43].mxu0  ;;  %v2890_v30 = vpop.f32.mrb[43].mxu1 }
 0x365   : > { %v3048_v31 = vsel %vm1425_vm0, %v3045_v5, %v3047_v19  ;;  %v3072_v32 = vsel %vm1451_vm2, %v3069_v6, %v3071_v20  ;;  %v3127_v20 = vld [vmem:[%s12901_s28] sm:$0x3] }
 0x366   : > { %v3052_v33 = vadd.f32 %v3048_v31, %v2829_v59  ;;  %v3131_v21 = vrot.slane %v3127_v20, %v10759_v12 }
 0x368   : > { %v3064_v34 = vadd.f32 %v3060_v25, %v3052_v33  ;;  %v3137_v25 = vrot.slane %v3127_v20, %v10764_v14  ;;  %v9713_v20 = vld [vmem:[%s12863_s9] ss:$36 sps:$4 sm:$0xff]  }
 0x36a   : > { %v3076_v35 = vadd.f32 %v3072_v32, %v3064_v34 }
 0x379   : > { %v2926_v36 = vpop.f32.mrb[44].mxu0  ;;  %v2977_v37 = vpop.f32.mrb[44].mxu1 }
 0x37a   : > { %v2928_v38 = vpop.f32.mrb[45].mxu0  ;;  %v2979_v39 = vpop.f32.mrb[45].mxu1  ;;  %v3080_v42 = vrot.slane %v2926_v36, 4  ;;  %v3104_v43 = vrot.slane %v2977_v37, 6 }
 0x37b   : > { %v2930_v40 = vpop.f32.mrb[46].mxu0  ;;  %v2981_v41 = vpop.f32.mrb[46].mxu1  ;;  %v3092_v48 = vrot.slane %v2928_v38, 5  ;;  %v3116_v49 = vrot.slane %v2979_v39, 7 }
 0x37c   : > { %v3081_v44 = vrot.slane %v2930_v40, 4  ;;  %v3105_v45 = vrot.slane %v2981_v41, 6  ;;  %v2932_v46 = vpop.f32.mrb[47].mxu0  ;;  %v2983_v47 = vpop.f32.mrb[47].mxu1 }
 0x37d   : > { %v3093_v50 = vrot.slane %v2932_v46, 5  ;;  %v3117_v51 = vrot.slane %v2983_v47, 7  ;;  %v9671_v46 = vld [vmem:[%s12900_s6 + $0xa4] ss:$36 sps:$4 sm:$0xff]   ;;  %v9674_v47 = vld [vmem:[%s12900_s6 + $0xac] ss:$36 sps:$4 sm:$0xff]  }
 0x37e   : > { %v3082_v52 = vsel %vm1464_vm3, %v3080_v42, %v3081_v44  ;;  %v3106_v53 = vsel %vm1490_vm5, %v3104_v43, %v3105_v45  ;;  %v9665_v42 = vld [vmem:[%s12900_s6 + $0x5c] ss:$36 sps:$4 sm:$0xff]   ;;  %v9668_v43 = vld [vmem:[%s12900_s6 + $0x64] ss:$36 sps:$4 sm:$0xff]  }
 0x37f   : > { %v3087_v54 = vadd.f32 %v3082_v52, %v3075_v23  ;;  %v3094_v55 = vsel %vm1477_vm4, %v3092_v48, %v3093_v50  ;;  %v3118_v56 = vsel %vm1503_vm6, %v3116_v49, %v3117_v51  ;;  %v9669_v49 = vld [vmem:[%s12900_s6 + $0xa0] ss:$36 sps:$4 sm:$0xff]   ;;  %v9677_v52 = vld [vmem:[%s12900_s6 + $0xec] ss:$36 sps:$4 sm:$0xff]  }
 0x381   : > { %v3099_v57 = vadd.f32 %v3094_v55, %v3087_v54  ;;  %v2936_v58 = vpop.f32.mrb[48].mxu0  ;;  %v2987_v59 = vpop.f32.mrb[48].mxu1  ;;  %v9675_v54 = vld [vmem:[%s12900_s6 + $0xe8] ss:$36 sps:$4 sm:$0xff]   ;;  %v9678_v55 = vld [vmem:[%s12900_s6 + $0xf0] ss:$36 sps:$4 sm:$0xff]  }
 0x382   : > { %v3083_v60 = vrot.slane %v2936_v58, 4  ;;  %v3107_v61 = vrot.slane %v2987_v59, 6  ;;  %v2938_v62 = vpop.f32.mrb[49].mxu0  ;;  %v2989_v63 = vpop.f32.mrb[49].mxu1  ;;  %v9681_v58 = vld [vmem:[%s12900_s6 + $0x130] ss:$36 sps:$4 sm:$0xff]  }
 0x383   : > { %v3095_v0 = vrot.slane %v2938_v62, 5  ;;  %v3119_v1 = vrot.slane %v2989_v63, 7  ;;  %v2940_v3 = vpop.f32.mrb[50].mxu0  ;;  %v2991_v5 = vpop.f32.mrb[50].mxu1  ;;  %v3111_v6 = vadd.f32 %v3106_v53, %v3099_v57  ;;  %v9680_v53 = vld [vmem:[%s12900_s6 + $0xf4] ss:$36 sps:$4 sm:$0xff]  }
 0x384   : > { %v3084_v7 = vsel %vm1464_vm3, %v3081_v44, %v3083_v60  ;;  %v3108_v8 = vsel %vm1490_vm5, %v3105_v45, %v3107_v61  ;;  %v2941_v9 = vpop.f32.mrb[51].mxu0  ;;  %v2992_v10 = vpop.f32.mrb[51].mxu1  ;;  %v9663_v44 = vld [vmem:[%s12900_s6 + $0x58] ss:$36 sps:$4 sm:$0xff]   ;;  %v9666_v45 = vld [vmem:[%s12900_s6 + $0x60] ss:$36 sps:$4 sm:$0xff]  }
 0x385   : > { %v3088_v11 = vadd.f32 %v3084_v7, %v3076_v35  ;;  %v3096_v13 = vsel %vm1477_vm4, %v3093_v50, %v3095_v0  ;;  %v3120_v15 = vsel %vm1503_vm6, %v3117_v51, %v3119_v1  ;;  %v3123_v16 = vadd.f32 %v3118_v56, %v3111_v6  ;;  %v9672_v50 = vld [vmem:[%s12900_s6 + $0xa8] ss:$36 sps:$4 sm:$0xff]   ;;  %v9683_v56 = vld [vmem:[%s12900_s6 + $0x134] ss:$36 sps:$4 sm:$0xff]   ;;  %v9686_v57 = vld [vmem:[%s12900_s6 + $0x13c] ss:$36 sps:$4 sm:$0xff]  }
 0x386   : > { %v9684_v59 = vld [vmem:[%s12900_s6 + $0x138] ss:$36 sps:$4 sm:$0xff]   ;;  %v9692_v61 = vld [vmem:[%s12900_s6 + $0x184] ss:$36 sps:$4 sm:$0xff]   ;;  %v9698_v1 = vld [vmem:[%s12900_s6 + $0x1cc] ss:$36 sps:$4 sm:$0xff]  }
 0x387   : > { %v3100_v17 = vadd.f32 %v3096_v13, %v3088_v11  ;;  %v9689_v60 = vld [vmem:[%s12900_s6 + $0x17c] ss:$36 sps:$4 sm:$0xff]   ;;  %v9695_v0 = vld [vmem:[%s12900_s6 + $0x1c4] ss:$36 sps:$4 sm:$0xff]   ;;  %v9701_v6 = vld [vmem:[%s12900_s6 + $0x20c] ss:$36 sps:$4 sm:$0xff]  }
 0x388   : > { %v9687_v62 = vld [vmem:[%s12900_s6 + $0x178] ss:$36 sps:$4 sm:$0xff]   ;;  %v9690_v63 = vld [vmem:[%s12900_s6 + $0x180] ss:$36 sps:$4 sm:$0xff]   ;;  %v9696_v5 = vld [vmem:[%s12900_s6 + $0x1c8] ss:$36 sps:$4 sm:$0xff]  }
 0x389   : > { %v3112_v18 = vadd.f32 %v3108_v8, %v3100_v17  ;;  %v9693_v3 = vld [vmem:[%s12900_s6 + $0x1c0] ss:$36 sps:$4 sm:$0xff]   ;;  %v9704_v7 = vld [vmem:[%s12900_s6 + $0x214] ss:$36 sps:$4 sm:$0xff]   ;;  %v9699_v8 = vld [vmem:[%s12900_s6 + $0x208] ss:$36 sps:$4 sm:$0xff]  }
 0x38a   : > { %v9702_v9 = vld [vmem:[%s12900_s6 + $0x210] ss:$36 sps:$4 sm:$0xff]   ;;  %v9705_v10 = vld [vmem:[%s12900_s6 + $0x20] ss:$36 sps:$4 sm:$0xff]   ;;  %v9706_v11 = vld [vmem:[%s12900_s6 + $0x68] ss:$36 sps:$4 sm:$0xff]  }
 0x38b   : > { %v3124_v19 = vadd.f32 %v3120_v15, %v3112_v18  ;;  %v9707_v13 = vld [vmem:[%s12900_s6 + $0xb0] ss:$36 sps:$4 sm:$0xff]   ;;  %v9708_v15 = vld [vmem:[%s12900_s6 + $0xf8] ss:$36 sps:$4 sm:$0xff]   ;;  %v9710_v17 = vld [vmem:[%s12900_s6 + $0x188] ss:$36 sps:$4 sm:$0xff]  }
 0x38c   : > { %v9711_v18 = vld [vmem:[%s12900_s6 + $0x1d0] ss:$36 sps:$4 sm:$0xff]  }
 0x399   : > { %v9124_v22 = vpop.f32.mrb[52].mxu0 }
 0x39a   : > { %v3126_v23 = vadd.f32 %v9124_v22, %v3124_v19  ;;  %v3028_v29 = vpop.f32.mrb[53].mxu0  ;;  %v9712_v19 = vld [vmem:[%s12900_s6 + $0x218] ss:$36 sps:$4 sm:$0xff]   ;;  %v9716_v22 = vld [vmem:[%s12863_s9 + $0x8] ss:$36 sps:$4 sm:$0xff]  }
 0x39b   : > { %v9125_v30 = vpop.f32.mrb[54].mxu0  ;;  %v9724_v29 = vld [vmem:[%s12863_s9 + $0x54] ss:$36 sps:$4 sm:$0xff]  }
 0x39c   : > { %v3133_v31 = vmul.f32 %v3131_v21, %v3126_v23  ;;  %v3030_v32 = vpop.f32.mrb[55].mxu0  ;;  %v9718_v23 = vld [vmem:[%s12863_s9 + $0xc] ss:$36 sps:$4 sm:$0xff]  }
 0x39d   : > { %v3125_v33 = vadd.f32 %v3123_v16, %v3030_v32  ;;  %v9709_v16 = vld [vmem:[%s12900_s6 + $0x140] ss:$36 sps:$4 sm:$0xff]   ;;  %v9719_v30 = vld [vmem:[%s12863_s9 + $0x48] ss:$36 sps:$4 sm:$0xff]   ;;  %v9727_v32 = vld [vmem:[%s12863_s9 + $0x94] ss:$36 sps:$4 sm:$0xff]  }
 0x39e   : > { %v3139_v34 = vadd.f32 %v3137_v25, %v3133_v31  ;;  %v9722_v31 = vld [vmem:[%s12863_s9 + $0x50] ss:$36 sps:$4 sm:$0xff]  }
 0x39f   : > { %v3132_v35 = vmul.f32 %v3131_v21, %v3125_v33  ;;  %v9715_v21 = vld [vmem:[%s12863_s9 + $0x4] ss:$36 sps:$4 sm:$0xff]   ;;  %v9730_v33 = vld [vmem:[%s12863_s9 + $0x9c] ss:$36 sps:$4 sm:$0xff]  }
 0x3a0   : > { %v11294_v36 = vadd.f32 %v3139_v34, %v1529_v26  ;;  %v9660_v26 = vld [vmem:[%s12900_s6 + $0x18] ss:$36 sps:$4 sm:$0xff]   ;;  %v9725_v34 = vld [vmem:[%s12863_s9 + $0x90] ss:$36 sps:$4 sm:$0xff]  }
 0x3a1   : > { %v3138_v37 = vadd.f32 %v3137_v25, %v3132_v35  ;;  %v9721_v25 = vld [vmem:[%s12863_s9 + $0x4c] ss:$36 sps:$4 sm:$0xff]   ;;  %v9728_v35 = vld [vmem:[%s12863_s9 + $0x98] ss:$36 sps:$4 sm:$0xff]  }
 0x3a2   : > { %v3143_v38 = vmax.f32 %v11294_v36, 0.0  ;;  %v9852_v36 = vld [vmem:[%s12867_s13 + $0x50] ss:$36 sps:$4 sm:$0xff]  }
 0x3a3   : > { %v11299_v39 = vadd.f32 %v3138_v37, %v1528_v28  ;;  %v9733_v37 = vld [vmem:[%s12863_s9 + $0xdc] ss:$36 sps:$4 sm:$0xff]  }
 0x3a4   : > { %3145 = vst [vmem:[#allocation2 + $0xc] sm:$0xff] %v3143_v38 }
 0x3a5   : > { %v3142_v40 = vmax.f32 %v11299_v39, 0.0  ;;  %v9855_v39 = vld [vmem:[%s12867_s13 + $0x98] ss:$36 sps:$4 sm:$0xff]  }
 0x3a7   : > { %3144 = vst [vmem:[#allocation2 + $0x4] sm:$0xff] %v3142_v40 }
 0x3ab   : > { %v3148_v48 = vld [vmem:[#allocation2 + $0x10] sm:$0xff] }
 0x3ac   : > { %v11342_v51 = vpack.c.bf16 %v3148_v48, %v3148_v48  ;;  %v9751_v48 = vld [vmem:[%s12863_s9 + $0x1b4] ss:$36 sps:$4 sm:$0xff]  }
 0x3ae   : > { %v3146_v41 = vld [vmem:[#allocation2] sm:$0xff]  ;;  %v3147_v27 = vld [vmem:[#allocation2 + $0x8] sm:$0xff] }
 0x3af   : > { %v11312_v28 = vpack.c.bf16 %v3147_v27, %v3146_v41  ;;  %v9734_v41 = vld [vmem:[%s12863_s9 + $0xe0] ss:$36 sps:$4 sm:$0xff]  }
 0x3b0   : > { %v9739_v27 = vld [vmem:[%s12863_s9 + $0x124] ss:$36 sps:$4 sm:$0xff]  }
 0x3b1   : > { %3632 = vmatmul.mubr.bf16.vlgmr.msra.gmra.mrb[52].mxu1 %v11312_v28  ;;  %3682 = vmatmul.mubr.bf16.vlgmr.msra.gmra.mrb[56].mxu0 %v11312_v28 }
 0x3b2   : > { %3701 = vmatpush1.bf16.msra.mxu1 %v9657_v24  ;;  %3752 = vmatpush1.bf16.msra.mxu0 %v9660_v26  ;;  %v9736_v24 = vld [vmem:[%s12863_s9 + $0xe4] ss:$36 sps:$4 sm:$0xff]   ;;  %v9731_v26 = vld [vmem:[%s12863_s9 + $0xd8] ss:$36 sps:$4 sm:$0xff]  }
 0x3b3   : > { %3702 = vmatprep.subr.bf16.mxu1 %v9665_v42  ;;  %3753 = vmatprep.subr.bf16.mxu0 %v9668_v43  ;;  %v9737_v42 = vld [vmem:[%s12863_s9 + $0x120] ss:$36 sps:$4 sm:$0xff]   ;;  %v9740_v43 = vld [vmem:[%s12863_s9 + $0x128] ss:$36 sps:$4 sm:$0xff]  }
 0x3b4   : > { %3641 = vmatprep.mubr.bf16.mxu1 %v10257_v2  ;;  %3691 = vmatprep.mubr.bf16.mxu0 %v10257_v2 }
 0x3b6   : > { %3703 = vmatpush1.bf16.msra.mxu1 %v9663_v44  ;;  %3754 = vmatpush1.bf16.msra.mxu0 %v9666_v45  ;;  %v9745_v44 = vld [vmem:[%s12863_s9 + $0x16c] ss:$36 sps:$4 sm:$0xff]   ;;  %v9748_v45 = vld [vmem:[%s12863_s9 + $0x174] ss:$36 sps:$4 sm:$0xff]  }
 0x3b7   : > { %3704 = vmatprep.subr.bf16.mxu1 %v9671_v46  ;;  %3755 = vmatprep.subr.bf16.mxu0 %v9674_v47  ;;  %v9743_v46 = vld [vmem:[%s12863_s9 + $0x168] ss:$36 sps:$4 sm:$0xff]   ;;  %v9746_v47 = vld [vmem:[%s12863_s9 + $0x170] ss:$36 sps:$4 sm:$0xff]  }
 0x3b9   : > { %3642 = vmatmul.mubr.bf16.gmra.mrb[56].mxu1 %v11342_v51  ;;  %3692 = vmatmul.mubr.bf16.gmra.mrb[60].mxu0 %v11342_v51 }
 0x3ba   : > { %3705 = vmatpush1.bf16.msra.mxu1 %v9669_v49  ;;  %3756 = vmatpush1.bf16.msra.mxu0 %v9672_v50  ;;  %v9754_v49 = vld [vmem:[%s12863_s9 + $0x1bc] ss:$36 sps:$4 sm:$0xff]   ;;  %v9749_v50 = vld [vmem:[%s12863_s9 + $0x1b0] ss:$36 sps:$4 sm:$0xff]  }
 0x3bb   : > { %3706 = vmatprep.subr.bf16.mxu1 %v9677_v52  ;;  %3757 = vmatprep.subr.bf16.mxu0 %v9680_v53  ;;  %v9757_v52 = vld [vmem:[%s12863_s9 + $0x1fc] ss:$36 sps:$4 sm:$0xff]   ;;  %v9760_v53 = vld [vmem:[%s12863_s9 + $0x204] ss:$36 sps:$4 sm:$0xff]  }
 0x3bc   : > { %3732 = vmatprep.mubr.bf16.mxu1 %v10257_v2  ;;  %3783 = vmatprep.mubr.bf16.mxu0 %v10257_v2 }
 0x3be   : > { %3707 = vmatpush1.bf16.msra.mxu1 %v9675_v54  ;;  %3758 = vmatpush1.bf16.msra.mxu0 %v9678_v55  ;;  %v9755_v54 = vld [vmem:[%s12863_s9 + $0x1f8] ss:$36 sps:$4 sm:$0xff]   ;;  %v9758_v55 = vld [vmem:[%s12863_s9 + $0x200] ss:$36 sps:$4 sm:$0xff]  }
 0x3bf   : > { %3708 = vmatprep.subr.bf16.mxu1 %v9683_v56  ;;  %3759 = vmatprep.subr.bf16.mxu0 %v9686_v57  ;;  %v9763_v56 = vld [vmem:[%s12863_s9 + $0x14] ss:$36 sps:$4 sm:$0xff]   ;;  %v9766_v57 = vld [vmem:[%s12863_s9 + $0x1c] ss:$36 sps:$4 sm:$0xff]  }
 0x3c2   : > { %3709 = vmatpush1.bf16.msra.mxu1 %v9681_v58  ;;  %3760 = vmatpush1.bf16.msra.mxu0 %v9684_v59 }
 0x3c3   : > { %3710 = vmatprep.subr.bf16.mxu1 %v9689_v60  ;;  %3761 = vmatprep.subr.bf16.mxu0 %v9692_v61 }
 0x3c6   : > { %3711 = vmatpush1.bf16.msra.mxu1 %v9687_v62  ;;  %3762 = vmatpush1.bf16.msra.mxu0 %v9690_v63 }
 0x3c7   : > { %3712 = vmatprep.subr.bf16.mxu1 %v9695_v0  ;;  %3763 = vmatprep.subr.bf16.mxu0 %v9698_v1 }
 0x3ca   : > { %3713 = vmatpush1.bf16.msra.mxu1 %v9693_v3  ;;  %3764 = vmatpush1.bf16.msra.mxu0 %v9696_v5 }
 0x3cb   : > { %3714 = vmatprep.subr.bf16.mxu1 %v9701_v6  ;;  %3765 = vmatprep.subr.bf16.mxu0 %v9704_v7 }
 0x3ce   : > { %3715 = vmatpush1.bf16.msra.mxu1 %v9699_v8  ;;  %3766 = vmatpush1.bf16.msra.mxu0 %v9702_v9 }
 0x3cf   : > { %9126 = vmatprep.subr.bf16.mxu1 %v9705_v10  ;;  %4405 = vmatprep.subr.bf16.mxu0 %v9715_v21 }
 0x3d1   : > { %3733 = vmatmul.mubr.bf16.vlgmr.msra.gmra.mrb[60].mxu1 %v11312_v28  ;;  %3784 = vmatmul.mubr.bf16.vlgmr.msra.gmra.mrb[64].mxu0 %v11312_v28 }
 0x3d2   : > { %9127 = vmatpush3.bf16.msra.mxu1 %v9705_v10  ;;  %3742 = vmatprep.mubr.bf16.mxu1 %v10257_v2 }
 0x3d3   : > { %9128 = vmatprep.subr.bf16.mxu1 %v9706_v11  ;;  %3793 = vmatprep.mubr.bf16.mxu0 %v10257_v2 }
 0x3d4   : > { %4406 = vmatpush1.bf16.msra.mxu0 %v9713_v20 }
 0x3d5   : > { %4407 = vmatprep.subr.bf16.mxu0 %v9721_v25 }
 0x3d6   : > { %9129 = vmatpush3.bf16.msra.mxu1 %v9706_v11 }
 0x3d7   : > { %9130 = vmatprep.subr.bf16.mxu1 %v9707_v13 }
 0x3d8   : > { %4408 = vmatpush1.bf16.msra.mxu0 %v9719_v30 }
 0x3d9   : > { %3743 = vmatmul.mubr.bf16.gmra.mrb[64].mxu1 %v11342_v51  ;;  %3794 = vmatmul.mubr.bf16.gmra.mrb[68].mxu0 %v11342_v51 }
 0x3da   : > { %9131 = vmatpush3.bf16.msra.mxu1 %v9707_v13  ;;  %9142 = vmatprep.mubr.bf16.mxu1 %v11312_v28  ;;  %v9742_v28 = vld [vmem:[%s12863_s9 + $0x12c] ss:$36 sps:$4 sm:$0xff]  }
 0x3db   : > { %9132 = vmatprep.subr.bf16.mxu1 %v9708_v15  ;;  %4437 = vmatprep.mubr.bf16.mxu0 %v10257_v2 }
 0x3dc   : > { %4409 = vmatprep.subr.bf16.mxu0 %v9727_v32 }
 0x3dd   : > { %4410 = vmatpush1.bf16.msra.mxu0 %v9725_v34 }
 0x3de   : > { %9133 = vmatpush3.bf16.msra.mxu1 %v9708_v15  ;;  %4411 = vmatprep.subr.bf16.mxu0 %v9733_v37 }
 0x3df   : > { %9134 = vmatprep.subr.bf16.mxu1 %v9709_v16 }
 0x3e1   : > { %4412 = vmatpush1.bf16.msra.mxu0 %v9731_v26 }
 0x3e2   : > { %9135 = vmatpush3.bf16.msra.mxu1 %v9709_v16  ;;  %4413 = vmatprep.subr.bf16.mxu0 %v9739_v27 }
 0x3e3   : > { %9136 = vmatprep.subr.bf16.mxu1 %v9710_v17 }
 0x3e5   : > { %4414 = vmatpush1.bf16.msra.mxu0 %v9737_v42 }
 0x3e6   : > { %9137 = vmatpush3.bf16.msra.mxu1 %v9710_v17  ;;  %4415 = vmatprep.subr.bf16.mxu0 %v9745_v44 }
 0x3e7   : > { %9138 = vmatprep.subr.bf16.mxu1 %v9711_v18 }
 0x3e9   : > { %4416 = vmatpush1.bf16.msra.mxu0 %v9743_v46 }
 0x3ea   : > { %9139 = vmatpush3.bf16.msra.mxu1 %v9711_v18  ;;  %4417 = vmatprep.subr.bf16.mxu0 %v9751_v48 }
 0x3eb   : > { %9140 = vmatprep.subr.bf16.mxu1 %v9712_v19 }
 0x3ed   : > { %4418 = vmatpush1.bf16.msra.mxu0 %v9749_v50 }
 0x3ee   : > { %9141 = vmatpush3.bf16.msra.mxu1 %v9712_v19  ;;  %4419 = vmatprep.subr.bf16.mxu0 %v9757_v52 }
 0x3ef   : > { %4455 = vmatprep.subr.bf16.mxu1 %v9718_v23 }
 0x3f1   : > { %9143 = vmatmul.mubr.bf16.vlgmr.msra.gmra.mrb[68].mxu1 %v11342_v51  ;;  %v9752_v51 = vld [vmem:[%s12863_s9 + $0x1b8] ss:$36 sps:$4 sm:$0xff]   ;;  %4420 = vmatpush1.bf16.msra.mxu0 %v9755_v54 }
 0x3f2   : > { %4487 = vmatprep.mubr.bf16.mxu1 %v10257_v2  ;;  %4456 = vmatpush1.bf16.msra.mxu1 %v9716_v22 }
 0x3f3   : > { %4457 = vmatprep.subr.bf16.mxu1 %v9724_v29  ;;  %4506 = vmatprep.subr.bf16.mxu0 %v9763_v56 }
 0x3f6   : > { %4458 = vmatpush1.bf16.msra.mxu1 %v9722_v31 }
 0x3f7   : > { %4459 = vmatprep.subr.bf16.mxu1 %v9730_v33 }
 0x3fa   : > { %4460 = vmatpush1.bf16.msra.mxu1 %v9728_v35 }
 0x3fb   : > { %4461 = vmatprep.subr.bf16.mxu1 %v9736_v24 }
 0x3fe   : > { %4462 = vmatpush1.bf16.msra.mxu1 %v9734_v41 }
 0x3ff   : > { %4463 = vmatprep.subr.bf16.mxu1 %v9742_v28 }
 0x402   : > { %4464 = vmatpush1.bf16.msra.mxu1 %v9740_v43 }
 0x403   : > { %4465 = vmatprep.subr.bf16.mxu1 %v9748_v45 }
 0x406   : > { %4466 = vmatpush1.bf16.msra.mxu1 %v9746_v47 }
 0x407   : > { %4467 = vmatprep.subr.bf16.mxu1 %v9754_v49 }
 0x40a   : > { %4468 = vmatpush1.bf16.msra.mxu1 %v9752_v51 }
 0x40b   : > { %4469 = vmatprep.subr.bf16.mxu1 %v9760_v53 }
 0x40e   : > { %4470 = vmatpush1.bf16.msra.mxu1 %v9758_v55 }
 0x40f   : > { %4557 = vmatprep.subr.bf16.mxu1 %v9766_v57 }
 0x484   : > { %v3633_v58 = vpop.f32.mrb[52].mxu1  ;;  %v3683_v59 = vpop.f32.mrb[56].mxu0 }
 0x485   : > { %v3635_v60 = vpop.f32.mrb[53].mxu1  ;;  %v3685_v61 = vpop.f32.mrb[57].mxu0  ;;  %v3864_v0 = vrot.slane %v3683_v59, 2 }
 0x486   : > { %v3637_v62 = vpop.f32.mrb[54].mxu1  ;;  %v3687_v63 = vpop.f32.mrb[58].mxu0  ;;  %v3852_v6 = vrot.slane %v3635_v60, 1  ;;  %v3876_v7 = vrot.slane %v3685_v61, 3 }
 0x487   : > { %v3865_v1 = vrot.slane %v3687_v63, 2  ;;  %v3639_v3 = vpop.f32.mrb[55].mxu1  ;;  %v3689_v5 = vpop.f32.mrb[59].mxu0 }
 0x488   : > { %v3853_v8 = vrot.slane %v3639_v3, 1  ;;  %v3877_v9 = vrot.slane %v3689_v5, 3 }
 0x489   : > { %v3866_v10 = vsel %vm1438_vm1, %v3864_v0, %v3865_v1 }
 0x48a   : > { %v3854_v11 = vsel %vm1425_vm0, %v3852_v6, %v3853_v8  ;;  %v3878_v13 = vsel %vm1451_vm2, %v3876_v7, %v3877_v9 }
 0x48b   : > { %v3859_v15 = vadd.f32 %v3854_v11, %v3633_v58 }
 0x48c   : > { %v3643_v16 = vpop.f32.mrb[56].mxu1  ;;  %v3693_v17 = vpop.f32.mrb[60].mxu0 }
 0x48d   : > { %v3871_v18 = vadd.f32 %v3866_v10, %v3859_v15  ;;  %v3867_v19 = vrot.slane %v3693_v17, 2  ;;  %v3644_v20 = vpop.f32.mrb[57].mxu1  ;;  %v3695_v21 = vpop.f32.mrb[61].mxu0 }
 0x48e   : > { %v3855_v22 = vrot.slane %v3644_v20, 1  ;;  %v3879_v23 = vrot.slane %v3695_v21, 3  ;;  %v3646_v25 = vpop.f32.mrb[58].mxu1  ;;  %v3697_v29 = vpop.f32.mrb[62].mxu0 }
 0x48f   : > { %v3883_v30 = vadd.f32 %v3878_v13, %v3871_v18  ;;  %v3868_v31 = vsel %vm1438_vm1, %v3865_v1, %v3867_v19  ;;  %v3647_v32 = vpop.f32.mrb[59].mxu1  ;;  %v3698_v33 = vpop.f32.mrb[63].mxu0 }
 0x490   : > { %v3856_v34 = vsel %vm1425_vm0, %v3853_v8, %v3855_v22  ;;  %v3880_v35 = vsel %vm1451_vm2, %v3877_v9, %v3879_v23  ;;  %v3935_v23 = vld [vmem:[%s12862_s8] sm:$0x3] }
 0x491   : > { %v3860_v37 = vadd.f32 %v3856_v34, %v3637_v62  ;;  %v3939_v25 = vrot.slane %v3935_v23, %v10759_v12 }
 0x493   : > { %v3872_v24 = vadd.f32 %v3868_v31, %v3860_v37  ;;  %v3945_v31 = vrot.slane %v3935_v23, %v10764_v14  ;;  %v9815_v23 = vld [vmem:[%s12863_s9 + $0x1d0] ss:$36 sps:$4 sm:$0xff]  }
 0x495   : > { %v3884_v26 = vadd.f32 %v3880_v35, %v3872_v24 }
 0x4a4   : > { %v3734_v41 = vpop.f32.mrb[60].mxu1  ;;  %v3785_v27 = vpop.f32.mrb[64].mxu0 }
 0x4a5   : > { %v3736_v28 = vpop.f32.mrb[61].mxu1  ;;  %v3787_v42 = vpop.f32.mrb[65].mxu0  ;;  %v3888_v45 = vrot.slane %v3734_v41, 4  ;;  %v3912_v46 = vrot.slane %v3785_v27, 6 }
 0x4a6   : > { %v3738_v43 = vpop.f32.mrb[62].mxu1  ;;  %v3789_v44 = vpop.f32.mrb[66].mxu0  ;;  %v3900_v51 = vrot.slane %v3736_v28, 5  ;;  %v3924_v52 = vrot.slane %v3787_v42, 7  ;;  %v9761_v42 = vld [vmem:[%s12863_s9 + $0x10] ss:$36 sps:$4 sm:$0xff]  }
 0x4a7   : > { %v3889_v47 = vrot.slane %v3738_v43, 4  ;;  %v3913_v48 = vrot.slane %v3789_v44, 6  ;;  %v3740_v49 = vpop.f32.mrb[63].mxu1  ;;  %v3791_v50 = vpop.f32.mrb[67].mxu0  ;;  %v9764_v43 = vld [vmem:[%s12863_s9 + $0x18] ss:$36 sps:$4 sm:$0xff]  }
 0x4a8   : > { %v3901_v53 = vrot.slane %v3740_v49, 5  ;;  %v3925_v54 = vrot.slane %v3791_v50, 7  ;;  %v9767_v49 = vld [vmem:[%s12863_s9 + $0x58] ss:$36 sps:$4 sm:$0xff]   ;;  %v9770_v50 = vld [vmem:[%s12863_s9 + $0x60] ss:$36 sps:$4 sm:$0xff]  }
 0x4a9   : > { %v3890_v55 = vsel %vm1464_vm3, %v3888_v45, %v3889_v47  ;;  %v3914_v56 = vsel %vm1490_vm5, %v3912_v46, %v3913_v48 }
 0x4aa   : > { %v3895_v57 = vadd.f32 %v3890_v55, %v3883_v30  ;;  %v3902_v58 = vsel %vm1477_vm4, %v3900_v51, %v3901_v53  ;;  %v3926_v59 = vsel %vm1503_vm6, %v3924_v52, %v3925_v54  ;;  %v9775_v51 = vld [vmem:[%s12863_s9 + $0xa4] ss:$36 sps:$4 sm:$0xff]   ;;  %v9778_v52 = vld [vmem:[%s12863_s9 + $0xac] ss:$36 sps:$4 sm:$0xff]  }
 0x4ab   : > { %v9776_v55 = vld [vmem:[%s12863_s9 + $0xa8] ss:$36 sps:$4 sm:$0xff]  }
 0x4ac   : > { %v3907_v60 = vadd.f32 %v3902_v58, %v3895_v57  ;;  %v3744_v61 = vpop.f32.mrb[64].mxu1  ;;  %v3795_v62 = vpop.f32.mrb[68].mxu0  ;;  %v9781_v57 = vld [vmem:[%s12863_s9 + $0xec] ss:$36 sps:$4 sm:$0xff]   ;;  %v9784_v58 = vld [vmem:[%s12863_s9 + $0xf4] ss:$36 sps:$4 sm:$0xff]  }
 0x4ad   : > { %v3891_v63 = vrot.slane %v3744_v61, 4  ;;  %v3915_v0 = vrot.slane %v3795_v62, 6  ;;  %v3746_v1 = vpop.f32.mrb[65].mxu1  ;;  %v3797_v3 = vpop.f32.mrb[69].mxu0  ;;  %v9787_v61 = vld [vmem:[%s12863_s9 + $0x134] ss:$36 sps:$4 sm:$0xff]  }
 0x4ae   : > { %v3903_v5 = vrot.slane %v3746_v1, 5  ;;  %v3927_v6 = vrot.slane %v3797_v3, 7  ;;  %v3748_v7 = vpop.f32.mrb[66].mxu1  ;;  %v3799_v8 = vpop.f32.mrb[70].mxu0  ;;  %v3919_v9 = vadd.f32 %v3914_v56, %v3907_v60  ;;  %v9782_v60 = vld [vmem:[%s12863_s9 + $0xf0] ss:$36 sps:$4 sm:$0xff]  }
 0x4af   : > { %v3892_v10 = vsel %vm1464_vm3, %v3889_v47, %v3891_v63  ;;  %v3916_v11 = vsel %vm1490_vm5, %v3913_v48, %v3915_v0  ;;  %v3749_v13 = vpop.f32.mrb[67].mxu1  ;;  %v3800_v15 = vpop.f32.mrb[71].mxu0  ;;  %v9769_v47 = vld [vmem:[%s12863_s9 + $0x5c] ss:$36 sps:$4 sm:$0xff]   ;;  %v9772_v48 = vld [vmem:[%s12863_s9 + $0x64] ss:$36 sps:$4 sm:$0xff]  }
 0x4b0   : > { %v3896_v16 = vadd.f32 %v3892_v10, %v3884_v26  ;;  %v3904_v17 = vsel %vm1477_vm4, %v3901_v53, %v3903_v5  ;;  %v3928_v18 = vsel %vm1503_vm6, %v3925_v54, %v3927_v6  ;;  %v3931_v19 = vadd.f32 %v3926_v59, %v3919_v9  ;;  %v9773_v54 = vld [vmem:[%s12863_s9 + $0xa0] ss:$36 sps:$4 sm:$0xff]   ;;  %v9779_v59 = vld [vmem:[%s12863_s9 + $0xe8] ss:$36 sps:$4 sm:$0xff]   ;;  %v9785_v63 = vld [vmem:[%s12863_s9 + $0x130] ss:$36 sps:$4 sm:$0xff]  }
 0x4b1   : > { %v9790_v62 = vld [vmem:[%s12863_s9 + $0x13c] ss:$36 sps:$4 sm:$0xff]   ;;  %v9796_v3 = vld [vmem:[%s12863_s9 + $0x184] ss:$36 sps:$4 sm:$0xff]   ;;  %v9802_v8 = vld [vmem:[%s12863_s9 + $0x1cc] ss:$36 sps:$4 sm:$0xff]  }
 0x4b2   : > { %v3908_v20 = vadd.f32 %v3904_v17, %v3896_v16  ;;  %v9788_v0 = vld [vmem:[%s12863_s9 + $0x138] ss:$36 sps:$4 sm:$0xff]   ;;  %v9794_v6 = vld [vmem:[%s12863_s9 + $0x180] ss:$36 sps:$4 sm:$0xff]   ;;  %v9800_v10 = vld [vmem:[%s12863_s9 + $0x1c8] ss:$36 sps:$4 sm:$0xff]  }
 0x4b3   : > { %v9793_v1 = vld [vmem:[%s12863_s9 + $0x17c] ss:$36 sps:$4 sm:$0xff]   ;;  %v9799_v7 = vld [vmem:[%s12863_s9 + $0x1c4] ss:$36 sps:$4 sm:$0xff]   ;;  %v9808_v13 = vld [vmem:[%s12863_s9 + $0x214] ss:$36 sps:$4 sm:$0xff]  }
 0x4b4   : > { %v3920_v21 = vadd.f32 %v3916_v11, %v3908_v20  ;;  %v9791_v5 = vld [vmem:[%s12863_s9 + $0x178] ss:$36 sps:$4 sm:$0xff]   ;;  %v9797_v9 = vld [vmem:[%s12863_s9 + $0x1c0] ss:$36 sps:$4 sm:$0xff]   ;;  %v9805_v11 = vld [vmem:[%s12863_s9 + $0x20c] ss:$36 sps:$4 sm:$0xff]  }
 0x4b5   : > { %v9803_v15 = vld [vmem:[%s12863_s9 + $0x208] ss:$36 sps:$4 sm:$0xff]   ;;  %v9806_v16 = vld [vmem:[%s12863_s9 + $0x210] ss:$36 sps:$4 sm:$0xff]   ;;  %v9809_v17 = vld [vmem:[%s12863_s9 + $0x20] ss:$36 sps:$4 sm:$0xff]  }
 0x4b6   : > { %v3932_v22 = vadd.f32 %v3928_v18, %v3920_v21  ;;  %v9810_v18 = vld [vmem:[%s12863_s9 + $0x68] ss:$36 sps:$4 sm:$0xff]   ;;  %v9812_v20 = vld [vmem:[%s12863_s9 + $0xf8] ss:$36 sps:$4 sm:$0xff]   ;;  %v9813_v21 = vld [vmem:[%s12863_s9 + $0x140] ss:$36 sps:$4 sm:$0xff]  }
 0x4c4   : > { %v9144_v29 = vpop.f32.mrb[68].mxu1 }
 0x4c5   : > { %v3934_v30 = vadd.f32 %v9144_v29, %v3932_v22  ;;  %v3836_v32 = vpop.f32.mrb[69].mxu1  ;;  %v9814_v22 = vld [vmem:[%s12863_s9 + $0x188] ss:$36 sps:$4 sm:$0xff]   ;;  %v9817_v29 = vld [vmem:[%s12865_s11] sm:$0xff]  }
 0x4c6   : > { %v9145_v33 = vpop.f32.mrb[70].mxu1  ;;  %v9818_v32 = vld [vmem:[%s12865_s11 + $0x8] sm:$0xff]  }
 0x4c7   : > { %v3941_v34 = vmul.f32 %v3939_v25, %v3934_v30  ;;  %v3838_v35 = vpop.f32.mrb[71].mxu1  ;;  %v9819_v30 = vld [vmem:[%s12867_s13] ss:$36 sps:$4 sm:$0xff]   ;;  %v9825_v33 = vld [vmem:[%s12867_s13 + $0x4c] ss:$36 sps:$4 sm:$0xff]  }
 0x4c8   : > { %v3933_v37 = vadd.f32 %v3931_v19, %v3838_v35  ;;  %v9811_v19 = vld [vmem:[%s12863_s9 + $0xb0] ss:$36 sps:$4 sm:$0xff]  }
 0x4c9   : > { %v3947_v24 = vadd.f32 %v3945_v31, %v3941_v34  ;;  %v9823_v34 = vld [vmem:[%s12867_s13 + $0x48] ss:$36 sps:$4 sm:$0xff]   ;;  %v9829_v35 = vld [vmem:[%s12867_s13 + $0x94] ss:$36 sps:$4 sm:$0xff]  }
 0x4ca   : > { %v3940_v26 = vmul.f32 %v3939_v25, %v3933_v37  ;;  %v9816_v25 = vld [vmem:[%s12863_s9 + $0x218] ss:$36 sps:$4 sm:$0xff]   ;;  %v9822_v37 = vld [vmem:[%s12865_s11 + $0x10] sm:$0xff]  }
 0x4cb   : > { %v3949_v41 = vmax.f32 %v3947_v24, 0.0  ;;  %v9827_v24 = vld [vmem:[%s12867_s13 + $0x90] ss:$36 sps:$4 sm:$0xff]  }
 0x4cc   : > { %v3946_v27 = vadd.f32 %v3945_v31, %v3940_v26  ;;  %v9821_v31 = vld [vmem:[%s12867_s13 + $0x4] ss:$36 sps:$4 sm:$0xff]   ;;  %v9826_v26 = vld [vmem:[%s12865_s11 + $0x18] sm:$0xff]  }
 0x4cd   : > { %3951 = vst [vmem:[#allocation2 + $0xc] sm:$0xff] %v3949_v41  ;;  %v9830_v41 = vld [vmem:[%s12865_s11 + $0x20] sm:$0xff]  }
 0x4ce   : > { %v3948_v28 = vmax.f32 %v3946_v27, 0.0  ;;  %v9833_v27 = vld [vmem:[%s12867_s13 + $0xdc] ss:$36 sps:$4 sm:$0xff]  }
 0x4d0   : > { %3950 = vst [vmem:[#allocation2 + $0x4] sm:$0xff] %v3948_v28  ;;  %v9831_v28 = vld [vmem:[%s12867_s13 + $0xd8] ss:$36 sps:$4 sm:$0xff]  }
 0x4d4   : > { %v3954_v53 = vld [vmem:[#allocation2 + $0x10] sm:$0xff] }
 0x4d5   : > { %v11599_v56 = vpack.c.bf16 %v3954_v53, %v3954_v53  ;;  %v9851_v53 = vld [vmem:[%s12867_s13 + $0x1fc] ss:$36 sps:$4 sm:$0xff]  }
 0x4d7   : > { %v3952_v44 = vld [vmem:[#allocation2] sm:$0xff]  ;;  %v3953_v45 = vld [vmem:[#allocation2 + $0x8] sm:$0xff] }
 0x4d8   : > { %v11569_v46 = vpack.c.bf16 %v3953_v45, %v3952_v44  ;;  %v9835_v44 = vld [vmem:[%s12867_s13 + $0x120] ss:$36 sps:$4 sm:$0xff]   ;;  %v9838_v45 = vld [vmem:[%s12865_s11 + $0x30] sm:$0xff]  }
 0x4da   : > { %4438 = vmatmul.mubr.bf16.vlgmr.msra.gmra.mrb[72].mxu0 %v11569_v46  ;;  %4488 = vmatmul.mubr.bf16.vlgmr.msra.gmra.mrb[72].mxu1 %v11569_v46 }
 0x4db   : > { %4507 = vmatpush1.bf16.msra.mxu0 %v9761_v42  ;;  %4558 = vmatpush1.bf16.msra.mxu1 %v9764_v43  ;;  %v9834_v42 = vld [vmem:[%s12865_s11 + $0x28] sm:$0xff]  }
 0x4dc   : > { %4508 = vmatprep.subr.bf16.mxu0 %v9769_v47  ;;  %4559 = vmatprep.subr.bf16.mxu1 %v9772_v48  ;;  %v9837_v43 = vld [vmem:[%s12867_s13 + $0x124] ss:$36 sps:$4 sm:$0xff]   ;;  %v9842_v48 = vld [vmem:[%s12865_s11 + $0x38] sm:$0xff]  }
 0x4dd   : > { %4447 = vmatprep.mubr.bf16.mxu0 %v10257_v2  ;;  %4497 = vmatprep.mubr.bf16.mxu1 %v10257_v2  ;;  %v9839_v47 = vld [vmem:[%s12867_s13 + $0x168] ss:$36 sps:$4 sm:$0xff]  }
 0x4df   : > { %4509 = vmatpush1.bf16.msra.mxu0 %v9767_v49  ;;  %4560 = vmatpush1.bf16.msra.mxu1 %v9770_v50  ;;  %v9845_v49 = vld [vmem:[%s12867_s13 + $0x1b4] ss:$36 sps:$4 sm:$0xff]   ;;  %v9848_v50 = vld [vmem:[%s12867_s13 + $0xc] ss:$36 sps:$4 sm:$0xff]  }
 0x4e0   : > { %4510 = vmatprep.subr.bf16.mxu0 %v9775_v51  ;;  %4561 = vmatprep.subr.bf16.mxu1 %v9778_v52  ;;  %v9843_v51 = vld [vmem:[%s12867_s13 + $0x1b0] ss:$36 sps:$4 sm:$0xff]   ;;  %v9849_v52 = vld [vmem:[%s12867_s13 + $0x1f8] ss:$36 sps:$4 sm:$0xff]  }
 0x4e2   : > { %4448 = vmatmul.mubr.bf16.gmra.mrb[76].mxu0 %v11599_v56  ;;  %4498 = vmatmul.mubr.bf16.gmra.mrb[76].mxu1 %v11599_v56 }
 0x4e3   : > { %4511 = vmatpush1.bf16.msra.mxu0 %v9773_v54  ;;  %4562 = vmatpush1.bf16.msra.mxu1 %v9776_v55  ;;  %v9860_v54 = vld [vmem:[%s12867_s13 + $0x14] ss:$36 sps:$4 sm:$0xff]  }
 0x4e4   : > { %4512 = vmatprep.subr.bf16.mxu0 %v9781_v57  ;;  %4563 = vmatprep.subr.bf16.mxu1 %v9784_v58 }
 0x4e5   : > { %4538 = vmatprep.mubr.bf16.mxu0 %v10257_v2  ;;  %4589 = vmatprep.mubr.bf16.mxu1 %v10257_v2 }
 0x4e7   : > { %4513 = vmatpush1.bf16.msra.mxu0 %v9779_v59  ;;  %4564 = vmatpush1.bf16.msra.mxu1 %v9782_v60 }
 0x4e8   : > { %4514 = vmatprep.subr.bf16.mxu0 %v9787_v61  ;;  %4565 = vmatprep.subr.bf16.mxu1 %v9790_v62 }
 0x4eb   : > { %4515 = vmatpush1.bf16.msra.mxu0 %v9785_v63  ;;  %4566 = vmatpush1.bf16.msra.mxu1 %v9788_v0 }
 0x4ec   : > { %4516 = vmatprep.subr.bf16.mxu0 %v9793_v1  ;;  %4567 = vmatprep.subr.bf16.mxu1 %v9796_v3 }
 0x4ef   : > { %4517 = vmatpush1.bf16.msra.mxu0 %v9791_v5  ;;  %4568 = vmatpush1.bf16.msra.mxu1 %v9794_v6 }
 0x4f0   : > { %4518 = vmatprep.subr.bf16.mxu0 %v9799_v7  ;;  %4569 = vmatprep.subr.bf16.mxu1 %v9802_v8 }
 0x4f3   : > { %4519 = vmatpush1.bf16.msra.mxu0 %v9797_v9  ;;  %4570 = vmatpush1.bf16.msra.mxu1 %v9800_v10 }
 0x4f4   : > { %4520 = vmatprep.subr.bf16.mxu0 %v9805_v11  ;;  %4571 = vmatprep.subr.bf16.mxu1 %v9808_v13 }
 0x4f7   : > { %4521 = vmatpush1.bf16.msra.mxu0 %v9803_v15  ;;  %4572 = vmatpush1.bf16.msra.mxu1 %v9806_v16 }
 0x4f8   : > { %9146 = vmatprep.subr.bf16.mxu0 %v9809_v17  ;;  %9166 = vmatprep.subr.bf16.mxu1 %v10258_v4 }
 0x4fa   : > { %4539 = vmatmul.mubr.bf16.vlgmr.msra.gmra.mrb[80].mxu0 %v11569_v46  ;;  %4590 = vmatmul.mubr.bf16.vlgmr.msra.gmra.mrb[80].mxu1 %v11569_v46 }
 0x4fb   : > { %9147 = vmatpush3.bf16.msra.mxu0 %v9809_v17  ;;  %4548 = vmatprep.mubr.bf16.mxu0 %v10257_v2 }
 0x4fc   : > { %9148 = vmatprep.subr.bf16.mxu0 %v9810_v18  ;;  %4599 = vmatprep.mubr.bf16.mxu1 %v10257_v2 }
 0x4fd   : > { %9167 = vmatpush3.bf16.msra.mxu1 %v9817_v29 }
 0x4fe   : > { %9168 = vmatprep.subr.bf16.mxu1 %v10258_v4 }
 0x4ff   : > { %9149 = vmatpush3.bf16.msra.mxu0 %v9810_v18 }
 0x500   : > { %9150 = vmatprep.subr.bf16.mxu0 %v9811_v19 }
 0x501   : > { %9169 = vmatpush3.bf16.msra.mxu1 %v9818_v32 }
 0x502   : > { %4549 = vmatmul.mubr.bf16.gmra.mrb[84].mxu0 %v11599_v56  ;;  %4600 = vmatmul.mubr.bf16.gmra.mrb[84].mxu1 %v11599_v56 }
 0x503   : > { %9151 = vmatpush3.bf16.msra.mxu0 %v9811_v19  ;;  %9162 = vmatprep.mubr.bf16.mxu0 %v11569_v46  ;;  %v9841_v46 = vld [vmem:[%s12867_s13 + $0x16c] ss:$36 sps:$4 sm:$0xff]  }
 0x504   : > { %9152 = vmatprep.subr.bf16.mxu0 %v9812_v20  ;;  %9170 = vmatprep.subr.bf16.mxu1 %v10258_v4 }
 0x505   : > { %9171 = vmatpush3.bf16.msra.mxu1 %v9822_v37  ;;  %9182 = vmatprep.mubr.msk.bf16.mxu1 %vm10259_vm7, %v10258_v4 }
 0x506   : > { %9172 = vmatprep.subr.bf16.mxu1 %v10258_v4 }
 0x507   : > { %9153 = vmatpush3.bf16.msra.mxu0 %v9812_v20 }
 0x508   : > { %9154 = vmatprep.subr.bf16.mxu0 %v9813_v21 }
 0x509   : > { %9173 = vmatpush3.bf16.msra.mxu1 %v9826_v26 }
 0x50a   : > { %9174 = vmatprep.subr.bf16.mxu1 %v10258_v4 }
 0x50b   : > { %9155 = vmatpush3.bf16.msra.mxu0 %v9813_v21 }
 0x50c   : > { %9156 = vmatprep.subr.bf16.mxu0 %v9814_v22 }
 0x50d   : > { %9175 = vmatpush3.bf16.msra.mxu1 %v9830_v41 }
 0x50e   : > { %9176 = vmatprep.subr.bf16.mxu1 %v10258_v4 }
 0x50f   : > { %9157 = vmatpush3.bf16.msra.mxu0 %v9814_v22 }
 0x510   : > { %9158 = vmatprep.subr.bf16.mxu0 %v9815_v23 }
 0x511   : > { %9177 = vmatpush3.bf16.msra.mxu1 %v9834_v42 }
 0x512   : > { %9178 = vmatprep.subr.bf16.mxu1 %v10258_v4 }
 0x513   : > { %9159 = vmatpush3.bf16.msra.mxu0 %v9815_v23 }
 0x514   : > { %9160 = vmatprep.subr.bf16.mxu0 %v9816_v25 }
 0x515   : > { %9179 = vmatpush3.bf16.msra.mxu1 %v9838_v45 }
 0x516   : > { %9180 = vmatprep.subr.bf16.mxu1 %v10258_v4 }
 0x517   : > { %9161 = vmatpush3.bf16.msra.mxu0 %v9816_v25 }
 0x518   : > { %5332 = vmatprep.subr.bf16.mxu0 %v9821_v31 }
 0x519   : > { %9181 = vmatpush3.bf16.msra.mxu1 %v9842_v48 }
 0x51a   : > { %9163 = vmatmul.mubr.bf16.vlgmr.msra.gmra.mrb[88].mxu0 %v11599_v56  ;;  %5382 = vmatprep.subr.bf16.mxu1 %v9848_v50 }
 0x51b   : > { %5364 = vmatprep.mubr.bf16.mxu0 %v10257_v2  ;;  %5333 = vmatpush1.bf16.msra.mxu0 %v9819_v30 }
 0x51c   : > { %5334 = vmatprep.subr.bf16.mxu0 %v9825_v33 }
 0x51f   : > { %5335 = vmatpush1.bf16.msra.mxu0 %v9823_v34 }
 0x520   : > { %5336 = vmatprep.subr.bf16.mxu0 %v9829_v35 }
 0x523   : > { %5337 = vmatpush1.bf16.msra.mxu0 %v9827_v24 }
 0x524   : > { %5338 = vmatprep.subr.bf16.mxu0 %v9833_v27 }
 0x527   : > { %5339 = vmatpush1.bf16.msra.mxu0 %v9831_v28 }
 0x528   : > { %5340 = vmatprep.subr.bf16.mxu0 %v9837_v43 }
 0x52b   : > { %5341 = vmatpush1.bf16.msra.mxu0 %v9835_v44 }
 0x52c   : > { %5342 = vmatprep.subr.bf16.mxu0 %v9841_v46 }
 0x52f   : > { %5343 = vmatpush1.bf16.msra.mxu0 %v9839_v47 }
 0x530   : > { %5344 = vmatprep.subr.bf16.mxu0 %v9845_v49 }
 0x533   : > { %5345 = vmatpush1.bf16.msra.mxu0 %v9843_v51 }
 0x534   : > { %5346 = vmatprep.subr.bf16.mxu0 %v9851_v53 }
 0x537   : > { %5347 = vmatpush1.bf16.msra.mxu0 %v9849_v52 }
 0x538   : > { %5433 = vmatprep.subr.bf16.mxu0 %v9860_v54 }
 0x5ad   : > { %v4439_v55 = vpop.f32.mrb[72].mxu0  ;;  %v4489_v56 = vpop.f32.mrb[72].mxu1 }
 0x5ae   : > { %v4441_v57 = vpop.f32.mrb[73].mxu0  ;;  %v4491_v58 = vpop.f32.mrb[73].mxu1  ;;  %v4670_v61 = vrot.slane %v4489_v56, 2 }
 0x5af   : > { %v4443_v59 = vpop.f32.mrb[74].mxu0  ;;  %v4493_v60 = vpop.f32.mrb[74].mxu1  ;;  %v4658_v1 = vrot.slane %v4441_v57, 1  ;;  %v4682_v3 = vrot.slane %v4491_v58, 3 }
 0x5b0   : > { %v4671_v62 = vrot.slane %v4493_v60, 2  ;;  %v4445_v63 = vpop.f32.mrb[75].mxu0  ;;  %v4495_v0 = vpop.f32.mrb[75].mxu1 }
 0x5b1   : > { %v4659_v5 = vrot.slane %v4445_v63, 1  ;;  %v4683_v6 = vrot.slane %v4495_v0, 3 }
 0x5b2   : > { %v4672_v7 = vsel %vm1438_vm1, %v4670_v61, %v4671_v62 }
 0x5b3   : > { %v4660_v8 = vsel %vm1425_vm0, %v4658_v1, %v4659_v5  ;;  %v4684_v9 = vsel %vm1451_vm2, %v4682_v3, %v4683_v6 }
 0x5b4   : > { %v4665_v10 = vadd.f32 %v4660_v8, %v4439_v55 }
 0x5b5   : > { %v4449_v11 = vpop.f32.mrb[76].mxu0  ;;  %v4499_v13 = vpop.f32.mrb[76].mxu1 }
 0x5b6   : > { %v4677_v15 = vadd.f32 %v4672_v7, %v4665_v10  ;;  %v4673_v16 = vrot.slane %v4499_v13, 2  ;;  %v4450_v17 = vpop.f32.mrb[77].mxu0  ;;  %v4501_v18 = vpop.f32.mrb[77].mxu1 }
 0x5b7   : > { %v4661_v19 = vrot.slane %v4450_v17, 1  ;;  %v4685_v20 = vrot.slane %v4501_v18, 3  ;;  %v4452_v21 = vpop.f32.mrb[78].mxu0  ;;  %v4503_v22 = vpop.f32.mrb[78].mxu1 }
 0x5b8   : > { %v4689_v23 = vadd.f32 %v4684_v9, %v4677_v15  ;;  %v4674_v25 = vsel %vm1438_vm1, %v4671_v62, %v4673_v16  ;;  %v4453_v29 = vpop.f32.mrb[79].mxu0  ;;  %v4504_v30 = vpop.f32.mrb[79].mxu1 }
 0x5b9   : > { %v4662_v31 = vsel %vm1425_vm0, %v4659_v5, %v4661_v19  ;;  %v4686_v32 = vsel %vm1451_vm2, %v4683_v6, %v4685_v20  ;;  %v4741_v20 = vld [vmem:[%s12864_s10] sm:$0x3] }
 0x5ba   : > { %v4666_v33 = vadd.f32 %v4662_v31, %v4443_v59  ;;  %v4745_v21 = vrot.slane %v4741_v20, %v10759_v12 }
 0x5bc   : > { %v4678_v34 = vadd.f32 %v4674_v25, %v4666_v33  ;;  %v4751_v25 = vrot.slane %v4741_v20, %v10764_v14  ;;  %v9909_v20 = vld [vmem:[%s12867_s13 + $0xf4] ss:$36 sps:$4 sm:$0xff]  }
 0x5be   : > { %v4690_v35 = vadd.f32 %v4686_v32, %v4678_v34 }
 0x5cd   : > { %v4540_v37 = vpop.f32.mrb[80].mxu0  ;;  %v4591_v24 = vpop.f32.mrb[80].mxu1 }
 0x5ce   : > { %v4542_v26 = vpop.f32.mrb[81].mxu0  ;;  %v4593_v41 = vpop.f32.mrb[81].mxu1  ;;  %v4694_v42 = vrot.slane %v4540_v37, 4  ;;  %v4718_v43 = vrot.slane %v4591_v24, 6 }
 0x5cf   : > { %v4544_v27 = vpop.f32.mrb[82].mxu0  ;;  %v4595_v28 = vpop.f32.mrb[82].mxu1  ;;  %v4706_v48 = vrot.slane %v4542_v26, 5  ;;  %v4730_v49 = vrot.slane %v4593_v41, 7 }
 0x5d0   : > { %v4695_v44 = vrot.slane %v4544_v27, 4  ;;  %v4719_v45 = vrot.slane %v4595_v28, 6  ;;  %v4546_v46 = vpop.f32.mrb[83].mxu0  ;;  %v4597_v47 = vpop.f32.mrb[83].mxu1  ;;  %v9846_v28 = vld [vmem:[%s12867_s13 + $0x8] ss:$36 sps:$4 sm:$0xff]  }
 0x5d1   : > { %v4707_v50 = vrot.slane %v4546_v46, 5  ;;  %v4731_v51 = vrot.slane %v4597_v47, 7  ;;  %v9863_v47 = vld [vmem:[%s12867_s13 + $0xe4] ss:$36 sps:$4 sm:$0xff]  }
 0x5d2   : > { %v4696_v52 = vsel %vm1464_vm3, %v4694_v42, %v4695_v44  ;;  %v4720_v53 = vsel %vm1490_vm5, %v4718_v43, %v4719_v45  ;;  %v9854_v43 = vld [vmem:[%s12867_s13 + $0x54] ss:$36 sps:$4 sm:$0xff]  }
 0x5d3   : > { %v4701_v54 = vadd.f32 %v4696_v52, %v4689_v23  ;;  %v4708_v55 = vsel %vm1477_vm4, %v4706_v48, %v4707_v50  ;;  %v4732_v56 = vsel %vm1503_vm6, %v4730_v49, %v4731_v51  ;;  %v9866_v48 = vld [vmem:[%s12867_s13 + $0x5c] ss:$36 sps:$4 sm:$0xff]   ;;  %v9872_v52 = vld [vmem:[%s12867_s13 + $0xa4] ss:$36 sps:$4 sm:$0xff]  }
 0x5d4   : > { %v9861_v49 = vld [vmem:[%s12867_s13 + $0xe0] ss:$36 sps:$4 sm:$0xff]  }
 0x5d5   : > { %v4713_v57 = vadd.f32 %v4708_v55, %v4701_v54  ;;  %v4550_v58 = vpop.f32.mrb[84].mxu0  ;;  %v4601_v59 = vpop.f32.mrb[84].mxu1  ;;  %v9867_v54 = vld [vmem:[%s12867_s13 + $0x128] ss:$36 sps:$4 sm:$0xff]   ;;  %v9870_v55 = vld [vmem:[%s12867_s13 + $0xa0] ss:$36 sps:$4 sm:$0xff]  }
 0x5d6   : > { %v4697_v60 = vrot.slane %v4550_v58, 4  ;;  %v4721_v61 = vrot.slane %v4601_v59, 6  ;;  %v4552_v62 = vpop.f32.mrb[85].mxu0  ;;  %v4603_v63 = vpop.f32.mrb[85].mxu1  ;;  %v9878_v58 = vld [vmem:[%s12867_s13 + $0xec] ss:$36 sps:$4 sm:$0xff]  }
 0x5d7   : > { %v4709_v0 = vrot.slane %v4552_v62, 5  ;;  %v4733_v1 = vrot.slane %v4603_v63, 7  ;;  %v4554_v3 = vpop.f32.mrb[86].mxu0  ;;  %v4605_v5 = vpop.f32.mrb[86].mxu1  ;;  %v4725_v6 = vadd.f32 %v4720_v53, %v4713_v57  ;;  %v9875_v57 = vld [vmem:[%s12867_s13 + $0x174] ss:$36 sps:$4 sm:$0xff]  }
 0x5d8   : > { %v4698_v7 = vsel %vm1464_vm3, %v4695_v44, %v4697_v60  ;;  %v4722_v8 = vsel %vm1490_vm5, %v4719_v45, %v4721_v61  ;;  %v4555_v9 = vpop.f32.mrb[87].mxu0  ;;  %v4606_v10 = vpop.f32.mrb[87].mxu1  ;;  %v9873_v59 = vld [vmem:[%s12867_s13 + $0x170] ss:$36 sps:$4 sm:$0xff]   ;;  %v9876_v60 = vld [vmem:[%s12867_s13 + $0xe8] ss:$36 sps:$4 sm:$0xff]  }
 0x5d9   : > { %v4702_v11 = vadd.f32 %v4698_v7, %v4690_v35  ;;  %v4710_v13 = vsel %vm1477_vm4, %v4707_v50, %v4709_v0  ;;  %v4734_v15 = vsel %vm1503_vm6, %v4731_v51, %v4733_v1  ;;  %v4737_v16 = vadd.f32 %v4732_v56, %v4725_v6  ;;  %v9864_v50 = vld [vmem:[%s12867_s13 + $0x58] ss:$36 sps:$4 sm:$0xff]   ;;  %v9869_v51 = vld [vmem:[%s12867_s13 + $0x12c] ss:$36 sps:$4 sm:$0xff]   ;;  %v9887_v1 = vld [vmem:[%s12867_s13 + $0x204] ss:$36 sps:$4 sm:$0xff]  }
 0x5da   : > { %v9881_v61 = vld [vmem:[%s12867_s13 + $0x1bc] ss:$36 sps:$4 sm:$0xff]   ;;  %v9884_v62 = vld [vmem:[%s12867_s13 + $0x134] ss:$36 sps:$4 sm:$0xff]   ;;  %v9893_v7 = vld [vmem:[%s12867_s13 + $0x1c4] ss:$36 sps:$4 sm:$0xff]  }
 0x5db   : > { %v4714_v17 = vadd.f32 %v4710_v13, %v4702_v11  ;;  %v9879_v63 = vld [vmem:[%s12867_s13 + $0x1b8] ss:$36 sps:$4 sm:$0xff]   ;;  %v9882_v0 = vld [vmem:[%s12867_s13 + $0x130] ss:$36 sps:$4 sm:$0xff]   ;;  %v9885_v5 = vld [vmem:[%s12867_s13 + $0x200] ss:$36 sps:$4 sm:$0xff]  }
 0x5dc   : > { %v9890_v3 = vld [vmem:[%s12867_s13 + $0x17c] ss:$36 sps:$4 sm:$0xff]   ;;  %v9899_v11 = vld [vmem:[%s12867_s13 + $0x20c] ss:$36 sps:$4 sm:$0xff]   ;;  %v9902_v13 = vld [vmem:[%s12867_s13 + $0x64] ss:$36 sps:$4 sm:$0xff]  }
 0x5dd   : > { %v4726_v18 = vadd.f32 %v4722_v8, %v4714_v17  ;;  %v9888_v6 = vld [vmem:[%s12867_s13 + $0x178] ss:$36 sps:$4 sm:$0xff]   ;;  %v9891_v9 = vld [vmem:[%s12867_s13 + $0x1c0] ss:$36 sps:$4 sm:$0xff]   ;;  %v9905_v17 = vld [vmem:[%s12867_s13 + $0xac] ss:$36 sps:$4 sm:$0xff]  }
 0x5de   : > { %v9896_v8 = vld [vmem:[%s12867_s13 + $0x1c] ss:$36 sps:$4 sm:$0xff]  }
 0x5df   : > { %v4738_v19 = vadd.f32 %v4734_v15, %v4726_v18  ;;  %v9894_v10 = vld [vmem:[%s12867_s13 + $0x18] ss:$36 sps:$4 sm:$0xff]   ;;  %v9897_v15 = vld [vmem:[%s12867_s13 + $0x208] ss:$36 sps:$4 sm:$0xff]   ;;  %v9906_v18 = vld [vmem:[%s12867_s13 + $0x20] ss:$36 sps:$4 sm:$0xff]  }
 0x5ed   : > { %v9164_v22 = vpop.f32.mrb[88].mxu0 }
 0x5ee   : > { %v4740_v23 = vadd.f32 %v9164_v22, %v4738_v19  ;;  %v4642_v29 = vpop.f32.mrb[89].mxu0  ;;  %v9903_v19 = vld [vmem:[%s12867_s13 + $0xa8] ss:$36 sps:$4 sm:$0xff]   ;;  %v9907_v22 = vld [vmem:[%s12867_s13 + $0xf0] ss:$36 sps:$4 sm:$0xff]  }
 0x5ef   : > { %v9165_v30 = vpop.f32.mrb[90].mxu0  ;;  %v9911_v29 = vld [vmem:[%s12867_s13 + $0x138] ss:$36 sps:$4 sm:$0xff]  }
 0x5f0   : > { %v4747_v31 = vmul.f32 %v4745_v21, %v4740_v23  ;;  %v4644_v32 = vpop.f32.mrb[91].mxu0  ;;  %v9913_v23 = vld [vmem:[%s12867_s13 + $0x13c] ss:$36 sps:$4 sm:$0xff]   ;;  %v9917_v30 = vld [vmem:[%s12867_s13 + $0x184] ss:$36 sps:$4 sm:$0xff]  }
 0x5f1   : > { %v4739_v33 = vadd.f32 %v4737_v16, %v4644_v32  ;;  %v9900_v16 = vld [vmem:[%s12867_s13 + $0x60] ss:$36 sps:$4 sm:$0xff]  }
 0x5f2   : > { %v4753_v34 = vadd.f32 %v4751_v25, %v4747_v31  ;;  %v9918_v31 = vld [vmem:[%s12867_s13 + $0xf8] ss:$36 sps:$4 sm:$0xff]   ;;  %v9915_v32 = vld [vmem:[%s12867_s13 + $0x180] ss:$36 sps:$4 sm:$0xff]  }
 0x5f3   : > { %v4746_v35 = vmul.f32 %v4745_v21, %v4739_v33  ;;  %v9910_v21 = vld [vmem:[%s12867_s13 + $0x68] ss:$36 sps:$4 sm:$0xff]  }
 0x5f4   : > { %v4755_v37 = vadd.f32 %v4753_v34, %v3143_v38  ;;  %v9857_v38 = vld [vmem:[%s12867_s13 + $0x9c] ss:$36 sps:$4 sm:$0xff]   ;;  %v9921_v33 = vld [vmem:[%s12867_s13 + $0x1cc] ss:$36 sps:$4 sm:$0xff]  }
 0x5f5   : > { %v4752_v24 = vadd.f32 %v4751_v25, %v4746_v35  ;;  %v9914_v25 = vld [vmem:[%s12867_s13 + $0xb0] ss:$36 sps:$4 sm:$0xff]   ;;  %v9922_v34 = vld [vmem:[%s12867_s13 + $0x140] ss:$36 sps:$4 sm:$0xff]   ;;  %v9919_v35 = vld [vmem:[%s12867_s13 + $0x1c8] ss:$36 sps:$4 sm:$0xff]  }
 0x5f6   : > { %v4757_v26 = vmax.f32 %v4755_v37, 0.0  ;;  %v9925_v37 = vld [vmem:[%s12867_s13 + $0x214] ss:$36 sps:$4 sm:$0xff]  }
 0x5f7   : > { %v4754_v41 = vadd.f32 %v4752_v24, %v3142_v40  ;;  %v9858_v40 = vld [vmem:[%s12867_s13 + $0x10] ss:$36 sps:$4 sm:$0xff]   ;;  %v9926_v24 = vld [vmem:[%s12867_s13 + $0x188] ss:$36 sps:$4 sm:$0xff]  }
 0x5f8   : > { %4878 = vst [vmem:[#allocation2 + $0xc] sm:$0xff] %v4757_v26 }
 0x5f9   : > { %v4756_v27 = vmax.f32 %v4754_v41, 0.0  ;;  %v9927_v41 = vld [vmem:[%s12867_s13 + $0x1d0] ss:$36 sps:$4 sm:$0xff]  }
 0x5fb   : > { %v4758_v42 = vpack.c.bf16 %v4757_v26, %v4756_v27  ;;  %4877 = vst [vmem:[#allocation2 + $0x4] sm:$0xff] %v4756_v27  ;;  %v9923_v26 = vld [vmem:[%s12867_s13 + $0x210] ss:$36 sps:$4 sm:$0xff]   ;;  %v9928_v27 = vld [vmem:[%s12867_s13 + $0x218] ss:$36 sps:$4 sm:$0xff]  }
 0x5fd   : > { %9183 = vmatmul.mubr.bf16.vlgmr.msra.gmra.mrb[88].mxu1 %v4758_v42  ;;  %v9934_v42 = vld [vmem:[%s12869_s15 + $0xc] ss:$36 sps:$4 sm:$0xff]  }
 0x5fe   : > { %5383 = vmatpush1.bf16.msra.mxu1 %v9846_v28  ;;  %5414 = vmatprep.mubr.bf16.mxu1 %v10257_v2  ;;  %v9931_v28 = vld [vmem:[%s12869_s15 + $0x4] ss:$36 sps:$4 sm:$0xff]  }
 0x5ff   : > { %5384 = vmatprep.subr.bf16.mxu1 %v9854_v43  ;;  %v4881_v53 = vld [vmem:[#allocation2 + $0x10] sm:$0xff]  ;;  %v9929_v43 = vld [vmem:[%s12869_s15] ss:$36 sps:$4 sm:$0xff]  }
 0x600   : > { %v11856_v56 = vpack.c.bf16 %v4881_v53, %v4881_v53  ;;  %v9955_v53 = vld [vmem:[%s12869_s15 + $0x124] ss:$36 sps:$4 sm:$0xff]  }
 0x602   : > { %5385 = vmatpush1.bf16.msra.mxu1 %v9852_v36  ;;  %v4879_v44 = vld [vmem:[#allocation2] sm:$0xff]  ;;  %v4880_v45 = vld [vmem:[#allocation2 + $0x8] sm:$0xff] }
 0x603   : > { %5386 = vmatprep.subr.bf16.mxu1 %v9857_v38  ;;  %v11828_v46 = vpack.c.bf16 %v4880_v45, %v4879_v44  ;;  %v9932_v36 = vld [vmem:[%s12869_s15 + $0x8] ss:$36 sps:$4 sm:$0xff]   ;;  %v9938_v44 = vld [vmem:[%s12869_s15 + $0x50] ss:$36 sps:$4 sm:$0xff]  }
 0x604   : > { %v9937_v38 = vld [vmem:[%s12869_s15 + $0x4c] ss:$36 sps:$4 sm:$0xff]   ;;  %v9943_v45 = vld [vmem:[%s12869_s15 + $0x94] ss:$36 sps:$4 sm:$0xff]  }
 0x605   : > { %5365 = vmatmul.mubr.bf16.vlgmr.msra.gmra.mrb[92].mxu0 %v11828_v46 }
 0x606   : > { %5387 = vmatpush1.bf16.msra.mxu1 %v9855_v39  ;;  %5434 = vmatpush1.bf16.msra.mxu0 %v9858_v40  ;;  %v9940_v39 = vld [vmem:[%s12869_s15 + $0x54] ss:$36 sps:$4 sm:$0xff]   ;;  %v9935_v40 = vld [vmem:[%s12869_s15 + $0x48] ss:$36 sps:$4 sm:$0xff]  }
 0x607   : > { %5388 = vmatprep.subr.bf16.mxu1 %v9863_v47  ;;  %5435 = vmatprep.subr.bf16.mxu0 %v9866_v48  ;;  %v9941_v47 = vld [vmem:[%s12869_s15 + $0x90] ss:$36 sps:$4 sm:$0xff]   ;;  %v9944_v48 = vld [vmem:[%s12869_s15 + $0x98] ss:$36 sps:$4 sm:$0xff]  }
 0x608   : > { %5374 = vmatprep.mubr.bf16.mxu0 %v10257_v2 }
 0x60a   : > { %5389 = vmatpush1.bf16.msra.mxu1 %v9861_v49  ;;  %5436 = vmatpush1.bf16.msra.mxu0 %v9864_v50  ;;  %v9949_v49 = vld [vmem:[%s12869_s15 + $0xdc] ss:$36 sps:$4 sm:$0xff]   ;;  %v9952_v50 = vld [vmem:[%s12869_s15 + $0xe4] ss:$36 sps:$4 sm:$0xff]  }
 0x60b   : > { %5390 = vmatprep.subr.bf16.mxu1 %v9869_v51  ;;  %5437 = vmatprep.subr.bf16.mxu0 %v9872_v52  ;;  %v9947_v51 = vld [vmem:[%s12869_s15 + $0xd8] ss:$36 sps:$4 sm:$0xff]   ;;  %v9950_v52 = vld [vmem:[%s12869_s15 + $0xe0] ss:$36 sps:$4 sm:$0xff]  }
 0x60d   : > { %5375 = vmatmul.mubr.bf16.gmra.mrb[96].mxu0 %v11856_v56 }
 0x60e   : > { %5391 = vmatpush1.bf16.msra.mxu1 %v9867_v54  ;;  %5438 = vmatpush1.bf16.msra.mxu0 %v9870_v55  ;;  %v9958_v54 = vld [vmem:[%s12869_s15 + $0x12c] ss:$36 sps:$4 sm:$0xff]   ;;  %v9953_v55 = vld [vmem:[%s12869_s15 + $0x120] ss:$36 sps:$4 sm:$0xff]  }
 0x60f   : > { %5392 = vmatprep.subr.bf16.mxu1 %v9875_v57  ;;  %5439 = vmatprep.subr.bf16.mxu0 %v9878_v58  ;;  %v9961_v57 = vld [vmem:[%s12869_s15 + $0x16c] ss:$36 sps:$4 sm:$0xff]   ;;  %v9964_v58 = vld [vmem:[%s12869_s15 + $0x174] ss:$36 sps:$4 sm:$0xff]  }
 0x610   : > { %5465 = vmatprep.mubr.bf16.mxu0 %v10257_v2 }
 0x612   : > { %5393 = vmatpush1.bf16.msra.mxu1 %v9873_v59  ;;  %5440 = vmatpush1.bf16.msra.mxu0 %v9876_v60  ;;  %v9959_v59 = vld [vmem:[%s12869_s15 + $0x168] ss:$36 sps:$4 sm:$0xff]   ;;  %v9962_v60 = vld [vmem:[%s12869_s15 + $0x170] ss:$36 sps:$4 sm:$0xff]  }
 0x613   : > { %5394 = vmatprep.subr.bf16.mxu1 %v9881_v61  ;;  %5441 = vmatprep.subr.bf16.mxu0 %v9884_v62  ;;  %v9965_v61 = vld [vmem:[%s12869_s15 + $0x1b0] ss:$36 sps:$4 sm:$0xff]  }
 0x614   : > { %v9967_v62 = vld [vmem:[%s12869_s15 + $0x1b4] ss:$36 sps:$4 sm:$0xff]  }
 0x616   : > { %5395 = vmatpush1.bf16.msra.mxu1 %v9879_v63  ;;  %5442 = vmatpush1.bf16.msra.mxu0 %v9882_v0  ;;  %v9968_v63 = vld [vmem:[%s12869_s15 + $0x1b8] ss:$36 sps:$4 sm:$0xff]  }
 0x617   : > { %5396 = vmatprep.subr.bf16.mxu1 %v9887_v1  ;;  %5443 = vmatprep.subr.bf16.mxu0 %v9890_v3  ;;  %v9970_v0 = vld [vmem:[%s12869_s15 + $0x1bc] ss:$36 sps:$4 sm:$0xff]   ;;  %v9976_v3 = vld [vmem:[%s12869_s15 + $0x204] ss:$36 sps:$4 sm:$0xff]  }
 0x618   : > { %v9973_v1 = vld [vmem:[%s12869_s15 + $0x1fc] ss:$36 sps:$4 sm:$0xff]  }
 0x61a   : > { %5397 = vmatpush1.bf16.msra.mxu1 %v9885_v5  ;;  %5444 = vmatpush1.bf16.msra.mxu0 %v9888_v6  ;;  %v9971_v5 = vld [vmem:[%s12869_s15 + $0x1f8] ss:$36 sps:$4 sm:$0xff]   ;;  %v9974_v6 = vld [vmem:[%s12869_s15 + $0x200] ss:$36 sps:$4 sm:$0xff]  }
 0x61b   : > { %5445 = vmatprep.subr.bf16.mxu0 %v9893_v7  ;;  %5484 = vmatprep.subr.bf16.mxu1 %v9896_v8  ;;  %v9979_v7 = vld [vmem:[%s12869_s15 + $0x14] ss:$36 sps:$4 sm:$0xff]   ;;  %v9982_v8 = vld [vmem:[%s12869_s15 + $0x1c] ss:$36 sps:$4 sm:$0xff]  }
 0x61d   : > { %5415 = vmatmul.mubr.bf16.vlgmr.msra.gmra.mrb[92].mxu1 %v11828_v46 }
 0x61e   : > { %5446 = vmatpush1.bf16.msra.mxu0 %v9891_v9  ;;  %5485 = vmatpush1.bf16.msra.mxu1 %v9894_v10 }
 0x61f   : > { %5447 = vmatprep.subr.bf16.mxu0 %v9899_v11  ;;  %5486 = vmatprep.subr.bf16.mxu1 %v9902_v13 }
 0x620   : > { %5424 = vmatprep.mubr.bf16.mxu1 %v10257_v2 }
 0x622   : > { %5448 = vmatpush1.bf16.msra.mxu0 %v9897_v15  ;;  %5487 = vmatpush1.bf16.msra.mxu1 %v9900_v16 }
 0x623   : > { %5488 = vmatprep.subr.bf16.mxu1 %v9905_v17  ;;  %9186 = vmatprep.subr.bf16.mxu0 %v9906_v18 }
 0x625   : > { %5425 = vmatmul.mubr.bf16.gmra.mrb[96].mxu1 %v11856_v56  ;;  %5466 = vmatmul.mubr.bf16.vlgmr.msra.gmra.mrb[100].mxu0 %v11828_v46 }
 0x626   : > { %5489 = vmatpush1.bf16.msra.mxu1 %v9903_v19  ;;  %9187 = vmatpush3.bf16.msra.mxu0 %v9906_v18 }
 0x627   : > { %5490 = vmatprep.subr.bf16.mxu1 %v9909_v20  ;;  %9188 = vmatprep.subr.bf16.mxu0 %v9910_v21 }
 0x628   : > { %5475 = vmatprep.mubr.bf16.mxu0 %v10257_v2  ;;  %5516 = vmatprep.mubr.bf16.mxu1 %v10257_v2 }
 0x62a   : > { %5491 = vmatpush1.bf16.msra.mxu1 %v9907_v22  ;;  %9189 = vmatpush3.bf16.msra.mxu0 %v9910_v21 }
 0x62b   : > { %5492 = vmatprep.subr.bf16.mxu1 %v9913_v23  ;;  %9190 = vmatprep.subr.bf16.mxu0 %v9914_v25 }
 0x62d   : > { %5476 = vmatmul.mubr.bf16.gmra.mrb[104].mxu0 %v11856_v56 }
 0x62e   : > { %5493 = vmatpush1.bf16.msra.mxu1 %v9911_v29  ;;  %9191 = vmatpush3.bf16.msra.mxu0 %v9914_v25 }
 0x62f   : > { %9202 = vmatprep.mubr.bf16.mxu0 %v11828_v46  ;;  %5494 = vmatprep.subr.bf16.mxu1 %v9917_v30 }
 0x630   : > { %9192 = vmatprep.subr.bf16.mxu0 %v9918_v31 }
 0x632   : > { %5495 = vmatpush1.bf16.msra.mxu1 %v9915_v32  ;;  %9193 = vmatpush3.bf16.msra.mxu0 %v9918_v31 }
 0x633   : > { %5496 = vmatprep.subr.bf16.mxu1 %v9921_v33  ;;  %9194 = vmatprep.subr.bf16.mxu0 %v9922_v34 }
 0x636   : > { %5497 = vmatpush1.bf16.msra.mxu1 %v9919_v35  ;;  %9195 = vmatpush3.bf16.msra.mxu0 %v9922_v34 }
 0x637   : > { %5498 = vmatprep.subr.bf16.mxu1 %v9925_v37  ;;  %9196 = vmatprep.subr.bf16.mxu0 %v9926_v24 }
 0x63a   : > { %5499 = vmatpush1.bf16.msra.mxu1 %v9923_v26  ;;  %9197 = vmatpush3.bf16.msra.mxu0 %v9926_v24 }
 0x63b   : > { %9198 = vmatprep.subr.bf16.mxu0 %v9927_v41  ;;  %6138 = vmatprep.subr.bf16.mxu1 %v9931_v28 }
 0x63d   : > { %5517 = vmatmul.mubr.bf16.vlgmr.msra.gmra.mrb[100].mxu1 %v11828_v46  ;;  %v9946_v46 = vld [vmem:[%s12869_s15 + $0x9c] ss:$36 sps:$4 sm:$0xff]  }
 0x63e   : > { %9199 = vmatpush3.bf16.msra.mxu0 %v9927_v41  ;;  %5526 = vmatprep.mubr.bf16.mxu1 %v10257_v2 }
 0x63f   : > { %9200 = vmatprep.subr.bf16.mxu0 %v9928_v27  ;;  %6139 = vmatpush1.bf16.msra.mxu1 %v9929_v43 }
 0x640   : > { %6140 = vmatprep.subr.bf16.mxu1 %v9937_v38 }
 0x642   : > { %9201 = vmatpush3.bf16.msra.mxu0 %v9928_v27 }
 0x643   : > { %6188 = vmatprep.subr.bf16.mxu0 %v9934_v42  ;;  %6141 = vmatpush1.bf16.msra.mxu1 %v9935_v40 }
 0x644   : > { %6142 = vmatprep.subr.bf16.mxu1 %v9943_v45 }
 0x645   : > { %5527 = vmatmul.mubr.bf16.gmra.mrb[104].mxu1 %v11856_v56  ;;  %9203 = vmatmul.mubr.bf16.vlgmr.msra.gmra.mrb[108].mxu0 %v11856_v56  ;;  %v9956_v56 = vld [vmem:[%s12869_s15 + $0x128] ss:$36 sps:$4 sm:$0xff]  }
 0x646   : > { %6170 = vmatprep.mubr.bf16.mxu1 %v10257_v2  ;;  %6220 = vmatprep.mubr.bf16.mxu0 %v10257_v2 }
 0x647   : > { %6189 = vmatpush1.bf16.msra.mxu0 %v9932_v36  ;;  %6143 = vmatpush1.bf16.msra.mxu1 %v9941_v47 }
 0x648   : > { %6190 = vmatprep.subr.bf16.mxu0 %v9940_v39  ;;  %6144 = vmatprep.subr.bf16.mxu1 %v9949_v49 }
 0x64b   : > { %6191 = vmatpush1.bf16.msra.mxu0 %v9938_v44  ;;  %6145 = vmatpush1.bf16.msra.mxu1 %v9947_v51 }
 0x64c   : > { %6192 = vmatprep.subr.bf16.mxu0 %v9946_v46  ;;  %6146 = vmatprep.subr.bf16.mxu1 %v9955_v53 }
 0x64f   : > { %6193 = vmatpush1.bf16.msra.mxu0 %v9944_v48  ;;  %6147 = vmatpush1.bf16.msra.mxu1 %v9953_v55 }
 0x650   : > { %6194 = vmatprep.subr.bf16.mxu0 %v9952_v50  ;;  %6148 = vmatprep.subr.bf16.mxu1 %v9961_v57 }
 0x653   : > { %6195 = vmatpush1.bf16.msra.mxu0 %v9950_v52  ;;  %6149 = vmatpush1.bf16.msra.mxu1 %v9959_v59 }
 0x654   : > { %6196 = vmatprep.subr.bf16.mxu0 %v9958_v54  ;;  %6150 = vmatprep.subr.bf16.mxu1 %v9967_v62 }
 0x657   : > { %6197 = vmatpush1.bf16.msra.mxu0 %v9956_v56  ;;  %6151 = vmatpush1.bf16.msra.mxu1 %v9965_v61 }
 0x658   : > { %6198 = vmatprep.subr.bf16.mxu0 %v9964_v58  ;;  %6152 = vmatprep.subr.bf16.mxu1 %v9973_v1 }
 0x65b   : > { %6199 = vmatpush1.bf16.msra.mxu0 %v9962_v60  ;;  %6153 = vmatpush1.bf16.msra.mxu1 %v9971_v5 }
 0x65c   : > { %6200 = vmatprep.subr.bf16.mxu0 %v9970_v0  ;;  %6239 = vmatprep.subr.bf16.mxu1 %v9979_v7 }
 0x65f   : > { %6201 = vmatpush1.bf16.msra.mxu0 %v9968_v63 }
 0x660   : > { %6202 = vmatprep.subr.bf16.mxu0 %v9976_v3 }
 0x663   : > { %6203 = vmatpush1.bf16.msra.mxu0 %v9974_v6 }
 0x664   : > { %6290 = vmatprep.subr.bf16.mxu0 %v9982_v8 }
 0x6d0   : > { %v12096_v9 = vpop.f32.mrb[88].mxu1 }
 0x6d1   : > { %v9184_v10 = vpop.f32.mrb[89].mxu1 }
 0x6d2   : > { %v12098_v11 = vpop.f32.mrb[90].mxu1 }
 0x6d3   : > { %v9185_v13 = vpop.f32.mrb[91].mxu1 }
 0x6d8   : > { %v5366_v15 = vpop.f32.mrb[92].mxu0 }
 0x6d9   : > { %v5368_v16 = vpop.f32.mrb[93].mxu0 }
 0x6da   : > { %v5370_v17 = vpop.f32.mrb[94].mxu0  ;;  %v5585_v19 = vrot.slane %v5368_v16, 1 }
 0x6db   : > { %v5372_v18 = vpop.f32.mrb[95].mxu0 }
 0x6dc   : > { %v5586_v20 = vrot.slane %v5372_v18, 1 }
 0x6de   : > { %v5587_v21 = vsel %vm1425_vm0, %v5585_v19, %v5586_v20 }
 0x6df   : > { %v5592_v22 = vadd.f32 %v5587_v21, %v5366_v15 }
 0x6e0   : > { %v5376_v23 = vpop.f32.mrb[96].mxu0 }
 0x6e1   : > { %v5377_v25 = vpop.f32.mrb[97].mxu0 }
 0x6e2   : > { %v5588_v29 = vrot.slane %v5377_v25, 1  ;;  %v5379_v30 = vpop.f32.mrb[98].mxu0 }
 0x6e3   : > { %v5380_v31 = vpop.f32.mrb[99].mxu0 }
 0x6e4   : > { %v5589_v32 = vsel %vm1425_vm0, %v5586_v20, %v5588_v29  ;;  %v5668_v31 = vld [vmem:[%s12868_s14] sm:$0x3] }
 0x6e5   : > { %v5593_v33 = vadd.f32 %v5589_v32, %v5370_v17 }
 0x6f0   : > { %v5416_v34 = vpop.f32.mrb[92].mxu1 }
 0x6f1   : > { %v5418_v35 = vpop.f32.mrb[93].mxu1  ;;  %v5597_v24 = vrot.slane %v5416_v34, 2 }
 0x6f2   : > { %v5420_v37 = vpop.f32.mrb[94].mxu1  ;;  %v5609_v27 = vrot.slane %v5418_v35, 3 }
 0x6f3   : > { %v5598_v26 = vrot.slane %v5420_v37, 2  ;;  %v5422_v41 = vpop.f32.mrb[95].mxu1 }
 0x6f4   : > { %v5610_v28 = vrot.slane %v5422_v41, 3 }
 0x6f5   : > { %v5599_v42 = vsel %vm1438_vm1, %v5597_v24, %v5598_v26 }
 0x6f6   : > { %v5604_v43 = vadd.f32 %v5599_v42, %v5592_v22  ;;  %v5611_v36 = vsel %vm1451_vm2, %v5609_v27, %v5610_v28 }
 0x6f8   : > { %v5616_v38 = vadd.f32 %v5611_v36, %v5604_v43  ;;  %v5426_v39 = vpop.f32.mrb[96].mxu1  ;;  %v5467_v40 = vpop.f32.mrb[100].mxu0 }
 0x6f9   : > { %v5600_v44 = vrot.slane %v5426_v39, 2  ;;  %v5428_v45 = vpop.f32.mrb[97].mxu1  ;;  %v5469_v46 = vpop.f32.mrb[101].mxu0  ;;  %v5621_v51 = vrot.slane %v5467_v40, 4 }
 0x6fa   : > { %v5612_v47 = vrot.slane %v5428_v45, 3  ;;  %v5430_v48 = vpop.f32.mrb[98].mxu1  ;;  %v5471_v49 = vpop.f32.mrb[102].mxu0  ;;  %v5633_v57 = vrot.slane %v5469_v46, 5 }
 0x6fb   : > { %v5601_v50 = vsel %vm1438_vm1, %v5598_v26, %v5600_v44  ;;  %v5622_v52 = vrot.slane %v5471_v49, 4  ;;  %v5431_v53 = vpop.f32.mrb[99].mxu1  ;;  %v5473_v54 = vpop.f32.mrb[103].mxu0  ;;  %v5678_v44 = vrot.slane %v5668_v31, %v10764_v14 }
 0x6fc   : > { %v5605_v55 = vadd.f32 %v5601_v50, %v5593_v33  ;;  %v5613_v56 = vsel %vm1451_vm2, %v5610_v28, %v5612_v47  ;;  %v5634_v58 = vrot.slane %v5473_v54, 5  ;;  %v5672_v28 = vrot.slane %v5668_v31, %v10759_v12  ;;  %v9977_v53 = vld [vmem:[%s12869_s15 + $0x10] ss:$36 sps:$4 sm:$0xff]   ;;  %v9980_v54 = vld [vmem:[%s12869_s15 + $0x18] ss:$36 sps:$4 sm:$0xff]  }
 0x6fd   : > { %v5623_v59 = vsel %vm1464_vm3, %v5621_v51, %v5622_v52  ;;  %v10024_v31 = vld [vmem:[%s12869_s15 + $0x214] ss:$36 sps:$4 sm:$0xff]  }
 0x6fe   : > { %v5617_v60 = vadd.f32 %v5613_v56, %v5605_v55  ;;  %v5628_v61 = vadd.f32 %v5623_v59, %v5616_v38  ;;  %v5635_v62 = vsel %vm1477_vm4, %v5633_v57, %v5634_v58  ;;  %v9988_v59 = vld [vmem:[%s12869_s15 + $0x64] ss:$36 sps:$4 sm:$0xff]  }
 0x700   : > { %v5640_v63 = vadd.f32 %v5635_v62, %v5628_v61  ;;  %v5477_v0 = vpop.f32.mrb[104].mxu0  ;;  %v9986_v61 = vld [vmem:[%s12869_s15 + $0x60] ss:$36 sps:$4 sm:$0xff]  }
 0x701   : > { %v5624_v1 = vrot.slane %v5477_v0, 4  ;;  %v5479_v3 = vpop.f32.mrb[105].mxu0  ;;  %v9991_v62 = vld [vmem:[%s12869_s15 + $0xa4] ss:$36 sps:$4 sm:$0xff]  }
 0x702   : > { %v5636_v5 = vrot.slane %v5479_v3, 5  ;;  %v5481_v6 = vpop.f32.mrb[106].mxu0  ;;  %v9992_v3 = vld [vmem:[%s12869_s15 + $0xa8] ss:$36 sps:$4 sm:$0xff]  }
 0x703   : > { %v5625_v7 = vsel %vm1464_vm3, %v5622_v52, %v5624_v1  ;;  %v5482_v8 = vpop.f32.mrb[107].mxu0  ;;  %v9989_v1 = vld [vmem:[%s12869_s15 + $0xa0] ss:$36 sps:$4 sm:$0xff]   ;;  %v9997_v6 = vld [vmem:[%s12869_s15 + $0xec] ss:$36 sps:$4 sm:$0xff]  }
 0x704   : > { %v5629_v10 = vadd.f32 %v5625_v7, %v5617_v60  ;;  %v5637_v13 = vsel %vm1477_vm4, %v5634_v58, %v5636_v5  ;;  %v9985_v58 = vld [vmem:[%s12869_s15 + $0x5c] ss:$36 sps:$4 sm:$0xff]   ;;  %v10000_v7 = vld [vmem:[%s12869_s15 + $0xf4] ss:$36 sps:$4 sm:$0xff]   ;;  %v9995_v8 = vld [vmem:[%s12869_s15 + $0xe8] ss:$36 sps:$4 sm:$0xff]  }
 0x705   : > { %v9983_v60 = vld [vmem:[%s12869_s15 + $0x58] ss:$36 sps:$4 sm:$0xff]  }
 0x706   : > { %v5641_v15 = vadd.f32 %v5637_v13, %v5629_v10  ;;  %v9998_v10 = vld [vmem:[%s12869_s15 + $0xf0] ss:$36 sps:$4 sm:$0xff]  }
 0x707   : > { %v10003_v13 = vld [vmem:[%s12869_s15 + $0x134] ss:$36 sps:$4 sm:$0xff]  }
 0x710   : > { %v5518_v16 = vpop.f32.mrb[100].mxu1 }
 0x711   : > { %v5520_v17 = vpop.f32.mrb[101].mxu1  ;;  %v5645_v19 = vrot.slane %v5518_v16, 6  ;;  %v10001_v16 = vld [vmem:[%s12869_s15 + $0x130] ss:$36 sps:$4 sm:$0xff]  }
 0x712   : > { %v5522_v18 = vpop.f32.mrb[102].mxu1  ;;  %v5657_v22 = vrot.slane %v5520_v17, 7  ;;  %v10004_v17 = vld [vmem:[%s12869_s15 + $0x138] ss:$36 sps:$4 sm:$0xff]  }
 0x713   : > { %v5646_v20 = vrot.slane %v5522_v18, 6  ;;  %v5524_v21 = vpop.f32.mrb[103].mxu1  ;;  %v10009_v18 = vld [vmem:[%s12869_s15 + $0x17c] ss:$36 sps:$4 sm:$0xff]  }
 0x714   : > { %v5658_v23 = vrot.slane %v5524_v21, 7  ;;  %v10010_v21 = vld [vmem:[%s12869_s15 + $0x180] ss:$36 sps:$4 sm:$0xff]  }
 0x715   : > { %v5647_v25 = vsel %vm1490_vm5, %v5645_v19, %v5646_v20  ;;  %v10012_v19 = vld [vmem:[%s12869_s15 + $0x184] ss:$36 sps:$4 sm:$0xff]  }
 0x716   : > { %v5652_v29 = vadd.f32 %v5647_v25, %v5640_v63  ;;  %v5659_v30 = vsel %vm1503_vm6, %v5657_v22, %v5658_v23  ;;  %v9994_v63 = vld [vmem:[%s12869_s15 + $0xac] ss:$36 sps:$4 sm:$0xff]   ;;  %v10015_v22 = vld [vmem:[%s12869_s15 + $0x1c4] ss:$36 sps:$4 sm:$0xff]  }
 0x717   : > { %v10013_v25 = vld [vmem:[%s12869_s15 + $0x1c0] ss:$36 sps:$4 sm:$0xff]  }
 0x718   : > { %v5528_v32 = vpop.f32.mrb[104].mxu1  ;;  %v9204_v33 = vpop.f32.mrb[108].mxu0  ;;  %v5664_v34 = vadd.f32 %v5659_v30, %v5652_v29  ;;  %v10016_v29 = vld [vmem:[%s12869_s15 + $0x1c8] ss:$36 sps:$4 sm:$0xff]  }
 0x719   : > { %v5648_v35 = vrot.slane %v5528_v32, 6  ;;  %v5530_v37 = vpop.f32.mrb[105].mxu1  ;;  %v5569_v24 = vpop.f32.mrb[109].mxu0  ;;  %v10021_v30 = vld [vmem:[%s12869_s15 + $0x20c] ss:$36 sps:$4 sm:$0xff]  }
 0x71a   : > { %v5660_v26 = vrot.slane %v5530_v37, 7  ;;  %v5532_v41 = vpop.f32.mrb[106].mxu1  ;;  %v9205_v27 = vpop.f32.mrb[110].mxu0  ;;  %v10019_v32 = vld [vmem:[%s12869_s15 + $0x208] ss:$36 sps:$4 sm:$0xff]  }
 0x71b   : > { %v5649_v42 = vsel %vm1490_vm5, %v5646_v20, %v5648_v35  ;;  %v5533_v43 = vpop.f32.mrb[107].mxu1  ;;  %v5571_v36 = vpop.f32.mrb[111].mxu0  ;;  %v10007_v20 = vld [vmem:[%s12869_s15 + $0x178] ss:$36 sps:$4 sm:$0xff]   ;;  %v10026_v35 = vld [vmem:[%s12869_s15 + $0x68] ss:$36 sps:$4 sm:$0xff]  }
 0x71c   : > { %v5653_v38 = vadd.f32 %v5649_v42, %v5641_v15  ;;  %v5661_v39 = vsel %vm1503_vm6, %v5658_v23, %v5660_v26  ;;  %v5666_v40 = vadd.f32 %v5664_v34, %v5571_v36  ;;  %v10006_v15 = vld [vmem:[%s12869_s15 + $0x13c] ss:$36 sps:$4 sm:$0xff]   ;;  %v10018_v23 = vld [vmem:[%s12869_s15 + $0x1cc] ss:$36 sps:$4 sm:$0xff]   ;;  %v10035_v43 = vld [vmem:[%s12871_s17 + $0x4] ss:$36 sps:$4 sm:$0xff]  }
 0x71d   : > { %v10025_v34 = vld [vmem:[%s12869_s15 + $0x20] ss:$36 sps:$4 sm:$0xff]   ;;  %v10027_v37 = vld [vmem:[%s12869_s15 + $0xb0] ss:$36 sps:$4 sm:$0xff]   ;;  %v10028_v24 = vld [vmem:[%s12869_s15 + $0xf8] ss:$36 sps:$4 sm:$0xff]  }
 0x71e   : > { %v5665_v45 = vadd.f32 %v5661_v39, %v5653_v38  ;;  %v5673_v46 = vmul.f32 %v5672_v28, %v5666_v40  ;;  %v10029_v26 = vld [vmem:[%s12869_s15 + $0x140] ss:$36 sps:$4 sm:$0xff]   ;;  %v10030_v41 = vld [vmem:[%s12869_s15 + $0x188] ss:$36 sps:$4 sm:$0xff]   ;;  %v10031_v27 = vld [vmem:[%s12869_s15 + $0x1d0] ss:$36 sps:$4 sm:$0xff]  }
 0x71f   : > { %v10033_v42 = vld [vmem:[%s12871_s17] ss:$36 sps:$4 sm:$0xff]   ;;  %v10036_v36 = vld [vmem:[%s12871_s17 + $0x8] ss:$36 sps:$4 sm:$0xff]   ;;  %v10044_v40 = vld [vmem:[%s12871_s17 + $0x54] ss:$36 sps:$4 sm:$0xff]  }
 0x720   : > { %v5667_v47 = vadd.f32 %v9204_v33, %v5665_v45  ;;  %v5679_v48 = vadd.f32 %v5678_v44, %v5673_v46  ;;  %v10022_v33 = vld [vmem:[%s12869_s15 + $0x210] ss:$36 sps:$4 sm:$0xff]  }
 0x721   : > { %v10038_v38 = vld [vmem:[%s12871_s17 + $0xc] ss:$36 sps:$4 sm:$0xff]   ;;  %v10047_v46 = vld [vmem:[%s12871_s17 + $0x94] ss:$36 sps:$4 sm:$0xff]  }
 0x722   : > { %v5674_v49 = vmul.f32 %v5672_v28, %v5667_v47  ;;  %v5681_v50 = vmax.f32 %v5679_v48, 0.0  ;;  %v10032_v28 = vld [vmem:[%s12869_s15 + $0x218] ss:$36 sps:$4 sm:$0xff]   ;;  %v10041_v39 = vld [vmem:[%s12871_s17 + $0x4c] ss:$36 sps:$4 sm:$0xff]  }
 0x723   : > { %v10042_v45 = vld [vmem:[%s12871_s17 + $0x50] ss:$36 sps:$4 sm:$0xff]   ;;  %v10050_v47 = vld [vmem:[%s12871_s17 + $0x9c] ss:$36 sps:$4 sm:$0xff]  }
 0x724   : > { %v5680_v51 = vadd.f32 %v5678_v44, %v5674_v49  ;;  %5683 = vst [vmem:[#allocation2 + $0x4] sm:$0xff] %v5681_v50  ;;  %v10039_v44 = vld [vmem:[%s12871_s17 + $0x48] ss:$36 sps:$4 sm:$0xff]   ;;  %v10045_v48 = vld [vmem:[%s12871_s17 + $0x90] ss:$36 sps:$4 sm:$0xff]  }
 0x725   : > { %v10048_v49 = vld [vmem:[%s12871_s17 + $0x98] ss:$36 sps:$4 sm:$0xff]  }
 0x726   : > { %v5682_v52 = vmax.f32 %v5680_v51, 0.0  ;;  %v10053_v50 = vld [vmem:[%s12871_s17 + $0xdc] ss:$36 sps:$4 sm:$0xff]   ;;  %v10056_v51 = vld [vmem:[%s12871_s17 + $0xe4] ss:$36 sps:$4 sm:$0xff]  }
 0x728   : > { %5684 = vst [vmem:[#allocation2 + $0xc] sm:$0xff] %v5682_v52  ;;  %v10051_v52 = vld [vmem:[%s12871_s17 + $0xd8] ss:$36 sps:$4 sm:$0xff]  }
 0x72b   : > { %v5685_v55 = vld [vmem:[#allocation2] sm:$0xff] }
 0x72f   : > { %v5686_v56 = vld [vmem:[#allocation2 + $0x8] sm:$0xff]  ;;  %v5687_v0 = vld [vmem:[#allocation2 + $0x10] sm:$0xff] }
 0x730   : > { %v12125_v57 = vpack.c.bf16 %v5686_v56, %v5685_v55  ;;  %v12155_v5 = vpack.c.bf16 %v5687_v0, %v5687_v0  ;;  %v10062_v55 = vld [vmem:[%s12871_s17 + $0x12c] ss:$36 sps:$4 sm:$0xff]   ;;  %v10057_v56 = vld [vmem:[%s12871_s17 + $0x120] ss:$36 sps:$4 sm:$0xff]  }
 0x731   : > { %v10069_v0 = vld [vmem:[%s12871_s17 + $0x1b0] ss:$36 sps:$4 sm:$0xff]  }
 0x732   : > { %6171 = vmatmul.mubr.bf16.vlgmr.msra.gmra.mrb[108].mxu1 %v12125_v57  ;;  %6221 = vmatmul.mubr.bf16.vlgmr.msra.gmra.mrb[112].mxu0 %v12125_v57 }
 0x733   : > { %6240 = vmatpush1.bf16.msra.mxu1 %v9977_v53  ;;  %6291 = vmatpush1.bf16.msra.mxu0 %v9980_v54  ;;  %v10054_v53 = vld [vmem:[%s12871_s17 + $0xe0] ss:$36 sps:$4 sm:$0xff]  }
 0x734   : > { %6241 = vmatprep.subr.bf16.mxu1 %v9985_v58  ;;  %6292 = vmatprep.subr.bf16.mxu0 %v9988_v59  ;;  %v10059_v54 = vld [vmem:[%s12871_s17 + $0x124] ss:$36 sps:$4 sm:$0xff]   ;;  %v10065_v58 = vld [vmem:[%s12871_s17 + $0x16c] ss:$36 sps:$4 sm:$0xff]   ;;  %v10068_v59 = vld [vmem:[%s12871_s17 + $0x174] ss:$36 sps:$4 sm:$0xff]  }
 0x735   : > { %6180 = vmatprep.mubr.bf16.mxu1 %v10257_v2  ;;  %6230 = vmatprep.mubr.bf16.mxu0 %v10257_v2 }
 0x737   : > { %6242 = vmatpush1.bf16.msra.mxu1 %v9983_v60  ;;  %6293 = vmatpush1.bf16.msra.mxu0 %v9986_v61  ;;  %v10063_v60 = vld [vmem:[%s12871_s17 + $0x168] ss:$36 sps:$4 sm:$0xff]   ;;  %v10066_v61 = vld [vmem:[%s12871_s17 + $0x170] ss:$36 sps:$4 sm:$0xff]  }
 0x738   : > { %6243 = vmatprep.subr.bf16.mxu1 %v9991_v62  ;;  %6294 = vmatprep.subr.bf16.mxu0 %v9994_v63  ;;  %v10071_v62 = vld [vmem:[%s12871_s17 + $0x1b4] ss:$36 sps:$4 sm:$0xff]   ;;  %v10074_v63 = vld [vmem:[%s12871_s17 + $0x1bc] ss:$36 sps:$4 sm:$0xff]  }
 0x73a   : > { %6181 = vmatmul.mubr.bf16.gmra.mrb[112].mxu1 %v12155_v5  ;;  %6231 = vmatmul.mubr.bf16.gmra.mrb[116].mxu0 %v12155_v5 }
 0x73b   : > { %6244 = vmatpush1.bf16.msra.mxu1 %v9989_v1  ;;  %6295 = vmatpush1.bf16.msra.mxu0 %v9992_v3  ;;  %v10072_v1 = vld [vmem:[%s12871_s17 + $0x1b8] ss:$36 sps:$4 sm:$0xff]  }
 0x73c   : > { %6245 = vmatprep.subr.bf16.mxu1 %v9997_v6  ;;  %6296 = vmatprep.subr.bf16.mxu0 %v10000_v7  ;;  %v10077_v3 = vld [vmem:[%s12871_s17 + $0x1fc] ss:$36 sps:$4 sm:$0xff]  }
 0x73d   : > { %6271 = vmatprep.mubr.bf16.mxu1 %v10257_v2  ;;  %6322 = vmatprep.mubr.bf16.mxu0 %v10257_v2  ;;  %v10075_v6 = vld [vmem:[%s12871_s17 + $0x1f8] ss:$36 sps:$4 sm:$0xff]   ;;  %v10078_v7 = vld [vmem:[%s12871_s17 + $0x200] ss:$36 sps:$4 sm:$0xff]  }
 0x73f   : > { %6246 = vmatpush1.bf16.msra.mxu1 %v9995_v8  ;;  %6297 = vmatpush1.bf16.msra.mxu0 %v9998_v10  ;;  %v10083_v8 = vld [vmem:[%s12871_s17 + $0x14] ss:$36 sps:$4 sm:$0xff]   ;;  %v10086_v10 = vld [vmem:[%s12871_s17 + $0x1c] ss:$36 sps:$4 sm:$0xff]  }
 0x740   : > { %6247 = vmatprep.subr.bf16.mxu1 %v10003_v13  ;;  %6298 = vmatprep.subr.bf16.mxu0 %v10006_v15 }
 0x743   : > { %6248 = vmatpush1.bf16.msra.mxu1 %v10001_v16  ;;  %6299 = vmatpush1.bf16.msra.mxu0 %v10004_v17 }
 0x744   : > { %6249 = vmatprep.subr.bf16.mxu1 %v10009_v18  ;;  %6300 = vmatprep.subr.bf16.mxu0 %v10012_v19 }
 0x747   : > { %6250 = vmatpush1.bf16.msra.mxu1 %v10007_v20  ;;  %6301 = vmatpush1.bf16.msra.mxu0 %v10010_v21 }
 0x748   : > { %6251 = vmatprep.subr.bf16.mxu1 %v10015_v22  ;;  %6302 = vmatprep.subr.bf16.mxu0 %v10018_v23 }
 0x74b   : > { %6252 = vmatpush1.bf16.msra.mxu1 %v10013_v25  ;;  %6303 = vmatpush1.bf16.msra.mxu0 %v10016_v29 }
 0x74c   : > { %6253 = vmatprep.subr.bf16.mxu1 %v10021_v30  ;;  %6304 = vmatprep.subr.bf16.mxu0 %v10024_v31 }
 0x74f   : > { %6254 = vmatpush1.bf16.msra.mxu1 %v10019_v32  ;;  %6305 = vmatpush1.bf16.msra.mxu0 %v10022_v33 }
 0x750   : > { %9206 = vmatprep.subr.bf16.mxu1 %v10025_v34  ;;  %6946 = vmatprep.subr.bf16.mxu0 %v10035_v43 }
 0x752   : > { %6272 = vmatmul.mubr.bf16.vlgmr.msra.gmra.mrb[116].mxu1 %v12125_v57  ;;  %6323 = vmatmul.mubr.bf16.vlgmr.msra.gmra.mrb[120].mxu0 %v12125_v57 }
 0x753   : > { %9207 = vmatpush3.bf16.msra.mxu1 %v10025_v34  ;;  %6281 = vmatprep.mubr.bf16.mxu1 %v10257_v2 }
 0x754   : > { %9208 = vmatprep.subr.bf16.mxu1 %v10026_v35  ;;  %6332 = vmatprep.mubr.bf16.mxu0 %v10257_v2 }
 0x755   : > { %6947 = vmatpush1.bf16.msra.mxu0 %v10033_v42 }
 0x756   : > { %6948 = vmatprep.subr.bf16.mxu0 %v10041_v39 }
 0x757   : > { %9209 = vmatpush3.bf16.msra.mxu1 %v10026_v35 }
 0x758   : > { %9210 = vmatprep.subr.bf16.mxu1 %v10027_v37 }
 0x759   : > { %6949 = vmatpush1.bf16.msra.mxu0 %v10039_v44 }
 0x75a   : > { %6282 = vmatmul.mubr.bf16.gmra.mrb[120].mxu1 %v12155_v5  ;;  %6333 = vmatmul.mubr.bf16.gmra.mrb[124].mxu0 %v12155_v5 }
 0x75b   : > { %9211 = vmatpush3.bf16.msra.mxu1 %v10027_v37  ;;  %9222 = vmatprep.mubr.bf16.mxu1 %v12125_v57  ;;  %v10060_v57 = vld [vmem:[%s12871_s17 + $0x128] ss:$36 sps:$4 sm:$0xff]  }
 0x75c   : > { %9212 = vmatprep.subr.bf16.mxu1 %v10028_v24  ;;  %6978 = vmatprep.mubr.bf16.mxu0 %v10257_v2 }
 0x75d   : > { %6950 = vmatprep.subr.bf16.mxu0 %v10047_v46 }
 0x75e   : > { %6951 = vmatpush1.bf16.msra.mxu0 %v10045_v48 }
 0x75f   : > { %9213 = vmatpush3.bf16.msra.mxu1 %v10028_v24  ;;  %6952 = vmatprep.subr.bf16.mxu0 %v10053_v50 }
 0x760   : > { %9214 = vmatprep.subr.bf16.mxu1 %v10029_v26 }
 0x762   : > { %6953 = vmatpush1.bf16.msra.mxu0 %v10051_v52 }
 0x763   : > { %9215 = vmatpush3.bf16.msra.mxu1 %v10029_v26  ;;  %6954 = vmatprep.subr.bf16.mxu0 %v10059_v54 }
 0x764   : > { %9216 = vmatprep.subr.bf16.mxu1 %v10030_v41 }
 0x766   : > { %6955 = vmatpush1.bf16.msra.mxu0 %v10057_v56 }
 0x767   : > { %9217 = vmatpush3.bf16.msra.mxu1 %v10030_v41  ;;  %6956 = vmatprep.subr.bf16.mxu0 %v10065_v58 }
 0x768   : > { %9218 = vmatprep.subr.bf16.mxu1 %v10031_v27 }
 0x76a   : > { %6957 = vmatpush1.bf16.msra.mxu0 %v10063_v60 }
 0x76b   : > { %9219 = vmatpush3.bf16.msra.mxu1 %v10031_v27  ;;  %6958 = vmatprep.subr.bf16.mxu0 %v10071_v62 }
 0x76c   : > { %9220 = vmatprep.subr.bf16.mxu1 %v10032_v28 }
 0x76e   : > { %6959 = vmatpush1.bf16.msra.mxu0 %v10069_v0 }
 0x76f   : > { %9221 = vmatpush3.bf16.msra.mxu1 %v10032_v28  ;;  %6960 = vmatprep.subr.bf16.mxu0 %v10077_v3 }
 0x770   : > { %6996 = vmatprep.subr.bf16.mxu1 %v10038_v38 }
 0x772   : > { %9223 = vmatmul.mubr.bf16.vlgmr.msra.gmra.mrb[124].mxu1 %v12155_v5  ;;  %v10080_v5 = vld [vmem:[%s12871_s17 + $0x204] ss:$36 sps:$4 sm:$0xff]   ;;  %6961 = vmatpush1.bf16.msra.mxu0 %v10075_v6 }
 0x773   : > { %7028 = vmatprep.mubr.bf16.mxu1 %v10257_v2  ;;  %6997 = vmatpush1.bf16.msra.mxu1 %v10036_v36 }
 0x774   : > { %6998 = vmatprep.subr.bf16.mxu1 %v10044_v40  ;;  %7047 = vmatprep.subr.bf16.mxu0 %v10083_v8 }
 0x777   : > { %6999 = vmatpush1.bf16.msra.mxu1 %v10042_v45 }
 0x778   : > { %7000 = vmatprep.subr.bf16.mxu1 %v10050_v47 }
 0x77b   : > { %7001 = vmatpush1.bf16.msra.mxu1 %v10048_v49 }
 0x77c   : > { %7002 = vmatprep.subr.bf16.mxu1 %v10056_v51 }
 0x77f   : > { %7003 = vmatpush1.bf16.msra.mxu1 %v10054_v53 }
 0x780   : > { %7004 = vmatprep.subr.bf16.mxu1 %v10062_v55 }
 0x783   : > { %7005 = vmatpush1.bf16.msra.mxu1 %v10060_v57 }
 0x784   : > { %7006 = vmatprep.subr.bf16.mxu1 %v10068_v59 }
 0x787   : > { %7007 = vmatpush1.bf16.msra.mxu1 %v10066_v61 }
 0x788   : > { %7008 = vmatprep.subr.bf16.mxu1 %v10074_v63 }
 0x78b   : > { %7009 = vmatpush1.bf16.msra.mxu1 %v10072_v1 }
 0x78c   : > { %7010 = vmatprep.subr.bf16.mxu1 %v10080_v5 }
 0x78f   : > { %7011 = vmatpush1.bf16.msra.mxu1 %v10078_v7 }
 0x790   : > { %7098 = vmatprep.subr.bf16.mxu1 %v10086_v10 }
 0x805   : > { %v6172_v13 = vpop.f32.mrb[108].mxu1  ;;  %v6222_v15 = vpop.f32.mrb[112].mxu0 }
 0x806   : > { %v6174_v16 = vpop.f32.mrb[109].mxu1  ;;  %v6224_v17 = vpop.f32.mrb[113].mxu0  ;;  %v6403_v20 = vrot.slane %v6222_v15, 2 }
 0x807   : > { %v6176_v18 = vpop.f32.mrb[110].mxu1  ;;  %v6226_v19 = vpop.f32.mrb[114].mxu0  ;;  %v6391_v25 = vrot.slane %v6174_v16, 1  ;;  %v6415_v29 = vrot.slane %v6224_v17, 3 }
 0x808   : > { %v6404_v21 = vrot.slane %v6226_v19, 2  ;;  %v6178_v22 = vpop.f32.mrb[111].mxu1  ;;  %v6228_v23 = vpop.f32.mrb[115].mxu0 }
 0x809   : > { %v6392_v30 = vrot.slane %v6178_v22, 1  ;;  %v6416_v31 = vrot.slane %v6228_v23, 3 }
 0x80a   : > { %v6405_v32 = vsel %vm1438_vm1, %v6403_v20, %v6404_v21 }
 0x80b   : > { %v6393_v33 = vsel %vm1425_vm0, %v6391_v25, %v6392_v30  ;;  %v6417_v34 = vsel %vm1451_vm2, %v6415_v29, %v6416_v31 }
 0x80c   : > { %v6398_v35 = vadd.f32 %v6393_v33, %v6172_v13 }
 0x80d   : > { %v6182_v37 = vpop.f32.mrb[112].mxu1  ;;  %v6232_v24 = vpop.f32.mrb[116].mxu0 }
 0x80e   : > { %v6410_v26 = vadd.f32 %v6405_v32, %v6398_v35  ;;  %v6406_v41 = vrot.slane %v6232_v24, 2  ;;  %v6183_v27 = vpop.f32.mrb[113].mxu1  ;;  %v6234_v28 = vpop.f32.mrb[117].mxu0 }
 0x80f   : > { %v6394_v42 = vrot.slane %v6183_v27, 1  ;;  %v6418_v43 = vrot.slane %v6234_v28, 3  ;;  %v6185_v36 = vpop.f32.mrb[114].mxu1  ;;  %v6236_v38 = vpop.f32.mrb[118].mxu0  ;;  %v4864_v28 = vld [vmem:[%s12866_s12] sm:$0x3] }
 0x810   : > { %v6422_v39 = vadd.f32 %v6417_v34, %v6410_v26  ;;  %v6407_v40 = vsel %vm1438_vm1, %v6404_v21, %v6406_v41  ;;  %v6186_v44 = vpop.f32.mrb[115].mxu1  ;;  %v6237_v45 = vpop.f32.mrb[119].mxu0 }
 0x811   : > { %v6395_v46 = vsel %vm1425_vm0, %v6392_v30, %v6394_v42  ;;  %v6419_v47 = vsel %vm1451_vm2, %v6416_v31, %v6418_v43  ;;  %v6474_v42 = vld [vmem:[%s12870_s16] sm:$0x3]  ;;  %v4868_v43 = vrot.slane %v4864_v28, %v10759_v12 }
 0x812   : > { %v6399_v48 = vadd.f32 %v6395_v46, %v6176_v18  ;;  %v6478_v36 = vrot.slane %v6474_v42, %v10759_v12  ;;  %v6484_v44 = vrot.slane %v6474_v42, %v10764_v14  ;;  %v10131_v42 = vld [vmem:[%s12871_s17 + $0xb0] ss:$36 sps:$4 sm:$0xff]  }
 0x814   : > { %v6411_v49 = vadd.f32 %v6407_v40, %v6399_v48 }
 0x816   : > { %v6423_v50 = vadd.f32 %v6419_v47, %v6411_v49  ;;  %v4874_v47 = vrot.slane %v4864_v28, %v10764_v14  ;;  %v10130_v28 = vld [vmem:[%s12871_s17 + $0x68] ss:$36 sps:$4 sm:$0xff]  }
 0x825   : > { %v6273_v51 = vpop.f32.mrb[116].mxu1  ;;  %v6324_v52 = vpop.f32.mrb[120].mxu0 }
 0x826   : > { %v6275_v53 = vpop.f32.mrb[117].mxu1  ;;  %v6326_v54 = vpop.f32.mrb[121].mxu0  ;;  %v6427_v57 = vrot.slane %v6273_v51, 4  ;;  %v6451_v58 = vrot.slane %v6324_v52, 6 }
 0x827   : > { %v6277_v55 = vpop.f32.mrb[118].mxu1  ;;  %v6328_v56 = vpop.f32.mrb[122].mxu0  ;;  %v6439_v63 = vrot.slane %v6275_v53, 5  ;;  %v6463_v0 = vrot.slane %v6326_v54, 7 }
 0x828   : > { %v6428_v59 = vrot.slane %v6277_v55, 4  ;;  %v6452_v60 = vrot.slane %v6328_v56, 6  ;;  %v6279_v61 = vpop.f32.mrb[119].mxu1  ;;  %v6330_v62 = vpop.f32.mrb[123].mxu0 }
 0x829   : > { %v6440_v1 = vrot.slane %v6279_v61, 5  ;;  %v6464_v3 = vrot.slane %v6330_v62, 7 }
 0x82a   : > { %v6429_v5 = vsel %vm1464_vm3, %v6427_v57, %v6428_v59  ;;  %v6453_v6 = vsel %vm1490_vm5, %v6451_v58, %v6452_v60 }
 0x82b   : > { %v6434_v7 = vadd.f32 %v6429_v5, %v6422_v39  ;;  %v6441_v8 = vsel %vm1477_vm4, %v6439_v63, %v6440_v1  ;;  %v6465_v10 = vsel %vm1503_vm6, %v6463_v0, %v6464_v3  ;;  %v4870_v39 = vmul.f32 %v4868_v43, %v12098_v11  ;;  %v10089_v0 = vld [vmem:[%s12871_s17 + $0x5c] ss:$36 sps:$4 sm:$0xff]  }
 0x82c   : > { %v10090_v5 = vld [vmem:[%s12871_s17 + $0x60] ss:$36 sps:$4 sm:$0xff]  }
 0x82d   : > { %v6446_v13 = vadd.f32 %v6441_v8, %v6434_v7  ;;  %v6283_v15 = vpop.f32.mrb[120].mxu1  ;;  %v6334_v16 = vpop.f32.mrb[124].mxu0  ;;  %v4876_v52 = vadd.f32 %v4874_v47, %v4870_v39  ;;  %v10098_v7 = vld [vmem:[%s12871_s17 + $0xac] ss:$36 sps:$4 sm:$0xff]  }
 0x82e   : > { %v6430_v17 = vrot.slane %v6283_v15, 4  ;;  %v6454_v18 = vrot.slane %v6334_v16, 6  ;;  %v6285_v19 = vpop.f32.mrb[121].mxu1  ;;  %v6336_v20 = vpop.f32.mrb[125].mxu0  ;;  %v10101_v16 = vld [vmem:[%s12871_s17 + $0xec] ss:$36 sps:$4 sm:$0xff]  }
 0x82f   : > { %v6442_v21 = vrot.slane %v6285_v19, 5  ;;  %v6466_v22 = vrot.slane %v6336_v20, 7  ;;  %v6287_v23 = vpop.f32.mrb[122].mxu1  ;;  %v6338_v25 = vpop.f32.mrb[126].mxu0  ;;  %v6458_v29 = vadd.f32 %v6453_v6, %v6446_v13  ;;  %v10095_v6 = vld [vmem:[%s12871_s17 + $0xa4] ss:$36 sps:$4 sm:$0xff]  }
 0x830   : > { %v6431_v30 = vsel %vm1464_vm3, %v6428_v59, %v6430_v17  ;;  %v6455_v31 = vsel %vm1490_vm5, %v6452_v60, %v6454_v18  ;;  %v6288_v32 = vpop.f32.mrb[123].mxu1  ;;  %v6339_v33 = vpop.f32.mrb[127].mxu0  ;;  %v10084_v60 = vld [vmem:[%s12871_s17 + $0x18] ss:$36 sps:$4 sm:$0xff]   ;;  %v10096_v13 = vld [vmem:[%s12871_s17 + $0xa8] ss:$36 sps:$4 sm:$0xff]  }
 0x831   : > { %v6435_v34 = vadd.f32 %v6431_v30, %v6423_v50  ;;  %v6443_v35 = vsel %vm1477_vm4, %v6440_v1, %v6442_v21  ;;  %v6467_v37 = vsel %vm1503_vm6, %v6464_v3, %v6466_v22  ;;  %v6470_v24 = vadd.f32 %v6465_v10, %v6458_v29  ;;  %v10092_v1 = vld [vmem:[%s12871_s17 + $0x64] ss:$36 sps:$4 sm:$0xff]   ;;  %v10087_v3 = vld [vmem:[%s12871_s17 + $0x58] ss:$36 sps:$4 sm:$0xff]   ;;  %v10102_v19 = vld [vmem:[%s12871_s17 + $0xf0] ss:$36 sps:$4 sm:$0xff]  }
 0x832   : > { %v4869_v50 = vmul.f32 %v4868_v43, %v12096_v9  ;;  %v10081_v9 = vld [vmem:[%s12871_s17 + $0x10] ss:$36 sps:$4 sm:$0xff]   ;;  %v10093_v10 = vld [vmem:[%s12871_s17 + $0xa0] ss:$36 sps:$4 sm:$0xff]   ;;  %v10099_v18 = vld [vmem:[%s12871_s17 + $0xe8] ss:$36 sps:$4 sm:$0xff]  }
 0x833   : > { %v6447_v26 = vadd.f32 %v6443_v35, %v6435_v34  ;;  %v10104_v17 = vld [vmem:[%s12871_s17 + $0xf4] ss:$36 sps:$4 sm:$0xff]   ;;  %v10110_v21 = vld [vmem:[%s12871_s17 + $0x13c] ss:$36 sps:$4 sm:$0xff]   ;;  %v10116_v29 = vld [vmem:[%s12871_s17 + $0x184] ss:$36 sps:$4 sm:$0xff]  }
 0x834   : > { %v4875_v56 = vadd.f32 %v4874_v47, %v4869_v50  ;;  %v10107_v20 = vld [vmem:[%s12871_s17 + $0x134] ss:$36 sps:$4 sm:$0xff]   ;;  %v10113_v25 = vld [vmem:[%s12871_s17 + $0x17c] ss:$36 sps:$4 sm:$0xff]   ;;  %v10119_v32 = vld [vmem:[%s12871_s17 + $0x1c4] ss:$36 sps:$4 sm:$0xff]  }
 0x835   : > { %v6459_v41 = vadd.f32 %v6455_v31, %v6447_v26  ;;  %v10105_v22 = vld [vmem:[%s12871_s17 + $0x130] ss:$36 sps:$4 sm:$0xff]   ;;  %v10108_v23 = vld [vmem:[%s12871_s17 + $0x138] ss:$36 sps:$4 sm:$0xff]   ;;  %v10114_v31 = vld [vmem:[%s12871_s17 + $0x180] ss:$36 sps:$4 sm:$0xff]  }
 0x836   : > { %v10111_v30 = vld [vmem:[%s12871_s17 + $0x178] ss:$36 sps:$4 sm:$0xff]   ;;  %v10122_v33 = vld [vmem:[%s12871_s17 + $0x1cc] ss:$36 sps:$4 sm:$0xff]   ;;  %v10117_v34 = vld [vmem:[%s12871_s17 + $0x1c0] ss:$36 sps:$4 sm:$0xff]  }
 0x837   : > { %v6471_v27 = vadd.f32 %v6467_v37, %v6459_v41  ;;  %v10120_v35 = vld [vmem:[%s12871_s17 + $0x1c8] ss:$36 sps:$4 sm:$0xff]   ;;  %v10126_v41 = vld [vmem:[%s12871_s17 + $0x210] ss:$36 sps:$4 sm:$0xff]   ;;  %v10132_v43 = vld [vmem:[%s12871_s17 + $0xf8] ss:$36 sps:$4 sm:$0xff]  }
 0x838   : > { %v10125_v37 = vld [vmem:[%s12871_s17 + $0x20c] ss:$36 sps:$4 sm:$0xff]  }
 0x839   : > { %v10123_v26 = vld [vmem:[%s12871_s17 + $0x208] ss:$36 sps:$4 sm:$0xff]   ;;  %v10135_v39 = vld [vmem:[%s12871_s17 + $0x1d0] ss:$36 sps:$4 sm:$0xff]  }
 0x83a   : > { %v10142_v47 = vld [vmem:[%s12873_s19 + $0xc] ss:$36 sps:$4 sm:$0xff]  }
 0x83b   : > { %v10143_v50 = vld [vmem:[%s12873_s19 + $0x48] ss:$36 sps:$4 sm:$0xff]  }
 0x845   : > { %v9224_v38 = vpop.f32.mrb[124].mxu1 }
 0x846   : > { %v6473_v40 = vadd.f32 %v9224_v38, %v6471_v27  ;;  %v6375_v45 = vpop.f32.mrb[125].mxu1  ;;  %v10129_v27 = vld [vmem:[%s12871_s17 + $0x20] ss:$36 sps:$4 sm:$0xff]   ;;  %v10134_v38 = vld [vmem:[%s12871_s17 + $0x188] ss:$36 sps:$4 sm:$0xff]  }
 0x847   : > { %v9225_v46 = vpop.f32.mrb[126].mxu1  ;;  %v10139_v45 = vld [vmem:[%s12873_s19 + $0x4] ss:$36 sps:$4 sm:$0xff]  }
 0x848   : > { %v6480_v48 = vmul.f32 %v6478_v36, %v6473_v40  ;;  %v6377_v49 = vpop.f32.mrb[127].mxu1  ;;  %v10136_v40 = vld [vmem:[%s12871_s17 + $0x218] ss:$36 sps:$4 sm:$0xff]   ;;  %v10140_v46 = vld [vmem:[%s12873_s19 + $0x8] ss:$36 sps:$4 sm:$0xff]  }
 0x849   : > { %v6472_v51 = vadd.f32 %v6470_v24, %v6377_v49  ;;  %v10128_v24 = vld [vmem:[%s12871_s17 + $0x214] ss:$36 sps:$4 sm:$0xff]  }
 0x84a   : > { %v6486_v53 = vadd.f32 %v6484_v44, %v6480_v48  ;;  %v10145_v48 = vld [vmem:[%s12873_s19 + $0x4c] ss:$36 sps:$4 sm:$0xff]   ;;  %v10148_v49 = vld [vmem:[%s12873_s19 + $0x54] ss:$36 sps:$4 sm:$0xff]  }
 0x84b   : > { %v6479_v54 = vmul.f32 %v6478_v36, %v6472_v51  ;;  %v10133_v36 = vld [vmem:[%s12871_s17 + $0x140] ss:$36 sps:$4 sm:$0xff]   ;;  %v10146_v51 = vld [vmem:[%s12873_s19 + $0x50] ss:$36 sps:$4 sm:$0xff]  }
 0x84c   : > { %v12383_v55 = vadd.f32 %v6486_v53, %v4876_v52  ;;  %v10151_v52 = vld [vmem:[%s12873_s19 + $0x94] ss:$36 sps:$4 sm:$0xff]   ;;  %v10154_v53 = vld [vmem:[%s12873_s19 + $0x9c] ss:$36 sps:$4 sm:$0xff]  }
 0x84d   : > { %v6485_v57 = vadd.f32 %v6484_v44, %v6479_v54  ;;  %v10137_v44 = vld [vmem:[%s12873_s19] ss:$36 sps:$4 sm:$0xff]   ;;  %v10149_v54 = vld [vmem:[%s12873_s19 + $0x90] ss:$36 sps:$4 sm:$0xff]  }
 0x84e   : > { %v6490_v11 = vmax.f32 %v12383_v55, 0.0 }
 0x84f   : > { %v12386_v58 = vadd.f32 %v6485_v57, %v4875_v56  ;;  %v10152_v56 = vld [vmem:[%s12873_s19 + $0x98] ss:$36 sps:$4 sm:$0xff]  }
 0x850   : > { %6492 = vst [vmem:[#allocation2 + $0xc] sm:$0xff] %v6490_v11  ;;  %v10157_v57 = vld [vmem:[%s12873_s19 + $0xdc] ss:$36 sps:$4 sm:$0xff]  }
 0x851   : > { %v6489_v59 = vmax.f32 %v12386_v58, 0.0 }
 0x853   : > { %6491 = vst [vmem:[#allocation2 + $0x4] sm:$0xff] %v6489_v59 }
 0x857   : > { %v6495_v8 = vld [vmem:[#allocation2 + $0x10] sm:$0xff] }
 0x858   : > { %v12429_v15 = vpack.c.bf16 %v6495_v8, %v6495_v8  ;;  %v10175_v8 = vld [vmem:[%s12873_s19 + $0x1b4] ss:$36 sps:$4 sm:$0xff]  }
 0x85a   : > { %v6493_v61 = vld [vmem:[#allocation2] sm:$0xff]  ;;  %v6494_v62 = vld [vmem:[#allocation2 + $0x8] sm:$0xff] }
 0x85b   : > { %v12399_v63 = vpack.c.bf16 %v6494_v62, %v6493_v61  ;;  %v10158_v61 = vld [vmem:[%s12873_s19 + $0xe0] ss:$36 sps:$4 sm:$0xff]  }
 0x85c   : > { %v10163_v62 = vld [vmem:[%s12873_s19 + $0x124] ss:$36 sps:$4 sm:$0xff]  }
 0x85d   : > { %6979 = vmatmul.mubr.bf16.vlgmr.msra.gmra.mrb[128].mxu0 %v12399_v63  ;;  %7029 = vmatmul.mubr.bf16.vlgmr.msra.gmra.mrb[128].mxu1 %v12399_v63 }
 0x85e   : > { %7048 = vmatpush1.bf16.msra.mxu0 %v10081_v9  ;;  %7099 = vmatpush1.bf16.msra.mxu1 %v10084_v60  ;;  %v10160_v9 = vld [vmem:[%s12873_s19 + $0xe4] ss:$36 sps:$4 sm:$0xff]   ;;  %v10155_v60 = vld [vmem:[%s12873_s19 + $0xd8] ss:$36 sps:$4 sm:$0xff]  }
 0x85f   : > { %7049 = vmatprep.subr.bf16.mxu0 %v10089_v0  ;;  %7100 = vmatprep.subr.bf16.mxu1 %v10092_v1  ;;  %v10161_v0 = vld [vmem:[%s12873_s19 + $0x120] ss:$36 sps:$4 sm:$0xff]   ;;  %v10164_v1 = vld [vmem:[%s12873_s19 + $0x128] ss:$36 sps:$4 sm:$0xff]  }
 0x860   : > { %6988 = vmatprep.mubr.bf16.mxu0 %v10257_v2  ;;  %7038 = vmatprep.mubr.bf16.mxu1 %v10257_v2 }
 0x862   : > { %7050 = vmatpush1.bf16.msra.mxu0 %v10087_v3  ;;  %7101 = vmatpush1.bf16.msra.mxu1 %v10090_v5  ;;  %v10169_v3 = vld [vmem:[%s12873_s19 + $0x16c] ss:$36 sps:$4 sm:$0xff]   ;;  %v10172_v5 = vld [vmem:[%s12873_s19 + $0x174] ss:$36 sps:$4 sm:$0xff]  }
 0x863   : > { %7051 = vmatprep.subr.bf16.mxu0 %v10095_v6  ;;  %7102 = vmatprep.subr.bf16.mxu1 %v10098_v7  ;;  %v10167_v6 = vld [vmem:[%s12873_s19 + $0x168] ss:$36 sps:$4 sm:$0xff]   ;;  %v10170_v7 = vld [vmem:[%s12873_s19 + $0x170] ss:$36 sps:$4 sm:$0xff]  }
 0x865   : > { %6989 = vmatmul.mubr.bf16.gmra.mrb[132].mxu0 %v12429_v15  ;;  %7039 = vmatmul.mubr.bf16.gmra.mrb[132].mxu1 %v12429_v15 }
 0x866   : > { %7052 = vmatpush1.bf16.msra.mxu0 %v10093_v10  ;;  %7103 = vmatpush1.bf16.msra.mxu1 %v10096_v13  ;;  %v10178_v10 = vld [vmem:[%s12873_s19 + $0x1bc] ss:$36 sps:$4 sm:$0xff]   ;;  %v10173_v13 = vld [vmem:[%s12873_s19 + $0x1b0] ss:$36 sps:$4 sm:$0xff]  }
 0x867   : > { %7053 = vmatprep.subr.bf16.mxu0 %v10101_v16  ;;  %7104 = vmatprep.subr.bf16.mxu1 %v10104_v17  ;;  %v10181_v16 = vld [vmem:[%s12873_s19 + $0x1fc] ss:$36 sps:$4 sm:$0xff]   ;;  %v10184_v17 = vld [vmem:[%s12873_s19 + $0x204] ss:$36 sps:$4 sm:$0xff]  }
 0x868   : > { %7079 = vmatprep.mubr.bf16.mxu0 %v10257_v2  ;;  %7130 = vmatprep.mubr.bf16.mxu1 %v10257_v2 }
 0x86a   : > { %7054 = vmatpush1.bf16.msra.mxu0 %v10099_v18  ;;  %7105 = vmatpush1.bf16.msra.mxu1 %v10102_v19  ;;  %v10179_v18 = vld [vmem:[%s12873_s19 + $0x1f8] ss:$36 sps:$4 sm:$0xff]   ;;  %v10182_v19 = vld [vmem:[%s12873_s19 + $0x200] ss:$36 sps:$4 sm:$0xff]  }
 0x86b   : > { %7055 = vmatprep.subr.bf16.mxu0 %v10107_v20  ;;  %7106 = vmatprep.subr.bf16.mxu1 %v10110_v21  ;;  %v10187_v20 = vld [vmem:[%s12873_s19 + $0x14] ss:$36 sps:$4 sm:$0xff]   ;;  %v10190_v21 = vld [vmem:[%s12873_s19 + $0x1c] ss:$36 sps:$4 sm:$0xff]  }
 0x86e   : > { %7056 = vmatpush1.bf16.msra.mxu0 %v10105_v22  ;;  %7107 = vmatpush1.bf16.msra.mxu1 %v10108_v23 }
 0x86f   : > { %7057 = vmatprep.subr.bf16.mxu0 %v10113_v25  ;;  %7108 = vmatprep.subr.bf16.mxu1 %v10116_v29 }
 0x872   : > { %7058 = vmatpush1.bf16.msra.mxu0 %v10111_v30  ;;  %7109 = vmatpush1.bf16.msra.mxu1 %v10114_v31 }
 0x873   : > { %7059 = vmatprep.subr.bf16.mxu0 %v10119_v32  ;;  %7110 = vmatprep.subr.bf16.mxu1 %v10122_v33 }
 0x876   : > { %7060 = vmatpush1.bf16.msra.mxu0 %v10117_v34  ;;  %7111 = vmatpush1.bf16.msra.mxu1 %v10120_v35 }
 0x877   : > { %7061 = vmatprep.subr.bf16.mxu0 %v10125_v37  ;;  %7112 = vmatprep.subr.bf16.mxu1 %v10128_v24 }
 0x87a   : > { %7062 = vmatpush1.bf16.msra.mxu0 %v10123_v26  ;;  %7113 = vmatpush1.bf16.msra.mxu1 %v10126_v41 }
 0x87b   : > { %9226 = vmatprep.subr.bf16.mxu0 %v10129_v27  ;;  %7752 = vmatprep.subr.bf16.mxu1 %v10139_v45 }
 0x87d   : > { %7080 = vmatmul.mubr.bf16.vlgmr.msra.gmra.mrb[136].mxu0 %v12399_v63  ;;  %7131 = vmatmul.mubr.bf16.vlgmr.msra.gmra.mrb[136].mxu1 %v12399_v63 }
 0x87e   : > { %9227 = vmatpush3.bf16.msra.mxu0 %v10129_v27  ;;  %7089 = vmatprep.mubr.bf16.mxu0 %v10257_v2 }
 0x87f   : > { %9228 = vmatprep.subr.bf16.mxu0 %v10130_v28  ;;  %7140 = vmatprep.mubr.bf16.mxu1 %v10257_v2 }
 0x880   : > { %7753 = vmatpush1.bf16.msra.mxu1 %v10137_v44 }
 0x881   : > { %7754 = vmatprep.subr.bf16.mxu1 %v10145_v48 }
 0x882   : > { %9229 = vmatpush3.bf16.msra.mxu0 %v10130_v28 }
 0x883   : > { %9230 = vmatprep.subr.bf16.mxu0 %v10131_v42 }
 0x884   : > { %7755 = vmatpush1.bf16.msra.mxu1 %v10143_v50 }
 0x885   : > { %7090 = vmatmul.mubr.bf16.gmra.mrb[140].mxu0 %v12429_v15  ;;  %7141 = vmatmul.mubr.bf16.gmra.mrb[140].mxu1 %v12429_v15 }
 0x886   : > { %9231 = vmatpush3.bf16.msra.mxu0 %v10131_v42  ;;  %9242 = vmatprep.mubr.bf16.mxu0 %v12399_v63  ;;  %v10166_v63 = vld [vmem:[%s12873_s19 + $0x12c] ss:$36 sps:$4 sm:$0xff]  }
 0x887   : > { %9232 = vmatprep.subr.bf16.mxu0 %v10132_v43  ;;  %7784 = vmatprep.mubr.bf16.mxu1 %v10257_v2 }
 0x888   : > { %7756 = vmatprep.subr.bf16.mxu1 %v10151_v52 }
 0x889   : > { %7757 = vmatpush1.bf16.msra.mxu1 %v10149_v54 }
 0x88a   : > { %9233 = vmatpush3.bf16.msra.mxu0 %v10132_v43  ;;  %7758 = vmatprep.subr.bf16.mxu1 %v10157_v57 }
 0x88b   : > { %9234 = vmatprep.subr.bf16.mxu0 %v10133_v36 }
 0x88d   : > { %7759 = vmatpush1.bf16.msra.mxu1 %v10155_v60 }
 0x88e   : > { %9235 = vmatpush3.bf16.msra.mxu0 %v10133_v36  ;;  %7760 = vmatprep.subr.bf16.mxu1 %v10163_v62 }
 0x88f   : > { %9236 = vmatprep.subr.bf16.mxu0 %v10134_v38 }
 0x891   : > { %7761 = vmatpush1.bf16.msra.mxu1 %v10161_v0 }
 0x892   : > { %9237 = vmatpush3.bf16.msra.mxu0 %v10134_v38  ;;  %7762 = vmatprep.subr.bf16.mxu1 %v10169_v3 }
 0x893   : > { %9238 = vmatprep.subr.bf16.mxu0 %v10135_v39 }
 0x895   : > { %7763 = vmatpush1.bf16.msra.mxu1 %v10167_v6 }
 0x896   : > { %9239 = vmatpush3.bf16.msra.mxu0 %v10135_v39  ;;  %7764 = vmatprep.subr.bf16.mxu1 %v10175_v8 }
 0x897   : > { %9240 = vmatprep.subr.bf16.mxu0 %v10136_v40 }
 0x899   : > { %7765 = vmatpush1.bf16.msra.mxu1 %v10173_v13 }
 0x89a   : > { %9241 = vmatpush3.bf16.msra.mxu0 %v10136_v40  ;;  %7766 = vmatprep.subr.bf16.mxu1 %v10181_v16 }
 0x89b   : > { %7802 = vmatprep.subr.bf16.mxu0 %v10142_v47 }
 0x89d   : > { %9243 = vmatmul.mubr.bf16.vlgmr.msra.gmra.mrb[144].mxu0 %v12429_v15  ;;  %v10176_v15 = vld [vmem:[%s12873_s19 + $0x1b8] ss:$36 sps:$4 sm:$0xff]   ;;  %7767 = vmatpush1.bf16.msra.mxu1 %v10179_v18 }
 0x89e   : > { %7834 = vmatprep.mubr.bf16.mxu0 %v10257_v2  ;;  %7803 = vmatpush1.bf16.msra.mxu0 %v10140_v46 }
 0x89f   : > { %7804 = vmatprep.subr.bf16.mxu0 %v10148_v49  ;;  %7853 = vmatprep.subr.bf16.mxu1 %v10187_v20 }
 0x8a2   : > { %7805 = vmatpush1.bf16.msra.mxu0 %v10146_v51 }
 0x8a3   : > { %7806 = vmatprep.subr.bf16.mxu0 %v10154_v53 }
 0x8a6   : > { %7807 = vmatpush1.bf16.msra.mxu0 %v10152_v56 }
 0x8a7   : > { %7808 = vmatprep.subr.bf16.mxu0 %v10160_v9 }
 0x8aa   : > { %7809 = vmatpush1.bf16.msra.mxu0 %v10158_v61 }
 0x8ab   : > { %7810 = vmatprep.subr.bf16.mxu0 %v10166_v63 }
 0x8ae   : > { %7811 = vmatpush1.bf16.msra.mxu0 %v10164_v1 }
 0x8af   : > { %7812 = vmatprep.subr.bf16.mxu0 %v10172_v5 }
 0x8b2   : > { %7813 = vmatpush1.bf16.msra.mxu0 %v10170_v7 }
 0x8b3   : > { %7814 = vmatprep.subr.bf16.mxu0 %v10178_v10 }
 0x8b6   : > { %7815 = vmatpush1.bf16.msra.mxu0 %v10176_v15 }
 0x8b7   : > { %7816 = vmatprep.subr.bf16.mxu0 %v10184_v17 }
 0x8ba   : > { %7817 = vmatpush1.bf16.msra.mxu0 %v10182_v19 }
 0x8bb   : > { %7904 = vmatprep.subr.bf16.mxu0 %v10190_v21 }
 0x930   : > { %v6980_v22 = vpop.f32.mrb[128].mxu0  ;;  %v7030_v23 = vpop.f32.mrb[128].mxu1 }
 0x931   : > { %v6982_v25 = vpop.f32.mrb[129].mxu0  ;;  %v7032_v29 = vpop.f32.mrb[129].mxu1  ;;  %v7211_v32 = vrot.slane %v7030_v23, 2 }
 0x932   : > { %v6984_v30 = vpop.f32.mrb[130].mxu0  ;;  %v7034_v31 = vpop.f32.mrb[130].mxu1  ;;  %v7199_v37 = vrot.slane %v6982_v25, 1  ;;  %v7223_v24 = vrot.slane %v7032_v29, 3 }
 0x933   : > { %v7212_v33 = vrot.slane %v7034_v31, 2  ;;  %v6986_v34 = vpop.f32.mrb[131].mxu0  ;;  %v7036_v35 = vpop.f32.mrb[131].mxu1 }
 0x934   : > { %v7200_v26 = vrot.slane %v6986_v34, 1  ;;  %v7224_v41 = vrot.slane %v7036_v35, 3 }
 0x935   : > { %v7213_v27 = vsel %vm1438_vm1, %v7211_v32, %v7212_v33 }
 0x936   : > { %v7201_v28 = vsel %vm1425_vm0, %v7199_v37, %v7200_v26  ;;  %v7225_v42 = vsel %vm1451_vm2, %v7223_v24, %v7224_v41 }
 0x937   : > { %v7206_v43 = vadd.f32 %v7201_v28, %v6980_v22 }
 0x938   : > { %v6990_v36 = vpop.f32.mrb[132].mxu0  ;;  %v7040_v38 = vpop.f32.mrb[132].mxu1 }
 0x939   : > { %v7218_v39 = vadd.f32 %v7213_v27, %v7206_v43  ;;  %v7214_v40 = vrot.slane %v7040_v38, 2  ;;  %v6991_v44 = vpop.f32.mrb[133].mxu0  ;;  %v7042_v45 = vpop.f32.mrb[133].mxu1 }
 0x93a   : > { %v7202_v46 = vrot.slane %v6991_v44, 1  ;;  %v7226_v47 = vrot.slane %v7042_v45, 3  ;;  %v6993_v48 = vpop.f32.mrb[134].mxu0  ;;  %v7044_v49 = vpop.f32.mrb[134].mxu1 }
 0x93b   : > { %v7230_v50 = vadd.f32 %v7225_v42, %v7218_v39  ;;  %v7215_v51 = vsel %vm1438_vm1, %v7212_v33, %v7214_v40  ;;  %v6994_v52 = vpop.f32.mrb[135].mxu0  ;;  %v7045_v53 = vpop.f32.mrb[135].mxu1 }
 0x93c   : > { %v7203_v54 = vsel %vm1425_vm0, %v7200_v26, %v7202_v46  ;;  %v7227_v56 = vsel %vm1451_vm2, %v7224_v41, %v7226_v47  ;;  %v7282_v47 = vld [vmem:[%s12872_s18] sm:$0x3] }
 0x93d   : > { %v7207_v57 = vadd.f32 %v7203_v54, %v6984_v30  ;;  %v7286_v48 = vrot.slane %v7282_v47, %v10759_v12 }
 0x93f   : > { %v7219_v9 = vadd.f32 %v7215_v51, %v7207_v57  ;;  %v7292_v51 = vrot.slane %v7282_v47, %v10764_v14  ;;  %v10240_v47 = vld [vmem:[%s12873_s19 + $0x218] ss:$36 sps:$4 sm:$0xff]  }
 0x941   : > { %v7231_v60 = vadd.f32 %v7227_v56, %v7219_v9 }
 0x950   : > { %v7081_v61 = vpop.f32.mrb[136].mxu0  ;;  %v7132_v62 = vpop.f32.mrb[136].mxu1 }
 0x951   : > { %v7083_v63 = vpop.f32.mrb[137].mxu0  ;;  %v7134_v0 = vpop.f32.mrb[137].mxu1  ;;  %v7235_v5 = vrot.slane %v7081_v61, 4  ;;  %v7259_v6 = vrot.slane %v7132_v62, 6 }
 0x952   : > { %v7085_v1 = vpop.f32.mrb[138].mxu0  ;;  %v7136_v3 = vpop.f32.mrb[138].mxu1  ;;  %v7247_v15 = vrot.slane %v7083_v63, 5  ;;  %v7271_v16 = vrot.slane %v7134_v0, 7  ;;  %v10185_v0 = vld [vmem:[%s12873_s19 + $0x10] ss:$36 sps:$4 sm:$0xff]  }
 0x953   : > { %v7236_v7 = vrot.slane %v7085_v1, 4  ;;  %v7260_v8 = vrot.slane %v7136_v3, 6  ;;  %v7087_v10 = vpop.f32.mrb[139].mxu0  ;;  %v7138_v13 = vpop.f32.mrb[139].mxu1  ;;  %v10188_v1 = vld [vmem:[%s12873_s19 + $0x18] ss:$36 sps:$4 sm:$0xff]  }
 0x954   : > { %v7248_v17 = vrot.slane %v7087_v10, 5  ;;  %v7272_v18 = vrot.slane %v7138_v13, 7  ;;  %v10191_v10 = vld [vmem:[%s12873_s19 + $0x58] ss:$36 sps:$4 sm:$0xff]   ;;  %v10194_v13 = vld [vmem:[%s12873_s19 + $0x60] ss:$36 sps:$4 sm:$0xff]  }
 0x955   : > { %v7237_v19 = vsel %vm1464_vm3, %v7235_v5, %v7236_v7  ;;  %v7261_v20 = vsel %vm1490_vm5, %v7259_v6, %v7260_v8 }
 0x956   : > { %v7242_v21 = vadd.f32 %v7237_v19, %v7230_v50  ;;  %v7249_v22 = vsel %vm1477_vm4, %v7247_v15, %v7248_v17  ;;  %v7273_v23 = vsel %vm1503_vm6, %v7271_v16, %v7272_v18  ;;  %v10199_v15 = vld [vmem:[%s12873_s19 + $0xa4] ss:$36 sps:$4 sm:$0xff]   ;;  %v10202_v16 = vld [vmem:[%s12873_s19 + $0xac] ss:$36 sps:$4 sm:$0xff]  }
 0x957   : > { %v10200_v19 = vld [vmem:[%s12873_s19 + $0xa8] ss:$36 sps:$4 sm:$0xff]  }
 0x958   : > { %v7254_v25 = vadd.f32 %v7249_v22, %v7242_v21  ;;  %v7091_v29 = vpop.f32.mrb[140].mxu0  ;;  %v7142_v30 = vpop.f32.mrb[140].mxu1  ;;  %v10205_v21 = vld [vmem:[%s12873_s19 + $0xec] ss:$36 sps:$4 sm:$0xff]   ;;  %v10208_v22 = vld [vmem:[%s12873_s19 + $0xf4] ss:$36 sps:$4 sm:$0xff]  }
 0x959   : > { %v7238_v31 = vrot.slane %v7091_v29, 4  ;;  %v7262_v32 = vrot.slane %v7142_v30, 6  ;;  %v7093_v33 = vpop.f32.mrb[141].mxu0  ;;  %v7144_v34 = vpop.f32.mrb[141].mxu1  ;;  %v10211_v29 = vld [vmem:[%s12873_s19 + $0x134] ss:$36 sps:$4 sm:$0xff]  }
 0x95a   : > { %v7250_v35 = vrot.slane %v7093_v33, 5  ;;  %v7274_v37 = vrot.slane %v7144_v34, 7  ;;  %v7095_v24 = vpop.f32.mrb[142].mxu0  ;;  %v7146_v26 = vpop.f32.mrb[142].mxu1  ;;  %v7266_v41 = vadd.f32 %v7261_v20, %v7254_v25  ;;  %v10206_v25 = vld [vmem:[%s12873_s19 + $0xf0] ss:$36 sps:$4 sm:$0xff]  }
 0x95b   : > { %v7239_v27 = vsel %vm1464_vm3, %v7236_v7, %v7238_v31  ;;  %v7263_v28 = vsel %vm1490_vm5, %v7260_v8, %v7262_v32  ;;  %v7096_v42 = vpop.f32.mrb[143].mxu0  ;;  %v7147_v43 = vpop.f32.mrb[143].mxu1  ;;  %v10193_v7 = vld [vmem:[%s12873_s19 + $0x5c] ss:$36 sps:$4 sm:$0xff]   ;;  %v10196_v8 = vld [vmem:[%s12873_s19 + $0x64] ss:$36 sps:$4 sm:$0xff]  }
 0x95c   : > { %v7243_v36 = vadd.f32 %v7239_v27, %v7231_v60  ;;  %v7251_v38 = vsel %vm1477_vm4, %v7248_v17, %v7250_v35  ;;  %v7275_v39 = vsel %vm1503_vm6, %v7272_v18, %v7274_v37  ;;  %v7278_v40 = vadd.f32 %v7273_v23, %v7266_v41  ;;  %v10197_v18 = vld [vmem:[%s12873_s19 + $0xa0] ss:$36 sps:$4 sm:$0xff]   ;;  %v10203_v23 = vld [vmem:[%s12873_s19 + $0xe8] ss:$36 sps:$4 sm:$0xff]   ;;  %v10209_v31 = vld [vmem:[%s12873_s19 + $0x130] ss:$36 sps:$4 sm:$0xff]  }
 0x95d   : > { %v10214_v30 = vld [vmem:[%s12873_s19 + $0x13c] ss:$36 sps:$4 sm:$0xff]   ;;  %v10220_v34 = vld [vmem:[%s12873_s19 + $0x184] ss:$36 sps:$4 sm:$0xff]   ;;  %v10226_v26 = vld [vmem:[%s12873_s19 + $0x1cc] ss:$36 sps:$4 sm:$0xff]  }
 0x95e   : > { %v7255_v44 = vadd.f32 %v7251_v38, %v7243_v36  ;;  %v10212_v32 = vld [vmem:[%s12873_s19 + $0x138] ss:$36 sps:$4 sm:$0xff]   ;;  %v10218_v37 = vld [vmem:[%s12873_s19 + $0x180] ss:$36 sps:$4 sm:$0xff]   ;;  %v10224_v27 = vld [vmem:[%s12873_s19 + $0x1c8] ss:$36 sps:$4 sm:$0xff]  }
 0x95f   : > { %v10217_v33 = vld [vmem:[%s12873_s19 + $0x17c] ss:$36 sps:$4 sm:$0xff]   ;;  %v10223_v24 = vld [vmem:[%s12873_s19 + $0x1c4] ss:$36 sps:$4 sm:$0xff]   ;;  %v10232_v42 = vld [vmem:[%s12873_s19 + $0x214] ss:$36 sps:$4 sm:$0xff]  }
 0x960   : > { %v7267_v45 = vadd.f32 %v7263_v28, %v7255_v44  ;;  %v10215_v35 = vld [vmem:[%s12873_s19 + $0x178] ss:$36 sps:$4 sm:$0xff]   ;;  %v10221_v41 = vld [vmem:[%s12873_s19 + $0x1c0] ss:$36 sps:$4 sm:$0xff]   ;;  %v10229_v28 = vld [vmem:[%s12873_s19 + $0x20c] ss:$36 sps:$4 sm:$0xff]  }
 0x961   : > { %v10227_v43 = vld [vmem:[%s12873_s19 + $0x208] ss:$36 sps:$4 sm:$0xff]   ;;  %v10230_v36 = vld [vmem:[%s12873_s19 + $0x210] ss:$36 sps:$4 sm:$0xff]   ;;  %v10233_v38 = vld [vmem:[%s12873_s19 + $0x20] ss:$36 sps:$4 sm:$0xff]  }
 0x962   : > { %v7279_v46 = vadd.f32 %v7275_v39, %v7267_v45  ;;  %v10234_v39 = vld [vmem:[%s12873_s19 + $0x68] ss:$36 sps:$4 sm:$0xff]   ;;  %v10236_v44 = vld [vmem:[%s12873_s19 + $0xf8] ss:$36 sps:$4 sm:$0xff]  }
 0x963   : > { %v10238_v45 = vld [vmem:[%s12873_s19 + $0x188] ss:$36 sps:$4 sm:$0xff]  }
 0x970   : > { %v9244_v49 = vpop.f32.mrb[144].mxu0 }
 0x971   : > { %v7281_v50 = vadd.f32 %v9244_v49, %v7279_v46  ;;  %v7183_v52 = vpop.f32.mrb[145].mxu0  ;;  %v10239_v46 = vld [vmem:[%s12873_s19 + $0x1d0] ss:$36 sps:$4 sm:$0xff]   ;;  %v10242_v49 = vld [vmem:[%s12875_s21 + $0x8] sm:$0xff]  }
 0x972   : > { %v9245_v53 = vpop.f32.mrb[146].mxu0  ;;  %v10245_v52 = vld [vmem:[%s12875_s21 + $0x20] sm:$0xff]  }
 0x973   : > { %v7288_v54 = vmul.f32 %v7286_v48, %v7281_v50  ;;  %v7185_v56 = vpop.f32.mrb[147].mxu0  ;;  %v10243_v50 = vld [vmem:[%s12875_s21 + $0x10] sm:$0xff]   ;;  %v10246_v53 = vld [vmem:[%s12875_s21 + $0x28] sm:$0xff]  }
 0x974   : > { %v7280_v57 = vadd.f32 %v7278_v40, %v7185_v56  ;;  %v10235_v40 = vld [vmem:[%s12873_s19 + $0xb0] ss:$36 sps:$4 sm:$0xff]   ;;  %v10248_v56 = vld [vmem:[%s12875_s21 + $0x38] sm:$0xff]  }
 0x975   : > { %v7294_v9 = vadd.f32 %v7292_v51, %v7288_v54  ;;  %v10247_v54 = vld [vmem:[%s12875_s21 + $0x30] sm:$0xff]  }
 0x976   : > { %v7287_v60 = vmul.f32 %v7286_v48, %v7280_v57  ;;  %v10241_v48 = vld [vmem:[%s12875_s21] sm:$0xff]  }
 0x977   : > { %v7296_v61 = vmax.f32 %v7294_v9, 0.0 }
 0x978   : > { %v7293_v62 = vadd.f32 %v7292_v51, %v7287_v60  ;;  %v10244_v51 = vld [vmem:[%s12875_s21 + $0x18] sm:$0xff]  }
 0x979   : > { %7298 = vst [vmem:[#allocation2 + $0xc] sm:$0xff] %v7296_v61 }
 0x97a   : > { %v7295_v63 = vmax.f32 %v7293_v62, 0.0 }
 0x97c   : > { %7297 = vst [vmem:[#allocation2 + $0x4] sm:$0xff] %v7295_v63 }
 0x980   : > { %v7301_v17 = vld [vmem:[#allocation2 + $0x10] sm:$0xff] }
 0x981   : > { %v12686_v20 = vpack.c.bf16 %v7301_v17, %v7301_v17 }
 0x983   : > { %v7299_v3 = vld [vmem:[#allocation2] sm:$0xff]  ;;  %v7300_v5 = vld [vmem:[#allocation2 + $0x8] sm:$0xff] }
 0x984   : > { %v12656_v6 = vpack.c.bf16 %v7300_v5, %v7299_v3 }
 0x986   : > { %7785 = vmatmul.mubr.bf16.vlgmr.msra.gmra.mrb[144].mxu1 %v12656_v6  ;;  %7835 = vmatmul.mubr.bf16.vlgmr.msra.gmra.mrb[148].mxu0 %v12656_v6 }
 0x987   : > { %7854 = vmatpush1.bf16.msra.mxu1 %v10185_v0  ;;  %7905 = vmatpush1.bf16.msra.mxu0 %v10188_v1 }
 0x988   : > { %7855 = vmatprep.subr.bf16.mxu1 %v10193_v7  ;;  %7906 = vmatprep.subr.bf16.mxu0 %v10196_v8 }
 0x989   : > { %7794 = vmatprep.mubr.bf16.mxu1 %v10257_v2  ;;  %7844 = vmatprep.mubr.bf16.mxu0 %v10257_v2 }
 0x98b   : > { %7856 = vmatpush1.bf16.msra.mxu1 %v10191_v10  ;;  %7907 = vmatpush1.bf16.msra.mxu0 %v10194_v13 }
 0x98c   : > { %7857 = vmatprep.subr.bf16.mxu1 %v10199_v15  ;;  %7908 = vmatprep.subr.bf16.mxu0 %v10202_v16 }
 0x98e   : > { %7795 = vmatmul.mubr.bf16.gmra.mrb[148].mxu1 %v12686_v20  ;;  %7845 = vmatmul.mubr.bf16.gmra.mrb[152].mxu0 %v12686_v20 }
 0x98f   : > { %7858 = vmatpush1.bf16.msra.mxu1 %v10197_v18  ;;  %7909 = vmatpush1.bf16.msra.mxu0 %v10200_v19 }
 0x990   : > { %7859 = vmatprep.subr.bf16.mxu1 %v10205_v21  ;;  %7910 = vmatprep.subr.bf16.mxu0 %v10208_v22 }
 0x991   : > { %7885 = vmatprep.mubr.bf16.mxu1 %v10257_v2  ;;  %7936 = vmatprep.mubr.bf16.mxu0 %v10257_v2 }
 0x993   : > { %7860 = vmatpush1.bf16.msra.mxu1 %v10203_v23  ;;  %7911 = vmatpush1.bf16.msra.mxu0 %v10206_v25 }
 0x994   : > { %7861 = vmatprep.subr.bf16.mxu1 %v10211_v29  ;;  %7912 = vmatprep.subr.bf16.mxu0 %v10214_v30 }
 0x997   : > { %7862 = vmatpush1.bf16.msra.mxu1 %v10209_v31  ;;  %7913 = vmatpush1.bf16.msra.mxu0 %v10212_v32 }
 0x998   : > { %7863 = vmatprep.subr.bf16.mxu1 %v10217_v33  ;;  %7914 = vmatprep.subr.bf16.mxu0 %v10220_v34 }
 0x99b   : > { %7864 = vmatpush1.bf16.msra.mxu1 %v10215_v35  ;;  %7915 = vmatpush1.bf16.msra.mxu0 %v10218_v37 }
 0x99c   : > { %7865 = vmatprep.subr.bf16.mxu1 %v10223_v24  ;;  %7916 = vmatprep.subr.bf16.mxu0 %v10226_v26 }
 0x99f   : > { %7866 = vmatpush1.bf16.msra.mxu1 %v10221_v41  ;;  %7917 = vmatpush1.bf16.msra.mxu0 %v10224_v27 }
 0x9a0   : > { %7867 = vmatprep.subr.bf16.mxu1 %v10229_v28  ;;  %7918 = vmatprep.subr.bf16.mxu0 %v10232_v42 }
 0x9a3   : > { %7868 = vmatpush1.bf16.msra.mxu1 %v10227_v43  ;;  %7919 = vmatpush1.bf16.msra.mxu0 %v10230_v36 }
 0x9a4   : > { %9246 = vmatprep.subr.bf16.mxu1 %v10233_v38  ;;  %9266 = vmatprep.subr.bf16.mxu0 %v10258_v4 }
 0x9a6   : > { %7886 = vmatmul.mubr.bf16.vlgmr.msra.gmra.mrb[152].mxu1 %v12656_v6  ;;  %7937 = vmatmul.mubr.bf16.vlgmr.msra.gmra.mrb[156].mxu0 %v12656_v6 }
 0x9a7   : > { %9247 = vmatpush3.bf16.msra.mxu1 %v10233_v38  ;;  %7895 = vmatprep.mubr.bf16.mxu1 %v10257_v2 }
 0x9a8   : > { %9248 = vmatprep.subr.bf16.mxu1 %v10234_v39  ;;  %7946 = vmatprep.mubr.bf16.mxu0 %v10257_v2  ;;  %v10237_v2 = vld [vmem:[%s12873_s19 + $0x140] ss:$36 sps:$4 sm:$0xff]  }
 0x9a9   : > { %9267 = vmatpush3.bf16.msra.mxu0 %v10241_v48 }
 0x9aa   : > { %9268 = vmatprep.subr.bf16.mxu0 %v10258_v4 }
 0x9ab   : > { %9249 = vmatpush3.bf16.msra.mxu1 %v10234_v39 }
 0x9ac   : > { %9250 = vmatprep.subr.bf16.mxu1 %v10235_v40 }
 0x9ad   : > { %9269 = vmatpush3.bf16.msra.mxu0 %v10242_v49 }
 0x9ae   : > { %7896 = vmatmul.mubr.bf16.gmra.mrb[156].mxu1 %v12686_v20  ;;  %7947 = vmatmul.mubr.bf16.gmra.mrb[160].mxu0 %v12686_v20 }
 0x9af   : > { %9251 = vmatpush3.bf16.msra.mxu1 %v10235_v40  ;;  %9262 = vmatprep.mubr.bf16.mxu1 %v12656_v6 }
 0x9b0   : > { %9252 = vmatprep.subr.bf16.mxu1 %v10236_v44  ;;  %9282 = vmatprep.mubr.msk.bf16.mxu0 %vm10259_vm7, %v10258_v4 }
 0x9b1   : > { %9270 = vmatprep.subr.bf16.mxu0 %v10258_v4 }
 0x9b2   : > { %9271 = vmatpush3.bf16.msra.mxu0 %v10243_v50 }
 0x9b3   : > { %9253 = vmatpush3.bf16.msra.mxu1 %v10236_v44  ;;  %9272 = vmatprep.subr.bf16.mxu0 %v10258_v4 }
 0x9b4   : > { %9254 = vmatprep.subr.bf16.mxu1 %v10237_v2 }
 0x9b6   : > { %9273 = vmatpush3.bf16.msra.mxu0 %v10244_v51 }
 0x9b7   : > { %9255 = vmatpush3.bf16.msra.mxu1 %v10237_v2  ;;  %9274 = vmatprep.subr.bf16.mxu0 %v10258_v4 }
 0x9b8   : > { %9256 = vmatprep.subr.bf16.mxu1 %v10238_v45 }
 0x9ba   : > { %9275 = vmatpush3.bf16.msra.mxu0 %v10245_v52 }
 0x9bb   : > { %9257 = vmatpush3.bf16.msra.mxu1 %v10238_v45  ;;  %9276 = vmatprep.subr.bf16.mxu0 %v10258_v4 }
 0x9bc   : > { %9258 = vmatprep.subr.bf16.mxu1 %v10239_v46 }
 0x9be   : > { %9277 = vmatpush3.bf16.msra.mxu0 %v10246_v53 }
 0x9bf   : > { %9259 = vmatpush3.bf16.msra.mxu1 %v10239_v46  ;;  %9278 = vmatprep.subr.bf16.mxu0 %v10258_v4 }
 0x9c0   : > { %9260 = vmatprep.subr.bf16.mxu1 %v10240_v47 }
 0x9c2   : > { %9279 = vmatpush3.bf16.msra.mxu0 %v10247_v54 }
 0x9c3   : > { %9261 = vmatpush3.bf16.msra.mxu1 %v10240_v47  ;;  %9280 = vmatprep.subr.bf16.mxu0 %v10258_v4 }
 0x9c6   : > { %9263 = vmatmul.mubr.bf16.vlgmr.msra.gmra.mrb[160].mxu1 %v12686_v20  ;;  %9281 = vmatpush3.bf16.msra.mxu0 %v10248_v56 }
 0xa59   : > { %v7786_v57 = vpop.f32.mrb[144].mxu1  ;;  %v7836_v9 = vpop.f32.mrb[148].mxu0 }
 0xa5a   : > { %v7788_v60 = vpop.f32.mrb[145].mxu1  ;;  %v7838_v61 = vpop.f32.mrb[149].mxu0  ;;  %v8017_v0 = vrot.slane %v7836_v9, 2 }
 0xa5b   : > { %v7790_v62 = vpop.f32.mrb[146].mxu1  ;;  %v7840_v63 = vpop.f32.mrb[150].mxu0  ;;  %v8005_v6 = vrot.slane %v7788_v60, 1  ;;  %v8029_v7 = vrot.slane %v7838_v61, 3 }
 0xa5c   : > { %v8018_v1 = vrot.slane %v7840_v63, 2  ;;  %v7792_v3 = vpop.f32.mrb[147].mxu1  ;;  %v7842_v5 = vpop.f32.mrb[151].mxu0 }
 0xa5d   : > { %v8006_v8 = vrot.slane %v7792_v3, 1  ;;  %v8030_v10 = vrot.slane %v7842_v5, 3 }
 0xa5e   : > { %v8019_v4 = vsel %vm1438_vm1, %v8017_v0, %v8018_v1 }
 0xa5f   : > { %v8007_v13 = vsel %vm1425_vm0, %v8005_v6, %v8006_v8  ;;  %v8031_v15 = vsel %vm1451_vm2, %v8029_v7, %v8030_v10 }
 0xa60   : > { %v8012_v16 = vadd.f32 %v8007_v13, %v7786_v57 }
 0xa61   : > { %v7796_v17 = vpop.f32.mrb[148].mxu1  ;;  %v7846_v18 = vpop.f32.mrb[152].mxu0 }
 0xa62   : > { %v8024_v19 = vadd.f32 %v8019_v4, %v8012_v16  ;;  %v8020_v20 = vrot.slane %v7846_v18, 2  ;;  %v7797_v21 = vpop.f32.mrb[149].mxu1  ;;  %v7848_v22 = vpop.f32.mrb[153].mxu0 }
 0xa63   : > { %v8008_v23 = vrot.slane %v7797_v21, 1  ;;  %v8032_v25 = vrot.slane %v7848_v22, 3  ;;  %v7799_v29 = vpop.f32.mrb[150].mxu1  ;;  %v7850_v30 = vpop.f32.mrb[154].mxu0  ;;  %v8088_v22 = vld [vmem:[%s12874_s20] sm:$0x3] }
 0xa64   : > { %v8036_v31 = vadd.f32 %v8031_v15, %v8024_v19  ;;  %v8021_v32 = vsel %vm1438_vm1, %v8018_v1, %v8020_v20  ;;  %v7800_v33 = vpop.f32.mrb[151].mxu1  ;;  %v7851_v34 = vpop.f32.mrb[155].mxu0  ;;  %v8098_v30 = vrot.slane %v8088_v22, %v10764_v14 }
 0xa65   : > { %v8009_v35 = vsel %vm1425_vm0, %v8006_v8, %v8008_v23  ;;  %v8033_v37 = vsel %vm1451_vm2, %v8030_v10, %v8032_v25  ;;  %v8092_v23 = vrot.slane %v8088_v22, %v10759_v12 }
 0xa66   : > { %v8013_v24 = vadd.f32 %v8009_v35, %v7790_v62 }
 0xa68   : > { %v8025_v26 = vadd.f32 %v8021_v32, %v8013_v24 }
 0xa6a   : > { %v8037_v41 = vadd.f32 %v8033_v37, %v8025_v26 }
 0xa79   : > { %v7887_v27 = vpop.f32.mrb[152].mxu1  ;;  %v7938_v28 = vpop.f32.mrb[156].mxu0 }
 0xa7a   : > { %v7889_v42 = vpop.f32.mrb[153].mxu1  ;;  %v7940_v43 = vpop.f32.mrb[157].mxu0  ;;  %v8041_v39 = vrot.slane %v7887_v27, 4  ;;  %v8065_v40 = vrot.slane %v7938_v28, 6 }
 0xa7b   : > { %v7891_v36 = vpop.f32.mrb[154].mxu1  ;;  %v7942_v38 = vpop.f32.mrb[158].mxu0  ;;  %v8053_v47 = vrot.slane %v7889_v42, 5  ;;  %v8077_v48 = vrot.slane %v7940_v43, 7 }
 0xa7c   : > { %v8042_v44 = vrot.slane %v7891_v36, 4  ;;  %v8066_v2 = vrot.slane %v7942_v38, 6  ;;  %v7893_v45 = vpop.f32.mrb[155].mxu1  ;;  %v7944_v46 = vpop.f32.mrb[159].mxu0  ;;  %v8211_v36 = vld [vmem:[%s12876_s22] sm:$0x3] }
 0xa7d   : > { %v8054_v49 = vrot.slane %v7893_v45, 5  ;;  %v8078_v50 = vrot.slane %v7944_v46, 7  ;;  %v8215_v38 = vrot.slane %v8211_v36, %v10759_v12 }
 0xa7e   : > { %v8043_v51 = vsel %vm1464_vm3, %v8041_v39, %v8042_v44  ;;  %v8067_v52 = vsel %vm1490_vm5, %v8065_v40, %v8066_v2  ;;  %v8221_v39 = vrot.slane %v8211_v36, %v10764_v14 }
 0xa7f   : > { %v8048_v53 = vadd.f32 %v8043_v51, %v8036_v31  ;;  %v8055_v54 = vsel %vm1477_vm4, %v8053_v47, %v8054_v49  ;;  %v8079_v56 = vsel %vm1503_vm6, %v8077_v48, %v8078_v50 }
 0xa81   : > { %v8060_v57 = vadd.f32 %v8055_v54, %v8048_v53  ;;  %v7897_v9 = vpop.f32.mrb[156].mxu1  ;;  %v7948_v60 = vpop.f32.mrb[160].mxu0 }
 0xa82   : > { %v8044_v61 = vrot.slane %v7897_v9, 4  ;;  %v8068_v62 = vrot.slane %v7948_v60, 6  ;;  %v7899_v63 = vpop.f32.mrb[157].mxu1  ;;  %v7950_v0 = vpop.f32.mrb[161].mxu0 }
 0xa83   : > { %v8056_v1 = vrot.slane %v7899_v63, 5  ;;  %v8080_v3 = vrot.slane %v7950_v0, 7  ;;  %v7901_v5 = vpop.f32.mrb[158].mxu1  ;;  %v7952_v6 = vpop.f32.mrb[162].mxu0  ;;  %v8072_v7 = vadd.f32 %v8067_v52, %v8060_v57 }
 0xa84   : > { %v8045_v8 = vsel %vm1464_vm3, %v8042_v44, %v8044_v61  ;;  %v8069_v10 = vsel %vm1490_vm5, %v8066_v2, %v8068_v62  ;;  %v7902_v4 = vpop.f32.mrb[159].mxu1  ;;  %v7953_v13 = vpop.f32.mrb[163].mxu0 }
 0xa85   : > { %v8049_v15 = vadd.f32 %v8045_v8, %v8037_v41  ;;  %v8057_v16 = vsel %vm1477_vm4, %v8054_v49, %v8056_v1  ;;  %v8081_v17 = vsel %vm1503_vm6, %v8078_v50, %v8080_v3  ;;  %v8084_v18 = vadd.f32 %v8079_v56, %v8072_v7 }
 0xa87   : > { %v8061_v19 = vadd.f32 %v8057_v16, %v8049_v15 }
 0xa89   : > { %v8073_v20 = vadd.f32 %v8069_v10, %v8061_v19 }
 0xa8b   : > { %v8085_v21 = vadd.f32 %v8081_v17, %v8073_v20 }
 0xa99   : > { %v9264_v25 = vpop.f32.mrb[160].mxu1 }
 0xa9a   : > { %v8087_v29 = vadd.f32 %v9264_v25, %v8085_v21  ;;  %v7989_v31 = vpop.f32.mrb[161].mxu1 }
 0xa9b   : > { %v9265_v32 = vpop.f32.mrb[162].mxu1 }
 0xa9c   : > { %v8094_v33 = vmul.f32 %v8092_v23, %v8087_v29  ;;  %v7991_v34 = vpop.f32.mrb[163].mxu1 }
 0xa9d   : > { %v8086_v35 = vadd.f32 %v8084_v18, %v7991_v34 }
 0xa9e   : > { %v8100_v37 = vadd.f32 %v8098_v30, %v8094_v33 }
 0xa9f   : > { %v8093_v24 = vmul.f32 %v8092_v23, %v8086_v35 }
 0xaa0   : > { %v8102_v26 = vadd.f32 %v8100_v37, %v6490_v11 }
 0xaa1   : > { %v8099_v41 = vadd.f32 %v8098_v30, %v8093_v24 }
 0xaa2   : > { %v8104_v28 = vmax.f32 %v8102_v26, 0.0 }
 0xaa3   : > { %v8101_v27 = vadd.f32 %v8099_v41, %v6489_v59 }
 0xaa5   : > { %v8103_v42 = vmax.f32 %v8101_v27, 0.0 }
 0xaa7   : > { %v8105_v43 = vpack.c.bf16 %v8104_v28, %v8103_v42 }
 0xaa9   : > { %9283 = vmatmul.mubr.bf16.vlgmr.msra.gmra.mrb[164].mxu0 %v8105_v43 }
 0xb7c   : > { %v8204_v40 = vpop.f32.mrb[164].mxu0 }
 0xb7d   : > { %v8216_v44 = vmul.f32 %v8215_v38, %v8204_v40  ;;  %v9284_v55 = vpop.f32.mrb[165].mxu0 }
 0xb7e   : > { %v8207_v11 = vpop.f32.mrb[166].mxu0 }
 0xb7f   : > { %v8222_v58 = vadd.f32 %v8221_v39, %v8216_v44  ;;  %v8217_v59 = vmul.f32 %v8215_v38, %v8207_v11  ;;  %v9285_v2 = vpop.f32.mrb[167].mxu0 }
 0xb81   : > { %8224 = vst [vmem:[%s710_s4] sm:$0xff] %v8222_v58  ;;  %v8223_v45 = vadd.f32 %v8221_v39, %v8217_v59 }
 0xb83   : > { %8225 = vst [vmem:[%s710_s4 + $0x8] sm:$0xff] %v8223_v45 }
 0xb84 PF: > { %s12903_s29 = sld [smem:[#allocation3_spill]] }
 0xb8a   : > { %s33_s4 = sadd.s32 1, %s12903_s29  }
 0xb8b   : > { %p30_p4 = scmp.ge.s32.totalorder %s33_s4, 4  }
 0xb8d   :  { %32 = sbr.rel (!%p30_p4) target bundleno = 9 (0x9), region = 142 }

</bundles_post_ra>
